<compile_context>
chip_gen: v6e
topology: v6e:2x2x1
jax: 0.10.0
libtpu: 0.0.40
codegen_flags: <defaults>
</compile_context>

<pallas_src>
import jax
import jax.numpy as jnp
import numpy as np
from jax.experimental import pallas as pl
from jax.experimental.pallas import tpu as pltpu

EPS = 1e-5
LANES = 128


def resblock_kernel(xp_ref, w1_ref, w2_ref, g1_ref, b1_ref, g2_ref, b2_ref,
                    o_ref, buf_ref):
    # xp_ref : (N, H+2, W+2, Cp) f32   spatially padded, channel-padded input
    # w*_ref : (9, Cp, Cp)       bf16  per-tap conv weights (tap = 3*ky + kx)
    # g*/b*  : (1, Cp)           f32   batchnorm gamma / beta (pad lanes = 0)
    # o_ref  : (N, H, W, Cp)     bf16  output
    # buf_ref: (N, H+2, W+2, Cp) bf16  shared scratch: conv input, zero halo
    N, Hp, Wp, C = xp_ref.shape
    H, W = Hp - 2, Wp - 2
    M = N * H * W

    def conv3x3(w_ref):
        # 9 accumulating MXU matmuls (one per tap), f32 accumulation.
        acc = None
        for ky in range(3):
            for kx in range(3):
                win = buf_ref[:, ky:ky + H, kx:kx + W, :].reshape(M, C)
                part = jnp.dot(win, w_ref[3 * ky + kx],
                               preferred_element_type=jnp.float32)
                acc = part if acc is None else acc + part
        return acc

    def bn(y, g_ref, b_ref):
        # Training-mode batch norm; two-pass variance in f32 (no E[y^2]-m^2
        # cancellation).  (y - mean) * scale + beta == y*scale + shift.
        inv_n = 1.0 / jnp.float32(M)
        mean = jnp.sum(y, axis=0, keepdims=True) * inv_n
        centered = y - mean
        var = jnp.sum(centered * centered, axis=0, keepdims=True) * inv_n
        scale = g_ref[...] * jax.lax.rsqrt(var + EPS)
        return centered * scale + b_ref[...]

    # bf16 copy of the padded input; its zero halo IS the conv padding.
    buf_ref[...] = xp_ref[...].astype(jnp.bfloat16)

    # ---- conv1 -> bn1 -> relu ----
    h = jnp.maximum(bn(conv3x3(w1_ref), g1_ref, b1_ref), 0.0)

    # Overwrite only the interior of the shared scratch (halo stays zero).
    buf_ref[:, 1:1 + H, 1:1 + W, :] = (
        h.reshape(N, H, W, C).astype(jnp.bfloat16))

    # ---- conv2 -> bn2 -> +residual -> relu (fused into the store) ----
    y2 = bn(conv3x3(w2_ref), g2_ref, b2_ref).reshape(N, H, W, C)
    out = jnp.maximum(y2 + xp_ref[:, 1:1 + H, 1:1 + W, :], 0.0)
    o_ref[...] = out.astype(o_ref.dtype)


def residual_block(x_nchw, w1, w2, g1, b1, g2, b2):
    """x_nchw: (N, C, H, W). w1/w2: (3, 3, Cin, Cout) HWIO. g*/b*: (Cout,).

    Returns (N, C, H, W) in bf16 (intentional precision trade-off).
    """
    N, Cin, H, W = x_nchw.shape
    Cout = w1.shape[-1]
    assert Cin == Cout, "residual add requires inplanes == planes (stride=1)"
    Cp = ((Cout + LANES - 1) // LANES) * LANES   # lane-dense channel padding
    Hp, Wp = H + 2, W + 2
    M = N * H * W

    # Layout plumbing (wrapper): NCHW -> NHWC, 1-px spatial halo, channel pad.
    x = jnp.transpose(x_nchw, (0, 2, 3, 1)).astype(jnp.float32)
    xp = jnp.pad(x, ((0, 0), (1, 1), (1, 1), (0, Cp - Cin)))

    def prep_w(w):
        wp = jnp.pad(w.astype(jnp.float32),
                     ((0, 0), (0, 0), (0, Cp - Cin), (0, Cp - Cout)))
        return wp.reshape(9, Cp, Cp).astype(jnp.bfloat16)

    def prep_vec(v):
        # Pad lanes are 0 for BOTH gamma and beta -> pad channels exactly 0.
        v = v.reshape(1, -1).astype(jnp.float32)
        return jnp.pad(v, ((0, 0), (0, Cp - Cout)))

    w1f, w2f = prep_w(w1), prep_w(w2)
    g1p, b1p = prep_vec(g1), prep_vec(b1)
    g2p, b2p = prep_vec(g2), prep_vec(b2)

    # VMEM budget: derive from the chip, leave headroom for compiler temps.
    try:
        vmem_cap = int(pltpu.get_tpu_info().vmem_capacity_bytes)
    except Exception:
        vmem_cap = 64 * 1024 * 1024          # conservative (v7x per-TC)
    vmem_limit = min(vmem_cap - 8 * 1024 * 1024, 100 * 1024 * 1024)
    vmem_limit = max(vmem_limit, 32 * 1024 * 1024)

    working_set = (N * Hp * Wp * Cp * 4       # xp (f32 input, residual read)
                   + N * Hp * Wp * Cp * 2     # shared bf16 scratch
                   + N * H * W * Cp * 2       # bf16 output
                   + 3 * M * Cp * 4           # f32 conv/BN intermediates
                   + 2 * M * Cp * 2           # per-tap bf16 window temps
                   + 2 * 9 * Cp * Cp * 2)     # weights
    assert working_set <= vmem_limit, (
        "fused monolithic path does not fit VMEM at this shape; "
        "TODO(synk): gridded two-pass-BN variant for large AlphaZero shapes")

    # Real (unpadded) channel FLOPs so XLA doesn't over-weight this call.
    flops = 2 * (2 * M * 9 * Cin * Cout)
    bytes_accessed = (xp.size * 4 + N * H * W * Cp * 2
                      + 2 * 9 * Cp * Cp * 2 + 4 * Cp * 4)
    cost = pl.CostEstimate(flops=flops, transcendentals=2 * Cp,
                           bytes_accessed=bytes_accessed)

    vmem = pl.BlockSpec(memory_space=pltpu.MemorySpace.VMEM)
    out = pl.pallas_call(
        resblock_kernel,
        out_shape=jax.ShapeDtypeStruct((N, H, W, Cp), jnp.bfloat16),
        in_specs=[vmem] * 7,
        out_specs=vmem,
        scratch_shapes=[pltpu.VMEM((N, Hp, Wp, Cp), jnp.bfloat16)],
        compiler_params=pltpu.CompilerParams(vmem_limit_bytes=vmem_limit),
        cost_estimate=cost,
    )(xp, w1f, w2f, g1p, b1p, g2p, b2p)

    out = out[:, :, :, :Cout]                 # drop channel padding
    return jnp.transpose(out, (0, 3, 1, 2))   # back to NCHW (bf16)


# ---------------- pure-JAX reference for verification ----------------
def ref_block(x_nchw, w1, w2, g1, b1, g2, b2):
    x = jnp.transpose(x_nchw, (0, 2, 3, 1)).astype(jnp.float32)

    def conv(y, w):
        return jax.lax.conv_general_dilated(
            y, w, (1, 1), 'SAME',
            dimension_numbers=('NHWC', 'HWIO', 'NHWC'))

    def bn(y, g, b):
        mean = y.mean(axis=(0, 1, 2), keepdims=True)
        var = ((y - mean) ** 2).mean(axis=(0, 1, 2), keepdims=True)
        return ((y - mean) * jax.lax.rsqrt(var + EPS)
                * g.reshape(1, 1, 1, -1) + b.reshape(1, 1, 1, -1))

    h = jnp.maximum(bn(conv(x, w1), g1, b1), 0.0)
    h2 = bn(conv(h, w2), g2, b2)
    out = jnp.maximum(h2 + x, 0.0)
    return jnp.transpose(out, (0, 3, 1, 2))


if __name__ == "__main__":
    # Small shapes consistent with the module (inplanes == planes, stride=1).
    N, C, H, W = 2, 8, 8, 8
    key = jax.random.PRNGKey(0)
    kx, kw1, kw2, kg1, kb1, kg2, kb2 = jax.random.split(key, 7)

    x = jax.random.normal(kx, (N, C, H, W), dtype=jnp.float32)
    # Conv2d weights kept in HWIO (3,3,Cin,Cout); PyTorch layout would be OIHW.
    w1 = jax.random.normal(kw1, (3, 3, C, C), dtype=jnp.float32) * 0.1
    w2 = jax.random.normal(kw2, (3, 3, C, C), dtype=jnp.float32) * 0.1
    g1 = 1.0 + 0.1 * jax.random.normal(kg1, (C,), dtype=jnp.float32)
    b1 = 0.1 * jax.random.normal(kb1, (C,), dtype=jnp.float32)
    g2 = 1.0 + 0.1 * jax.random.normal(kg2, (C,), dtype=jnp.float32)
    b2 = 0.1 * jax.random.normal(kb2, (C,), dtype=jnp.float32)

    out = residual_block(x, w1, w2, g1, b1, g2, b2)
    out = jax.block_until_ready(out)

    ref = ref_block(x, w1, w2, g1, b1, g2, b2)
    # bf16 MXU operands + bf16 output (f32 accumulate) -> loose tolerance.
    np.testing.assert_allclose(np.asarray(out, dtype=np.float32),
                               np.asarray(ref), rtol=5e-2, atol=5e-2)
    print("KERNEL_OK")
</pallas_src>

<mosaic_0001>
module attributes {stable_mosaic.version = 11 : i64} {
  func.func @resblock_kernel(%arg0: memref<2x10x10x128xf32, #tpu.memory_space<vmem>>, %arg1: memref<9x128x128xbf16, #tpu.memory_space<vmem>>, %arg2: memref<9x128x128xbf16, #tpu.memory_space<vmem>>, %arg3: memref<1x128xf32, #tpu.memory_space<vmem>>, %arg4: memref<1x128xf32, #tpu.memory_space<vmem>>, %arg5: memref<1x128xf32, #tpu.memory_space<vmem>>, %arg6: memref<1x128xf32, #tpu.memory_space<vmem>>, %arg7: memref<2x8x8x128xbf16, #tpu.memory_space<vmem>>, %arg8: memref<2x10x10x128xbf16, #tpu.memory_space<vmem>>) attributes {dimension_semantics = [], scalar_prefetch = 0 : i64, scratch_operands = 1 : i64, tpu.core_type = #tpu.core_type<tc>} {
    %c0 = arith.constant 0 : index
    %c0_0 = arith.constant 0 : index
    %c0_1 = arith.constant 0 : index
    %c0_2 = arith.constant 0 : index
    %0 = vector.load %arg0[%c0, %c0_0, %c0_1, %c0_2] : memref<2x10x10x128xf32, #tpu.memory_space<vmem>>, vector<2x10x10x128xf32>
    %1 = arith.truncf %0 : vector<2x10x10x128xf32> to vector<2x10x10x128xbf16>
    %c0_3 = arith.constant 0 : index
    %c0_4 = arith.constant 0 : index
    %c0_5 = arith.constant 0 : index
    %c0_6 = arith.constant 0 : index
    %2 = vector.load %arg8[%c0_3, %c0_4, %c0_5, %c0_6] : memref<2x10x10x128xbf16, #tpu.memory_space<vmem>>, vector<2x10x10x128xbf16>
    tpu.vector_store %arg8[%c0_3, %c0_4, %c0_5, %c0_6], %1 {strides = array<i32>} : memref<2x10x10x128xbf16, #tpu.memory_space<vmem>>, vector<2x10x10x128xbf16>,
    %c0_7 = arith.constant 0 : index
    %c0_8 = arith.constant 0 : index
    %c0_9 = arith.constant 0 : index
    %c0_10 = arith.constant 0 : index
    %3 = vector.load %arg8[%c0_7, %c0_8, %c0_9, %c0_10] : memref<2x10x10x128xbf16, #tpu.memory_space<vmem>>, vector<2x8x8x128xbf16>
    %4 = vector.shape_cast %3 : vector<2x8x8x128xbf16> to vector<128x128xbf16>
    %c0_11 = arith.constant 0 : index
    %c0_12 = arith.constant 0 : index
    %c0_13 = arith.constant 0 : index
    %5 = vector.load %arg1[%c0_11, %c0_12, %c0_13] : memref<9x128x128xbf16, #tpu.memory_space<vmem>>, vector<1x128x128xbf16>
    %6 = vector.shape_cast %5 : vector<1x128x128xbf16> to vector<128x128xbf16>
    %cst = arith.constant dense<0.000000e+00> : vector<128x128xf32>
    %7 = tpu.matmul %4, %6, %cst {dimension_numbers = #tpu.dot_dimension_numbers<[1], [0], [0], [1], [0, 0, 1, 1], [], []>} : vector<128x128xbf16>, vector<128x128xbf16>, vector<128x128xf32> -> vector<128x128xf32>
    %c0_14 = arith.constant 0 : index
    %c0_15 = arith.constant 0 : index
    %c1 = arith.constant 1 : index
    %c0_16 = arith.constant 0 : index
    %8 = vector.load %arg8[%c0_14, %c0_15, %c1, %c0_16] : memref<2x10x10x128xbf16, #tpu.memory_space<vmem>>, vector<2x8x8x128xbf16>
    %9 = vector.shape_cast %8 : vector<2x8x8x128xbf16> to vector<128x128xbf16>
    %c1_17 = arith.constant 1 : index
    %c0_18 = arith.constant 0 : index
    %c0_19 = arith.constant 0 : index
    %10 = vector.load %arg1[%c1_17, %c0_18, %c0_19] : memref<9x128x128xbf16, #tpu.memory_space<vmem>>, vector<1x128x128xbf16>
    %11 = vector.shape_cast %10 : vector<1x128x128xbf16> to vector<128x128xbf16>
    %cst_20 = arith.constant dense<0.000000e+00> : vector<128x128xf32>
    %12 = tpu.matmul %9, %11, %cst_20 {dimension_numbers = #tpu.dot_dimension_numbers<[1], [0], [0], [1], [0, 0, 1, 1], [], []>} : vector<128x128xbf16>, vector<128x128xbf16>, vector<128x128xf32> -> vector<128x128xf32>
    %13 = arith.addf %7, %12 : vector<128x128xf32>
    %c0_21 = arith.constant 0 : index
    %c0_22 = arith.constant 0 : index
    %c2 = arith.constant 2 : index
    %c0_23 = arith.constant 0 : index
    %14 = vector.load %arg8[%c0_21, %c0_22, %c2, %c0_23] : memref<2x10x10x128xbf16, #tpu.memory_space<vmem>>, vector<2x8x8x128xbf16>
    %15 = vector.shape_cast %14 : vector<2x8x8x128xbf16> to vector<128x128xbf16>
    %c2_24 = arith.constant 2 : index
    %c0_25 = arith.constant 0 : index
    %c0_26 = arith.constant 0 : index
    %16 = vector.load %arg1[%c2_24, %c0_25, %c0_26] : memref<9x128x128xbf16, #tpu.memory_space<vmem>>, vector<1x128x128xbf16>
    %17 = vector.shape_cast %16 : vector<1x128x128xbf16> to vector<128x128xbf16>
    %cst_27 = arith.constant dense<0.000000e+00> : vector<128x128xf32>
    %18 = tpu.matmul %15, %17, %cst_27 {dimension_numbers = #tpu.dot_dimension_numbers<[1], [0], [0], [1], [0, 0, 1, 1], [], []>} : vector<128x128xbf16>, vector<128x128xbf16>, vector<128x128xf32> -> vector<128x128xf32>
    %19 = arith.addf %13, %18 : vector<128x128xf32>
    %c0_28 = arith.constant 0 : index
    %c1_29 = arith.constant 1 : index
    %c0_30 = arith.constant 0 : index
    %c0_31 = arith.constant 0 : index
    %20 = vector.load %arg8[%c0_28, %c1_29, %c0_30, %c0_31] : memref<2x10x10x128xbf16, #tpu.memory_space<vmem>>, vector<2x8x8x128xbf16>
    %21 = vector.shape_cast %20 : vector<2x8x8x128xbf16> to vector<128x128xbf16>
    %c3 = arith.constant 3 : index
    %c0_32 = arith.constant 0 : index
    %c0_33 = arith.constant 0 : index
    %22 = vector.load %arg1[%c3, %c0_32, %c0_33] : memref<9x128x128xbf16, #tpu.memory_space<vmem>>, vector<1x128x128xbf16>
    %23 = vector.shape_cast %22 : vector<1x128x128xbf16> to vector<128x128xbf16>
    %cst_34 = arith.constant dense<0.000000e+00> : vector<128x128xf32>
    %24 = tpu.matmul %21, %23, %cst_34 {dimension_numbers = #tpu.dot_dimension_numbers<[1], [0], [0], [1], [0, 0, 1, 1], [], []>} : vector<128x128xbf16>, vector<128x128xbf16>, vector<128x128xf32> -> vector<128x128xf32>
    %25 = arith.addf %19, %24 : vector<128x128xf32>
    %c0_35 = arith.constant 0 : index
    %c1_36 = arith.constant 1 : index
    %c1_37 = arith.constant 1 : index
    %c0_38 = arith.constant 0 : index
    %26 = vector.load %arg8[%c0_35, %c1_36, %c1_37, %c0_38] : memref<2x10x10x128xbf16, #tpu.memory_space<vmem>>, vector<2x8x8x128xbf16>
    %27 = vector.shape_cast %26 : vector<2x8x8x128xbf16> to vector<128x128xbf16>
    %c4 = arith.constant 4 : index
    %c0_39 = arith.constant 0 : index
    %c0_40 = arith.constant 0 : index
    %28 = vector.load %arg1[%c4, %c0_39, %c0_40] : memref<9x128x128xbf16, #tpu.memory_space<vmem>>, vector<1x128x128xbf16>
    %29 = vector.shape_cast %28 : vector<1x128x128xbf16> to vector<128x128xbf16>
    %cst_41 = arith.constant dense<0.000000e+00> : vector<128x128xf32>
    %30 = tpu.matmul %27, %29, %cst_41 {dimension_numbers = #tpu.dot_dimension_numbers<[1], [0], [0], [1], [0, 0, 1, 1], [], []>} : vector<128x128xbf16>, vector<128x128xbf16>, vector<128x128xf32> -> vector<128x128xf32>
    %31 = arith.addf %25, %30 : vector<128x128xf32>
    %c0_42 = arith.constant 0 : index
    %c1_43 = arith.constant 1 : index
    %c2_44 = arith.constant 2 : index
    %c0_45 = arith.constant 0 : index
    %32 = vector.load %arg8[%c0_42, %c1_43, %c2_44, %c0_45] : memref<2x10x10x128xbf16, #tpu.memory_space<vmem>>, vector<2x8x8x128xbf16>
    %33 = vector.shape_cast %32 : vector<2x8x8x128xbf16> to vector<128x128xbf16>
    %c5 = arith.constant 5 : index
    %c0_46 = arith.constant 0 : index
    %c0_47 = arith.constant 0 : index
    %34 = vector.load %arg1[%c5, %c0_46, %c0_47] : memref<9x128x128xbf16, #tpu.memory_space<vmem>>, vector<1x128x128xbf16>
    %35 = vector.shape_cast %34 : vector<1x128x128xbf16> to vector<128x128xbf16>
    %cst_48 = arith.constant dense<0.000000e+00> : vector<128x128xf32>
    %36 = tpu.matmul %33, %35, %cst_48 {dimension_numbers = #tpu.dot_dimension_numbers<[1], [0], [0], [1], [0, 0, 1, 1], [], []>} : vector<128x128xbf16>, vector<128x128xbf16>, vector<128x128xf32> -> vector<128x128xf32>
    %37 = arith.addf %31, %36 : vector<128x128xf32>
    %c0_49 = arith.constant 0 : index
    %c2_50 = arith.constant 2 : index
    %c0_51 = arith.constant 0 : index
    %c0_52 = arith.constant 0 : index
    %38 = vector.load %arg8[%c0_49, %c2_50, %c0_51, %c0_52] : memref<2x10x10x128xbf16, #tpu.memory_space<vmem>>, vector<2x8x8x128xbf16>
    %39 = vector.shape_cast %38 : vector<2x8x8x128xbf16> to vector<128x128xbf16>
    %c6 = arith.constant 6 : index
    %c0_53 = arith.constant 0 : index
    %c0_54 = arith.constant 0 : index
    %40 = vector.load %arg1[%c6, %c0_53, %c0_54] : memref<9x128x128xbf16, #tpu.memory_space<vmem>>, vector<1x128x128xbf16>
    %41 = vector.shape_cast %40 : vector<1x128x128xbf16> to vector<128x128xbf16>
    %cst_55 = arith.constant dense<0.000000e+00> : vector<128x128xf32>
    %42 = tpu.matmul %39, %41, %cst_55 {dimension_numbers = #tpu.dot_dimension_numbers<[1], [0], [0], [1], [0, 0, 1, 1], [], []>} : vector<128x128xbf16>, vector<128x128xbf16>, vector<128x128xf32> -> vector<128x128xf32>
    %43 = arith.addf %37, %42 : vector<128x128xf32>
    %c0_56 = arith.constant 0 : index
    %c2_57 = arith.constant 2 : index
    %c1_58 = arith.constant 1 : index
    %c0_59 = arith.constant 0 : index
    %44 = vector.load %arg8[%c0_56, %c2_57, %c1_58, %c0_59] : memref<2x10x10x128xbf16, #tpu.memory_space<vmem>>, vector<2x8x8x128xbf16>
    %45 = vector.shape_cast %44 : vector<2x8x8x128xbf16> to vector<128x128xbf16>
    %c7 = arith.constant 7 : index
    %c0_60 = arith.constant 0 : index
    %c0_61 = arith.constant 0 : index
    %46 = vector.load %arg1[%c7, %c0_60, %c0_61] : memref<9x128x128xbf16, #tpu.memory_space<vmem>>, vector<1x128x128xbf16>
    %47 = vector.shape_cast %46 : vector<1x128x128xbf16> to vector<128x128xbf16>
    %cst_62 = arith.constant dense<0.000000e+00> : vector<128x128xf32>
    %48 = tpu.matmul %45, %47, %cst_62 {dimension_numbers = #tpu.dot_dimension_numbers<[1], [0], [0], [1], [0, 0, 1, 1], [], []>} : vector<128x128xbf16>, vector<128x128xbf16>, vector<128x128xf32> -> vector<128x128xf32>
    %49 = arith.addf %43, %48 : vector<128x128xf32>
    %c0_63 = arith.constant 0 : index
    %c2_64 = arith.constant 2 : index
    %c2_65 = arith.constant 2 : index
    %c0_66 = arith.constant 0 : index
    %50 = vector.load %arg8[%c0_63, %c2_64, %c2_65, %c0_66] : memref<2x10x10x128xbf16, #tpu.memory_space<vmem>>, vector<2x8x8x128xbf16>
    %51 = vector.shape_cast %50 : vector<2x8x8x128xbf16> to vector<128x128xbf16>
    %c8 = arith.constant 8 : index
    %c0_67 = arith.constant 0 : index
    %c0_68 = arith.constant 0 : index
    %52 = vector.load %arg1[%c8, %c0_67, %c0_68] : memref<9x128x128xbf16, #tpu.memory_space<vmem>>, vector<1x128x128xbf16>
    %53 = vector.shape_cast %52 : vector<1x128x128xbf16> to vector<128x128xbf16>
    %cst_69 = arith.constant dense<0.000000e+00> : vector<128x128xf32>
    %54 = tpu.matmul %51, %53, %cst_69 {dimension_numbers = #tpu.dot_dimension_numbers<[1], [0], [0], [1], [0, 0, 1, 1], [], []>} : vector<128x128xbf16>, vector<128x128xbf16>, vector<128x128xf32> -> vector<128x128xf32>
    %55 = arith.addf %49, %54 : vector<128x128xf32>
    %cst_70 = arith.constant 1.000000e+00 : f32
    %cst_71 = arith.constant 1.280000e+02 : f32
    %56 = arith.divf %cst_70, %cst_71 : f32
    %cst_72 = arith.constant dense<0.000000e+00> : vector<128xf32>
    %57 = vector.multi_reduction <add>, %55, %cst_72 [0] : vector<128x128xf32> to vector<128xf32>
    %58 = vector.shape_cast %57 : vector<128xf32> to vector<1x128xf32>
    %59 = vector.broadcast %56 : f32 to vector<1x128xf32>
    %60 = arith.mulf %58, %59 : vector<1x128xf32>
    %61 = vector.broadcast %60 : vector<1x128xf32> to vector<128x128xf32>
    %62 = arith.subf %55, %61 : vector<128x128xf32>
    %63 = arith.mulf %62, %62 : vector<128x128xf32>
    %cst_73 = arith.constant dense<0.000000e+00> : vector<128xf32>
    %64 = vector.multi_reduction <add>, %63, %cst_73 [0] : vector<128x128xf32> to vector<128xf32>
    %65 = vector.shape_cast %64 : vector<128xf32> to vector<1x128xf32>
    %66 = vector.broadcast %56 : f32 to vector<1x128xf32>
    %67 = arith.mulf %65, %66 : vector<1x128xf32>
    %c0_74 = arith.constant 0 : index
    %c0_75 = arith.constant 0 : index
    %68 = vector.load %arg3[%c0_74, %c0_75] : memref<1x128xf32, #tpu.memory_space<vmem>>, vector<1x128xf32>
    %cst_76 = arith.constant 9.99999974E-6 : f32
    %69 = vector.broadcast %cst_76 : f32 to vector<1x128xf32>
    %70 = arith.addf %67, %69 : vector<1x128xf32>
    %71 = math.rsqrt %70 : vector<1x128xf32>
    %72 = arith.mulf %68, %71 : vector<1x128xf32>
    %73 = vector.broadcast %72 : vector<1x128xf32> to vector<128x128xf32>
    %74 = arith.mulf %62, %73 : vector<128x128xf32>
    %c0_77 = arith.constant 0 : index
    %c0_78 = arith.constant 0 : index
    %75 = vector.load %arg4[%c0_77, %c0_78] : memref<1x128xf32, #tpu.memory_space<vmem>>, vector<1x128xf32>
    %76 = vector.broadcast %75 : vector<1x128xf32> to vector<128x128xf32>
    %77 = arith.addf %74, %76 : vector<128x128xf32>
    %cst_79 = arith.constant 0.000000e+00 : f32
    %78 = vector.broadcast %cst_79 : f32 to vector<128x128xf32>
    %79 = arith.maximumf %77, %78 : vector<128x128xf32>
    %80 = vector.shape_cast %79 : vector<128x128xf32> to vector<2x8x8x128xf32>
    %81 = arith.truncf %80 : vector<2x8x8x128xf32> to vector<2x8x8x128xbf16>
    %c0_80 = arith.constant 0 : index
    %c1_81 = arith.constant 1 : index
    %c1_82 = arith.constant 1 : index
    %c0_83 = arith.constant 0 : index
    %82 = vector.load %arg8[%c0_80, %c1_81, %c1_82, %c0_83] : memref<2x10x10x128xbf16, #tpu.memory_space<vmem>>, vector<2x8x8x128xbf16>
    tpu.vector_store %arg8[%c0_80, %c1_81, %c1_82, %c0_83], %81 {strides = array<i32>} : memref<2x10x10x128xbf16, #tpu.memory_space<vmem>>, vector<2x8x8x128xbf16>,
    %c0_84 = arith.constant 0 : index
    %c0_85 = arith.constant 0 : index
    %c0_86 = arith.constant 0 : index
    %c0_87 = arith.constant 0 : index
    %83 = vector.load %arg8[%c0_84, %c0_85, %c0_86, %c0_87] : memref<2x10x10x128xbf16, #tpu.memory_space<vmem>>, vector<2x8x8x128xbf16>
    %84 = vector.shape_cast %83 : vector<2x8x8x128xbf16> to vector<128x128xbf16>
    %c0_88 = arith.constant 0 : index
    %c0_89 = arith.constant 0 : index
    %c0_90 = arith.constant 0 : index
    %85 = vector.load %arg2[%c0_88, %c0_89, %c0_90] : memref<9x128x128xbf16, #tpu.memory_space<vmem>>, vector<1x128x128xbf16>
    %86 = vector.shape_cast %85 : vector<1x128x128xbf16> to vector<128x128xbf16>
    %cst_91 = arith.constant dense<0.000000e+00> : vector<128x128xf32>
    %87 = tpu.matmul %84, %86, %cst_91 {dimension_numbers = #tpu.dot_dimension_numbers<[1], [0], [0], [1], [0, 0, 1, 1], [], []>} : vector<128x128xbf16>, vector<128x128xbf16>, vector<128x128xf32> -> vector<128x128xf32>
    %c0_92 = arith.constant 0 : index
    %c0_93 = arith.constant 0 : index
    %c1_94 = arith.constant 1 : index
    %c0_95 = arith.constant 0 : index
    %88 = vector.load %arg8[%c0_92, %c0_93, %c1_94, %c0_95] : memref<2x10x10x128xbf16, #tpu.memory_space<vmem>>, vector<2x8x8x128xbf16>
    %89 = vector.shape_cast %88 : vector<2x8x8x128xbf16> to vector<128x128xbf16>
    %c1_96 = arith.constant 1 : index
    %c0_97 = arith.constant 0 : index
    %c0_98 = arith.constant 0 : index
    %90 = vector.load %arg2[%c1_96, %c0_97, %c0_98] : memref<9x128x128xbf16, #tpu.memory_space<vmem>>, vector<1x128x128xbf16>
    %91 = vector.shape_cast %90 : vector<1x128x128xbf16> to vector<128x128xbf16>
    %cst_99 = arith.constant dense<0.000000e+00> : vector<128x128xf32>
    %92 = tpu.matmul %89, %91, %cst_99 {dimension_numbers = #tpu.dot_dimension_numbers<[1], [0], [0], [1], [0, 0, 1, 1], [], []>} : vector<128x128xbf16>, vector<128x128xbf16>, vector<128x128xf32> -> vector<128x128xf32>
    %93 = arith.addf %87, %92 : vector<128x128xf32>
    %c0_100 = arith.constant 0 : index
    %c0_101 = arith.constant 0 : index
    %c2_102 = arith.constant 2 : index
    %c0_103 = arith.constant 0 : index
    %94 = vector.load %arg8[%c0_100, %c0_101, %c2_102, %c0_103] : memref<2x10x10x128xbf16, #tpu.memory_space<vmem>>, vector<2x8x8x128xbf16>
    %95 = vector.shape_cast %94 : vector<2x8x8x128xbf16> to vector<128x128xbf16>
    %c2_104 = arith.constant 2 : index
    %c0_105 = arith.constant 0 : index
    %c0_106 = arith.constant 0 : index
    %96 = vector.load %arg2[%c2_104, %c0_105, %c0_106] : memref<9x128x128xbf16, #tpu.memory_space<vmem>>, vector<1x128x128xbf16>
    %97 = vector.shape_cast %96 : vector<1x128x128xbf16> to vector<128x128xbf16>
    %cst_107 = arith.constant dense<0.000000e+00> : vector<128x128xf32>
    %98 = tpu.matmul %95, %97, %cst_107 {dimension_numbers = #tpu.dot_dimension_numbers<[1], [0], [0], [1], [0, 0, 1, 1], [], []>} : vector<128x128xbf16>, vector<128x128xbf16>, vector<128x128xf32> -> vector<128x128xf32>
    %99 = arith.addf %93, %98 : vector<128x128xf32>
    %c0_108 = arith.constant 0 : index
    %c1_109 = arith.constant 1 : index
    %c0_110 = arith.constant 0 : index
    %c0_111 = arith.constant 0 : index
    %100 = vector.load %arg8[%c0_108, %c1_109, %c0_110, %c0_111] : memref<2x10x10x128xbf16, #tpu.memory_space<vmem>>, vector<2x8x8x128xbf16>
    %101 = vector.shape_cast %100 : vector<2x8x8x128xbf16> to vector<128x128xbf16>
    %c3_112 = arith.constant 3 : index
    %c0_113 = arith.constant 0 : index
    %c0_114 = arith.constant 0 : index
    %102 = vector.load %arg2[%c3_112, %c0_113, %c0_114] : memref<9x128x128xbf16, #tpu.memory_space<vmem>>, vector<1x128x128xbf16>
    %103 = vector.shape_cast %102 : vector<1x128x128xbf16> to vector<128x128xbf16>
    %cst_115 = arith.constant dense<0.000000e+00> : vector<128x128xf32>
    %104 = tpu.matmul %101, %103, %cst_115 {dimension_numbers = #tpu.dot_dimension_numbers<[1], [0], [0], [1], [0, 0, 1, 1], [], []>} : vector<128x128xbf16>, vector<128x128xbf16>, vector<128x128xf32> -> vector<128x128xf32>
    %105 = arith.addf %99, %104 : vector<128x128xf32>
    %c0_116 = arith.constant 0 : index
    %c1_117 = arith.constant 1 : index
    %c1_118 = arith.constant 1 : index
    %c0_119 = arith.constant 0 : index
    %106 = vector.load %arg8[%c0_116, %c1_117, %c1_118, %c0_119] : memref<2x10x10x128xbf16, #tpu.memory_space<vmem>>, vector<2x8x8x128xbf16>
    %107 = vector.shape_cast %106 : vector<2x8x8x128xbf16> to vector<128x128xbf16>
    %c4_120 = arith.constant 4 : index
    %c0_121 = arith.constant 0 : index
    %c0_122 = arith.constant 0 : index
    %108 = vector.load %arg2[%c4_120, %c0_121, %c0_122] : memref<9x128x128xbf16, #tpu.memory_space<vmem>>, vector<1x128x128xbf16>
    %109 = vector.shape_cast %108 : vector<1x128x128xbf16> to vector<128x128xbf16>
    %cst_123 = arith.constant dense<0.000000e+00> : vector<128x128xf32>
    %110 = tpu.matmul %107, %109, %cst_123 {dimension_numbers = #tpu.dot_dimension_numbers<[1], [0], [0], [1], [0, 0, 1, 1], [], []>} : vector<128x128xbf16>, vector<128x128xbf16>, vector<128x128xf32> -> vector<128x128xf32>
    %111 = arith.addf %105, %110 : vector<128x128xf32>
    %c0_124 = arith.constant 0 : index
    %c1_125 = arith.constant 1 : index
    %c2_126 = arith.constant 2 : index
    %c0_127 = arith.constant 0 : index
    %112 = vector.load %arg8[%c0_124, %c1_125, %c2_126, %c0_127] : memref<2x10x10x128xbf16, #tpu.memory_space<vmem>>, vector<2x8x8x128xbf16>
    %113 = vector.shape_cast %112 : vector<2x8x8x128xbf16> to vector<128x128xbf16>
    %c5_128 = arith.constant 5 : index
    %c0_129 = arith.constant 0 : index
    %c0_130 = arith.constant 0 : index
    %114 = vector.load %arg2[%c5_128, %c0_129, %c0_130] : memref<9x128x128xbf16, #tpu.memory_space<vmem>>, vector<1x128x128xbf16>
    %115 = vector.shape_cast %114 : vector<1x128x128xbf16> to vector<128x128xbf16>
    %cst_131 = arith.constant dense<0.000000e+00> : vector<128x128xf32>
    %116 = tpu.matmul %113, %115, %cst_131 {dimension_numbers = #tpu.dot_dimension_numbers<[1], [0], [0], [1], [0, 0, 1, 1], [], []>} : vector<128x128xbf16>, vector<128x128xbf16>, vector<128x128xf32> -> vector<128x128xf32>
    %117 = arith.addf %111, %116 : vector<128x128xf32>
    %c0_132 = arith.constant 0 : index
    %c2_133 = arith.constant 2 : index
    %c0_134 = arith.constant 0 : index
    %c0_135 = arith.constant 0 : index
    %118 = vector.load %arg8[%c0_132, %c2_133, %c0_134, %c0_135] : memref<2x10x10x128xbf16, #tpu.memory_space<vmem>>, vector<2x8x8x128xbf16>
    %119 = vector.shape_cast %118 : vector<2x8x8x128xbf16> to vector<128x128xbf16>
    %c6_136 = arith.constant 6 : index
    %c0_137 = arith.constant 0 : index
    %c0_138 = arith.constant 0 : index
    %120 = vector.load %arg2[%c6_136, %c0_137, %c0_138] : memref<9x128x128xbf16, #tpu.memory_space<vmem>>, vector<1x128x128xbf16>
    %121 = vector.shape_cast %120 : vector<1x128x128xbf16> to vector<128x128xbf16>
    %cst_139 = arith.constant dense<0.000000e+00> : vector<128x128xf32>
    %122 = tpu.matmul %119, %121, %cst_139 {dimension_numbers = #tpu.dot_dimension_numbers<[1], [0], [0], [1], [0, 0, 1, 1], [], []>} : vector<128x128xbf16>, vector<128x128xbf16>, vector<128x128xf32> -> vector<128x128xf32>
    %123 = arith.addf %117, %122 : vector<128x128xf32>
    %c0_140 = arith.constant 0 : index
    %c2_141 = arith.constant 2 : index
    %c1_142 = arith.constant 1 : index
    %c0_143 = arith.constant 0 : index
    %124 = vector.load %arg8[%c0_140, %c2_141, %c1_142, %c0_143] : memref<2x10x10x128xbf16, #tpu.memory_space<vmem>>, vector<2x8x8x128xbf16>
    %125 = vector.shape_cast %124 : vector<2x8x8x128xbf16> to vector<128x128xbf16>
    %c7_144 = arith.constant 7 : index
    %c0_145 = arith.constant 0 : index
    %c0_146 = arith.constant 0 : index
    %126 = vector.load %arg2[%c7_144, %c0_145, %c0_146] : memref<9x128x128xbf16, #tpu.memory_space<vmem>>, vector<1x128x128xbf16>
    %127 = vector.shape_cast %126 : vector<1x128x128xbf16> to vector<128x128xbf16>
    %cst_147 = arith.constant dense<0.000000e+00> : vector<128x128xf32>
    %128 = tpu.matmul %125, %127, %cst_147 {dimension_numbers = #tpu.dot_dimension_numbers<[1], [0], [0], [1], [0, 0, 1, 1], [], []>} : vector<128x128xbf16>, vector<128x128xbf16>, vector<128x128xf32> -> vector<128x128xf32>
    %129 = arith.addf %123, %128 : vector<128x128xf32>
    %c0_148 = arith.constant 0 : index
    %c2_149 = arith.constant 2 : index
    %c2_150 = arith.constant 2 : index
    %c0_151 = arith.constant 0 : index
    %130 = vector.load %arg8[%c0_148, %c2_149, %c2_150, %c0_151] : memref<2x10x10x128xbf16, #tpu.memory_space<vmem>>, vector<2x8x8x128xbf16>
    %131 = vector.shape_cast %130 : vector<2x8x8x128xbf16> to vector<128x128xbf16>
    %c8_152 = arith.constant 8 : index
    %c0_153 = arith.constant 0 : index
    %c0_154 = arith.constant 0 : index
    %132 = vector.load %arg2[%c8_152, %c0_153, %c0_154] : memref<9x128x128xbf16, #tpu.memory_space<vmem>>, vector<1x128x128xbf16>
    %133 = vector.shape_cast %132 : vector<1x128x128xbf16> to vector<128x128xbf16>
    %cst_155 = arith.constant dense<0.000000e+00> : vector<128x128xf32>
    %134 = tpu.matmul %131, %133, %cst_155 {dimension_numbers = #tpu.dot_dimension_numbers<[1], [0], [0], [1], [0, 0, 1, 1], [], []>} : vector<128x128xbf16>, vector<128x128xbf16>, vector<128x128xf32> -> vector<128x128xf32>
    %135 = arith.addf %129, %134 : vector<128x128xf32>
    %cst_156 = arith.constant 1.000000e+00 : f32
    %cst_157 = arith.constant 1.280000e+02 : f32
    %136 = arith.divf %cst_156, %cst_157 : f32
    %cst_158 = arith.constant dense<0.000000e+00> : vector<128xf32>
    %137 = vector.multi_reduction <add>, %135, %cst_158 [0] : vector<128x128xf32> to vector<128xf32>
    %138 = vector.shape_cast %137 : vector<128xf32> to vector<1x128xf32>
    %139 = vector.broadcast %136 : f32 to vector<1x128xf32>
    %140 = arith.mulf %138, %139 : vector<1x128xf32>
    %141 = vector.broadcast %140 : vector<1x128xf32> to vector<128x128xf32>
    %142 = arith.subf %135, %141 : vector<128x128xf32>
    %143 = arith.mulf %142, %142 : vector<128x128xf32>
    %cst_159 = arith.constant dense<0.000000e+00> : vector<128xf32>
    %144 = vector.multi_reduction <add>, %143, %cst_159 [0] : vector<128x128xf32> to vector<128xf32>
    %145 = vector.shape_cast %144 : vector<128xf32> to vector<1x128xf32>
    %146 = vector.broadcast %136 : f32 to vector<1x128xf32>
    %147 = arith.mulf %145, %146 : vector<1x128xf32>
    %c0_160 = arith.constant 0 : index
    %c0_161 = arith.constant 0 : index
    %148 = vector.load %arg5[%c0_160, %c0_161] : memref<1x128xf32, #tpu.memory_space<vmem>>, vector<1x128xf32>
    %cst_162 = arith.constant 9.99999974E-6 : f32
    %149 = vector.broadcast %cst_162 : f32 to vector<1x128xf32>
    %150 = arith.addf %147, %149 : vector<1x128xf32>
    %151 = math.rsqrt %150 : vector<1x128xf32>
    %152 = arith.mulf %148, %151 : vector<1x128xf32>
    %153 = vector.broadcast %152 : vector<1x128xf32> to vector<128x128xf32>
    %154 = arith.mulf %142, %153 : vector<128x128xf32>
    %c0_163 = arith.constant 0 : index
    %c0_164 = arith.constant 0 : index
    %155 = vector.load %arg6[%c0_163, %c0_164] : memref<1x128xf32, #tpu.memory_space<vmem>>, vector<1x128xf32>
    %156 = vector.broadcast %155 : vector<1x128xf32> to vector<128x128xf32>
    %157 = arith.addf %154, %156 : vector<128x128xf32>
    %158 = vector.shape_cast %157 : vector<128x128xf32> to vector<2x8x8x128xf32>
    %c0_165 = arith.constant 0 : index
    %c1_166 = arith.constant 1 : index
    %c1_167 = arith.constant 1 : index
    %c0_168 = arith.constant 0 : index
    %159 = vector.load %arg0[%c0_165, %c1_166, %c1_167, %c0_168] : memref<2x10x10x128xf32, #tpu.memory_space<vmem>>, vector<2x8x8x128xf32>
    %160 = arith.addf %158, %159 : vector<2x8x8x128xf32>
    %cst_169 = arith.constant 0.000000e+00 : f32
    %161 = vector.broadcast %cst_169 : f32 to vector<2x8x8x128xf32>
    %162 = arith.maximumf %160, %161 : vector<2x8x8x128xf32>
    %163 = arith.truncf %162 : vector<2x8x8x128xf32> to vector<2x8x8x128xbf16>
    %c0_170 = arith.constant 0 : index
    %c0_171 = arith.constant 0 : index
    %c0_172 = arith.constant 0 : index
    %c0_173 = arith.constant 0 : index
    %164 = vector.load %arg7[%c0_170, %c0_171, %c0_172, %c0_173] : memref<2x8x8x128xbf16, #tpu.memory_space<vmem>>, vector<2x8x8x128xbf16>
    tpu.vector_store %arg7[%c0_170, %c0_171, %c0_172, %c0_173], %163 {strides = array<i32>} : memref<2x8x8x128xbf16, #tpu.memory_space<vmem>>, vector<2x8x8x128xbf16>,
    return
  }
}

</mosaic_0001>

<bundles_post_ra>
// kernel: tpu_custom_call.1
= control target key start
LH: loop header
LB: loop body
LE: loop exit
PB: predicated region body
PF: predicated region fallthrough
CT: control target
= control target key end

     0   :  { %12 = vsyncpa [#allocation4], 0  ;;  %s10956_s0 = inlined_call_operand.vmem [shape: f32[2,10,10,128], index: 0, kind: input, shape index: {}]   ;;  %s10957_s1 = inlined_call_operand.hbm [shape: bf16[9,128,128], index: 1, kind: input, shape index: {}]   ;;  %s10958_s2 = inlined_call_operand.hbm [shape: bf16[9,128,128], index: 2, kind: input, shape index: {}]   ;;  %s10959_s3 = inlined_call_operand.vmem [shape: f32[1,128], index: 3, kind: input, shape index: {}]   ;;  %s10960_s4 = inlined_call_operand.vmem [shape: f32[1,128], index: 4, kind: input, shape index: {}]   ;;  %s10961_s5 = inlined_call_operand.vmem [shape: f32[1,128], index: 5, kind: input, shape index: {}]   ;;  %s10962_s6 = inlined_call_operand.vmem [shape: f32[1,128], index: 6, kind: input, shape index: {}]   ;;  %s10963_s7 = inlined_call_operand.hbm [shape: bf16[2,8,8,128], index: 7, kind: output, shape index: {}]  }
   0x1   :  { %13 = vsyncpa [#allocation7], 0 }
   0x2   :  { %14 = vsyncpa [#allocation5], 0  ;;  %s8769_s24 = smov [#allocation3]  }
   0x3   :  { %s22_s25 = sshll.u32 %s8769_s24, 4  ;;  %s23_s25 = int_to_ptr.vmem [resolvable:$true] %s22_s25 }
   0x4   :  { %s8711_s26 = scalar_lea.vmem %s23_s25, 9216  ;;  %p8716_p1 = scmp.lt.s32.totalorder %s23_s25, %s23_s25 }
   0x5   :  { %p8712_p0 = scmp.ne.s32.totalorder %s23_s25, %s8711_s26  ;;  %p8717_p2 = scmp.lt.s32.totalorder %s8711_s26, %s8711_s26 }
   0x7   :  { %p8718_p3 = por %p8717_p2, %p8716_p1 }
   0x9   :  { %p8719_p4 = pnand %p8718_p3, %p8712_p0 }
   0xb   :  { %8722 = shalt.err (!%p8719_p4)
}
   0xc   :  { %s8770_s27 = smov 64   ;;  %s8771_s28 = smov 4  }
   0xd   :  { %28 = dma.hbm_to_vmem [thread:$0]  %s10957_s1, 9216, %s23_s25, [#allocation4], %s8770_s27, %s8770_s27, %s8771_s28  }
   0xe   :  { %s8772_s8 = smov [#allocation6]  }
   0xf   :  { %s34_s9 = sshll.u32 %s8772_s8, 4  ;;  %s35_s9 = int_to_ptr.vmem [resolvable:$true] %s34_s9 }
  0x10   :  { %s8731_s10 = scalar_lea.vmem %s35_s9, 9216  ;;  %p8736_p6 = scmp.lt.s32.totalorder %s35_s9, %s35_s9 }
  0x11   :  { %p8732_p5 = scmp.ne.s32.totalorder %s35_s9, %s8731_s10  ;;  %p8737_p7 = scmp.lt.s32.totalorder %s8731_s10, %s8731_s10 }
  0x13   :  { %p8738_p8 = por %p8737_p7, %p8736_p6 }
  0x15   :  { %p8739_p9 = pnand %p8738_p8, %p8732_p5 }
  0x17   :  { %8742 = shalt.err (!%p8739_p9)
}
  0x18   :  { %40 = dma.hbm_to_vmem [thread:$0]  %s10958_s2, 9216, %s35_s9, [#allocation7], %s8770_s27, %s8770_s27, %s8771_s28  }
  0x19   :  { %8763 = dma.done.wait [#allocation4], 9216  }
  0x1a   :  { %8764 = vsyncadd [#allocation4], 4294958080 }
  0x1b   :  { %8765 = dma.done.wait [#allocation7], 9216  }
  0x1c   :  { %8766 = vsyncadd [#allocation7], 4294958080  ;;  %v8506_v0 = vld [vmem:[#allocation3 + $0x78] sm:$0xff]   ;;  %v8508_v2 = vld [vmem:[#allocation3 + $0x70] sm:$0xff]   ;;  %vm344_vm0 = vsmask.f32 3328 }
  0x1d   :  { %v8507_v1 = vld [vmem:[#allocation3 + $0x38] sm:$0xff]   ;;  %7925 = vmatprep.subr.bf16.mxu0 %v8506_v0  ;;  %v8509_v3 = vld [vmem:[#allocation3 + $0x30] sm:$0xff]   ;;  %v8510_v4 = vld [vmem:[#allocation3 + $0x68] sm:$0xff]   ;;  %vm345_vm1 = vsmask.f32 7440  ;;  %vm1006_vm3 = vcmask 1042432  }
  0x1e   :  { %7957 = vmatprep.subr.bf16.mxu1 %v8507_v1  ;;  %7926 = vmatpush3.bf16.msra.mxu0 %v8506_v0  ;;  %v8511_v5 = vld [vmem:[#allocation3 + $0x28] sm:$0xff]   ;;  %v8512_v6 = vld [vmem:[#allocation3 + $0x60] sm:$0xff]   ;;  %v8514_v8 = vld [vmem:[#allocation3 + $0x58] sm:$0xff]   ;;  %vm1007_vm4 = vcmask 1046532   ;;  %vm3710_vm6 = vcmask 1043456   ;;  %vm3715_vm8 = vcmask 1040384  }
  0x1f   :  { %7958 = vmatpush3.bf16.msra.mxu1 %v8507_v1  ;;  %7927 = vmatprep.subr.bf16.mxu0 %v8508_v2  ;;  %v8513_v7 = vld [vmem:[#allocation3 + $0x20] sm:$0xff]   ;;  %v8515_v9 = vld [vmem:[#allocation3 + $0x18] sm:$0xff]   ;;  %v8516_v10 = vld [vmem:[#allocation3 + $0x50] sm:$0xff]   ;;  %vm3711_vm7 = vsmask.f32 7938 }
  0x20   :  { %7959 = vmatprep.subr.bf16.mxu1 %v8509_v3  ;;  %v8517_v11 = vld [vmem:[#allocation3 + $0x10] sm:$0xff]   ;;  %v56_v12 = vld [vmem:[%s10956_s0] sm:$0xff]  ;;  %v57_v13 = vld [vmem:[%s10956_s0 + $0x8] sm:$0x3]  ;;  %vm3716_vm9 = vsmask.f32 256 }
  0x21   :  { %v58_v14 = vld [vmem:[%s10956_s0 + $0x10] sm:$0xff]  ;;  %v59_v15 = vld [vmem:[%s10956_s0 + $0x18] sm:$0x3]  ;;  %v7534_v16 = vpack.c.bf16 %v56_v12, %v56_v12  ;;  %v7535_v17 = vpack.c.bf16 %v57_v13, %v57_v13  ;;  %v60_v19 = vld [vmem:[%s10956_s0 + $0x20] sm:$0xff]  ;;  %v10976_v12 = vmov 0 }
  0x22   :  { %7928 = vmatpush3.bf16.msra.mxu0 %v8508_v2  ;;  %v7536_v18 = vpack.c.bf16 %v58_v14, %v58_v14  ;;  %v61_v20 = vld [vmem:[%s10956_s0 + $0x28] sm:$0x3]  ;;  %v7537_v21 = vpack.c.bf16 %v59_v15, %v59_v15  ;;  %v62_v22 = vld [vmem:[%s10956_s0 + $0x30] sm:$0xff]  ;;  %v63_v23 = vld [vmem:[%s10956_s0 + $0x38] sm:$0x3]  ;;  %v7538_v24 = vpack.c.bf16 %v60_v19, %v60_v19 }
  0x23   :  { %7960 = vmatpush3.bf16.msra.mxu1 %v8509_v3  ;;  %7929 = vmatprep.subr.bf16.mxu0 %v8510_v4  ;;  %v7539_v25 = vpack.c.bf16 %v61_v20, %v61_v20  ;;  %256 = vst [vmem:[#allocation2] sm:$0xf] %v7534_v16  ;;  %257 = vst [vmem:[#allocation2 + $0x4] sm:$0x1] %v7535_v17  ;;  %v7540_v26 = vpack.c.bf16 %v62_v22, %v62_v22  ;;  %v8518_v28 = vld [vmem:[#allocation3 + $0x48] sm:$0xff]   ;;  %v8520_v30 = vld [vmem:[#allocation3 + $0x40] sm:$0xff]  }
  0x24   :  { %7961 = vmatprep.subr.bf16.mxu1 %v8511_v5  ;;  %258 = vst [vmem:[#allocation2 + $0x8] sm:$0xf] %v7536_v18  ;;  %v7541_v27 = vpack.c.bf16 %v63_v23, %v63_v23  ;;  %259 = vst [vmem:[#allocation2 + $0xc] sm:$0x1] %v7537_v21  ;;  %v8519_v29 = vld [vmem:[#allocation3 + $0x8] sm:$0xff]   ;;  %v64_v31 = vld [vmem:[%s10956_s0 + $0x40] sm:$0xff] }
  0x25   :  { %260 = vst [vmem:[#allocation2 + $0x10] sm:$0xf] %v7538_v24  ;;  %261 = vst [vmem:[#allocation2 + $0x14] sm:$0x1] %v7539_v25  ;;  %v8521_v32 = vld [vmem:[#allocation3] sm:$0xff]   ;;  %v66_v34 = vld [vmem:[%s10956_s0 + $0x50] sm:$0xff]  ;;  %v7542_v36 = vpack.c.bf16 %v64_v31, %v64_v31 }
  0x26   :  { %7930 = vmatpush3.bf16.msra.mxu0 %v8510_v4  ;;  %262 = vst [vmem:[#allocation2 + $0x18] sm:$0xf] %v7540_v26  ;;  %263 = vst [vmem:[#allocation2 + $0x1c] sm:$0x1] %v7541_v27  ;;  %v65_v33 = vld [vmem:[%s10956_s0 + $0x48] sm:$0x3]  ;;  %v7544_v38 = vpack.c.bf16 %v66_v34, %v66_v34 }
  0x27   :  { %7962 = vmatpush3.bf16.msra.mxu1 %v8511_v5  ;;  %7931 = vmatprep.subr.bf16.mxu0 %v8512_v6  ;;  %v67_v35 = vld [vmem:[%s10956_s0 + $0x58] sm:$0x3]  ;;  %v7543_v37 = vpack.c.bf16 %v65_v33, %v65_v33  ;;  %v68_v40 = vld [vmem:[%s10956_s0 + $0x60] sm:$0xff]  ;;  %v69_v41 = vld [vmem:[%s10956_s0 + $0x68] sm:$0x3] }
  0x28   :  { %7963 = vmatprep.subr.bf16.mxu1 %v8513_v7  ;;  %v7545_v39 = vpack.c.bf16 %v67_v35, %v67_v35  ;;  %v70_v42 = vld [vmem:[%s10956_s0 + $0x70] sm:$0xff]  ;;  %264 = vst [vmem:[#allocation2 + $0x20] sm:$0xf] %v7542_v36  ;;  %v71_v43 = vld [vmem:[%s10956_s0 + $0x78] sm:$0x3]  ;;  %v7546_v44 = vpack.c.bf16 %v68_v40, %v68_v40  ;;  %v7547_v45 = vpack.c.bf16 %v69_v41, %v69_v41  ;;  %vm8889_vm2 = vmor %vm344_vm0, %vm345_vm1 }
  0x29   :  { %v7548_v46 = vpack.c.bf16 %v70_v42, %v70_v42  ;;  %265 = vst [vmem:[#allocation2 + $0x24] sm:$0x1] %v7543_v37  ;;  %266 = vst [vmem:[#allocation2 + $0x28] sm:$0xf] %v7544_v38  ;;  %v7549_v50 = vpack.c.bf16 %v71_v43, %v71_v43  ;;  %v8880_v60 = vld [vmem:[#allocation3 + $0xb8] sm:$0xff]   ;;  %v10977_v12 = vsel %vm8889_vm2, 4294967295, %v10976_v12 }
  0x2a   :  { %7932 = vmatpush3.bf16.msra.mxu0 %v8512_v6  ;;  %v296_v47 = vld [vmem:[#allocation2] sm:$0xf]  ;;  %v8874_v49 = vld [vmem:[#allocation2 + $0x4] sm:$0x1]  ;;  %267 = vst [vmem:[#allocation2 + $0x2c] sm:$0x1] %v7545_v39  ;;  %vm9041_vm5 = vmor %vm1006_vm3, %vm1007_vm4 }
  0x2b   :  { %7964 = vmatpush3.bf16.msra.mxu1 %v8513_v7  ;;  %7933 = vmatprep.subr.bf16.mxu0 %v8514_v8  ;;  %v297_v48 = vld [vmem:[#allocation2 + $0x8] sm:$0xf]  ;;  %v8876_v51 = vld [vmem:[#allocation2 + $0xc] sm:$0x1]  ;;  %v348_v52 = vshrl.u32 %v296_v47, 16  ;;  %v351_v53 = vshll.u32 %v296_v47, 16  ;;  %vm9892_vm10 = vmand %vm3710_vm6, %vm3711_vm7 }
  0x2c   :  { %7965 = vmatprep.subr.bf16.mxu1 %v8515_v9  ;;  %v357_v54 = vshll.u32 %v8874_v49, 16  ;;  %v362_v55 = vshrl.u32 %v297_v48, 16  ;;  %268 = vst [vmem:[#allocation2 + $0x30] sm:$0xf] %v7546_v44  ;;  %269 = vst [vmem:[#allocation2 + $0x34] sm:$0x1] %v7547_v45  ;;  %v7132_v58 = vcombine.low %v296_v47, %v297_v48 }
  0x2d   :  { %270 = vst [vmem:[#allocation2 + $0x38] sm:$0xf] %v7548_v46  ;;  %v365_v56 = vshll.u32 %v297_v48, 16  ;;  %v371_v57 = vshll.u32 %v8876_v51, 16  ;;  %v298_v59 = vld [vmem:[#allocation2 + $0x10] sm:$0xf]  ;;  %vm9905_vm11 = vmand %vm3715_vm8, %vm3716_vm9 }
  0x2e   :  { %7934 = vmatpush3.bf16.msra.mxu0 %v8514_v8  ;;  %v8525_v61 = vld [vmem:[#allocation3 + $0xf8] sm:$0xff]   ;;  %271 = vst [vmem:[#allocation2 + $0x3c] sm:$0x1] %v7549_v50  ;;  %v350_v62 = vrot.slane %v348_v52, 4  ;;  %v353_v63 = vrot.slane %v351_v53, 5  ;;  %v359_v0 = vrot.slane %v357_v54, 5  ;;  %7973 = vmatprep.mubr.bf16.mxu1 %v7132_v58 }
  0x2f   :  { %7966 = vmatpush3.bf16.msra.mxu1 %v8515_v9  ;;  %7935 = vmatprep.subr.bf16.mxu0 %v8516_v10  ;;  %v364_v1 = vrot.slane %v362_v55, 4  ;;  %v299_v2 = vld [vmem:[#allocation2 + $0x18] sm:$0xf]  ;;  %v367_v3 = vrot.slane %v365_v56, 5  ;;  %v373_v4 = vrot.slane %v371_v57, 5  ;;  %v376_v9 = vshrl.u32 %v298_v59, 16 }
  0x30   :  { %7967 = vmatprep.subr.bf16.mxu1 %v8517_v11  ;;  %v8882_v5 = vld [vmem:[#allocation2 + $0x14] sm:$0x1]  ;;  %v8884_v6 = vld [vmem:[#allocation2 + $0x1c] sm:$0x1]  ;;  %v7133_v7 = vcombine.low %v298_v59, %v299_v2  ;;  %v354_v8 = vor.u32 %v353_v63, %v350_v62  ;;  %10978 = vst [vmem:[#allocation12_spill] sm:$0xff] %v10977_v12  ;;  %v390_v14 = vshrl.u32 %v299_v2, 16 }
  0x31   :  { %v368_v13 = vor.u32 %v367_v3, %v364_v1  ;;  %v393_v15 = vshll.u32 %v299_v2, 16  ;;  %v399_v16 = vshll.u32 %v8884_v6, 16  ;;  %v300_v17 = vld [vmem:[#allocation2 + $0x20] sm:$0xf]  ;;  %v378_v19 = vrot.slane %v376_v9, 4  ;;  %v8527_v21 = vld [vmem:[#allocation3 + $0xf0] sm:$0xff]  }
  0x32   :  { %7936 = vmatpush3.bf16.msra.mxu0 %v8516_v10  ;;  %v379_v10 = vshll.u32 %v298_v59, 16  ;;  %v355_v18 = vrot.slane %v354_v8, 4  ;;  %v301_v22 = vld [vmem:[#allocation2 + $0x28] sm:$0xf]  ;;  %v392_v24 = vrot.slane %v390_v14, 4  ;;  %v404_v34 = vshrl.u32 %v300_v17, 16 }
  0x33   :  { %7968 = vmatpush3.bf16.msra.mxu1 %v8517_v11  ;;  %7937 = vmatprep.subr.bf16.mxu0 %v8518_v28  ;;  %v385_v11 = vshll.u32 %v8882_v5, 16  ;;  %v369_v23 = vrot.slane %v368_v13, 4  ;;  %v395_v25 = vrot.slane %v393_v15, 5  ;;  %v8895_v26 = vld [vmem:[#allocation2 + $0x24] sm:$0x1]  ;;  %v407_v35 = vshll.u32 %v300_v17, 16 }
  0x34   :  { %7969 = vmatprep.subr.bf16.mxu1 %v8519_v29  ;;  %v381_v20 = vrot.slane %v379_v10, 5  ;;  %v360_v27 = vsel %vm8889_vm2, %v355_v18, %v359_v0  ;;  %v8901_v33 = vld [vmem:[#allocation2 + $0x2c] sm:$0x1]  ;;  %v8903_v36 = vld [vmem:[#allocation2 + $0x30] sm:$0xf]  ;;  %v413_v39 = vshll.u32 %v8895_v26, 16  ;;  %v7134_v59 = vcombine.low %v300_v17, %v301_v22 }
  0x35   :  { %v374_v31 = vsel %vm8889_vm2, %v369_v23, %v373_v4  ;;  %v418_v40 = vshrl.u32 %v301_v22, 16  ;;  %v8906_v41 = vld [vmem:[#allocation2 + $0x38] sm:$0xf]  ;;  %v8908_v42 = vld [vmem:[#allocation2 + $0x34] sm:$0x1]  ;;  %v8531_v43 = vld [vmem:[#allocation3 + $0xe8] sm:$0xff]  }
  0x36   :  { %7938 = vmatpush3.bf16.msra.mxu0 %v8518_v28  ;;  %v382_v28 = vor.u32 %v381_v20, %v378_v19  ;;  %v7116_v37 = vcombine.low %v360_v27, %v374_v31  ;;  %v406_v45 = vrot.slane %v404_v34, 4  ;;  %v409_v46 = vrot.slane %v407_v35, 5  ;;  %v8910_v48 = vld [vmem:[#allocation2 + $0x3c] sm:$0x1]  ;;  %v8526_v52 = vld [vmem:[#allocation3 + $0xb0] sm:$0xff]   ;;  %v76_v2 = vld [vmem:[%s10956_s0 + $0xa0] sm:$0xff] }
  0x37   :  { %7970 = vmatpush3.bf16.msra.mxu1 %v8519_v29  ;;  %7939 = vmatprep.subr.bf16.mxu0 %v8520_v30  ;;  %v387_v29 = vrot.slane %v385_v11, 5  ;;  %v421_v47 = vshll.u32 %v301_v22, 16  ;;  %v415_v53 = vrot.slane %v413_v39, 5  ;;  %v420_v54 = vrot.slane %v418_v40, 4  ;;  %v77_v9 = vld [vmem:[%s10956_s0 + $0xa8] sm:$0x3] }
  0x38   :  { %7971 = vmatprep.subr.bf16.mxu1 %v8521_v32  ;;  %v383_v38 = vrot.slane %v382_v28, 4  ;;  %7941 = vmatprep.mubr.bf16.mxu0 %v7116_v37  ;;  %v427_v55 = vshll.u32 %v8901_v33, 16  ;;  %v410_v57 = vor.u32 %v409_v46, %v406_v45  ;;  %v432_v0 = vshrl.u32 %v8903_v36, 16  ;;  %v78_v10 = vld [vmem:[%s10956_s0 + $0xb0] sm:$0xff]  ;;  %v79_v17 = vld [vmem:[%s10956_s0 + $0xb8] sm:$0x3] }
  0x39   :  { %v423_v58 = vrot.slane %v421_v47, 5  ;;  %v435_v1 = vshll.u32 %v8903_v36, 16  ;;  %v446_v8 = vshrl.u32 %v8906_v41, 16  ;;  %v449_v14 = vshll.u32 %v8906_v41, 16  ;;  %v80_v18 = vld [vmem:[%s10956_s0 + $0xc0] sm:$0xff]  ;;  %v8537_v40 = vld [vmem:[#allocation3 + $0xd8] sm:$0xff]  }
  0x3a   :  { %7940 = vmatpush3.bf16.msra.mxu0 %v8520_v30  ;;  %v401_v30 = vrot.slane %v399_v16, 5  ;;  %v388_v50 = vsel %vm8889_vm2, %v383_v38, %v387_v29  ;;  %v429_v63 = vrot.slane %v427_v55, 5  ;;  %v411_v3 = vrot.slane %v410_v57, 4  ;;  %v8932_v16 = vld [vmem:[#allocation3 + $0xa8] sm:$0xff]   ;;  %v83_v29 = vld [vmem:[%s10956_s0 + $0xd8] sm:$0x3] }
  0x3b   :  { %7972 = vmatpush3.bf16.msra.mxu1 %v8521_v32  ;;  %7989 = vmatprep.subr.bf16.mxu0 %v8880_v60  ;;  %v396_v32 = vor.u32 %v395_v25, %v392_v24  ;;  %v424_v4 = vor.u32 %v423_v58, %v420_v54  ;;  %v434_v11 = vrot.slane %v432_v0, 4  ;;  %v437_v13 = vrot.slane %v435_v1, 5  ;;  %v81_v23 = vld [vmem:[%s10956_s0 + $0xc8] sm:$0x3]  ;;  %v82_v24 = vld [vmem:[%s10956_s0 + $0xd0] sm:$0xff]  ;;  %v88_v58 = vld [vmem:[%s10956_s0 + $0x100] sm:$0xff] }
  0x3c   :  { %8021 = vmatprep.subr.bf16.mxu1 %v8525_v61  ;;  %v455_v15 = vshll.u32 %v8910_v48, 16  ;;  %v416_v19 = vsel %vm8889_vm2, %v411_v3, %v415_v53  ;;  %v448_v22 = vrot.slane %v446_v8, 4  ;;  %v451_v27 = vrot.slane %v449_v14, 5  ;;  %v85_v53 = vld [vmem:[%s10956_s0 + $0xe8] sm:$0x3]  ;;  %v86_v54 = vld [vmem:[%s10956_s0 + $0xf0] sm:$0xff] }
  0x3d   :  { %v397_v44 = vrot.slane %v396_v32, 4  ;;  %v425_v20 = vrot.slane %v424_v4, 4  ;;  %v438_v25 = vor.u32 %v437_v13, %v434_v11  ;;  %v7554_v31 = vpack.c.bf16 %v76_v2, %v76_v2  ;;  %v87_v55 = vld [vmem:[%s10956_s0 + $0xf8] sm:$0x3]  ;;  %v90_v0 = vld [vmem:[%s10956_s0 + $0x110] sm:$0xff]  ;;  %v8543_v13 = vld [vmem:[#allocation3 + $0xc8] sm:$0xff]  }
  0x3e   :  { %7974 = vmatmul.mubr.bf16.vlgmr.msra.gmra.mxu1 %v7133_v7  ;;  %v441_v7 = vshll.u32 %v8908_v42, 16  ;;  %v457_v28 = vrot.slane %v455_v15, 5  ;;  %v7555_v32 = vpack.c.bf16 %v77_v9, %v77_v9  ;;  %v7556_v34 = vpack.c.bf16 %v78_v10, %v78_v10  ;;  %v91_v1 = vld [vmem:[%s10956_s0 + $0x118] sm:$0x3] }
  0x3f   :  { %8022 = vmatpush3.bf16.msra.mxu1 %v8525_v61  ;;  %v402_v56 = vsel %vm8889_vm2, %v397_v44, %v401_v30  ;;  %v8533_v61 = vld [vmem:[#allocation3 + $0xe0] sm:$0xff]   ;;  %7977 = vmatprep.mubr.bf16.mxu1 %v7134_v59  ;;  %v430_v30 = vsel %vm8889_vm2, %v425_v20, %v429_v63  ;;  %v439_v37 = vrot.slane %v438_v25, 4  ;;  %v452_v38 = vor.u32 %v451_v27, %v448_v22  ;;  %v89_v63 = vld [vmem:[%s10956_s0 + $0x108] sm:$0x3] }
  0x40   :  { %8023 = vmatprep.subr.bf16.mxu1 %v8527_v21  ;;  %v7117_v62 = vcombine.low %v388_v50, %v402_v56  ;;  %v7118_v35 = vcombine.low %v416_v19, %v430_v30  ;;  %v7557_v39 = vpack.c.bf16 %v79_v17, %v79_v17  ;;  %276 = vst [vmem:[#allocation2 + $0x50] sm:$0xf] %v7554_v31  ;;  %277 = vst [vmem:[#allocation2 + $0x54] sm:$0x1] %v7555_v32  ;;  %v8539_v50 = vld [vmem:[#allocation3 + $0xd0] sm:$0xff]  }
  0x41   :  { %278 = vst [vmem:[#allocation2 + $0x58] sm:$0xf] %v7556_v34  ;;  %v7560_v44 = vpack.c.bf16 %v82_v24, %v82_v24  ;;  %v453_v46 = vrot.slane %v452_v38, 4  ;;  %v7561_v47 = vpack.c.bf16 %v83_v29, %v83_v29  ;;  %v7563_v57 = vpack.c.bf16 %v85_v53, %v85_v53  ;;  %v8538_v19 = vld [vmem:[#allocation3 + $0x90] sm:$0xff]  }
  0x42   :  { %7942 = vmatmul.mubr.bf16.vlgmr.msra.gmra.mxu0 %v7117_v62  ;;  %279 = vst [vmem:[#allocation2 + $0x5c] sm:$0x1] %v7557_v39  ;;  %v7565_v62 = vpack.c.bf16 %v87_v55, %v87_v55  ;;  %v7566_v2 = vpack.c.bf16 %v88_v58, %v88_v58  ;;  %v1011_v3 = vrot.slane %v8874_v49, 5  ;;  %v7567_v8 = vpack.c.bf16 %v89_v63, %v89_v63 }
  0x43   :  { %8024 = vmatpush3.bf16.msra.mxu1 %v8527_v21  ;;  %7990 = vmatpush3.bf16.msra.mxu0 %v8880_v60  ;;  %v443_v21 = vrot.slane %v441_v7, 5  ;;  %v7135_v60 = vcombine.low %v8903_v36, %v8906_v41  ;;  %v7558_v36 = vpack.c.bf16 %v80_v18, %v80_v18  ;;  %v7559_v41 = vpack.c.bf16 %v81_v23, %v81_v23  ;;  %v8536_v7 = vld [vmem:[#allocation3 + $0x98] sm:$0xff]  }
  0x44   :  { %8025 = vmatprep.subr.bf16.mxu1 %v8531_v43  ;;  %7991 = vmatprep.subr.bf16.mxu0 %v8526_v52  ;;  %282 = vst [vmem:[#allocation2 + $0x68] sm:$0xf] %v7560_v44  ;;  %v458_v59 = vsel %vm8889_vm2, %v453_v46, %v457_v28  ;;  %283 = vst [vmem:[#allocation2 + $0x6c] sm:$0x1] %v7561_v47  ;;  %v7568_v9 = vpack.c.bf16 %v90_v0, %v90_v0  ;;  %v1019_v10 = vrot.slane %v8882_v5, 5  ;;  %v8545_v47 = vld [vmem:[#allocation3 + $0xc0] sm:$0xff]  }
  0x45   :  { %7945 = vmatprep.mubr.bf16.mxu0 %v7118_v35  ;;  %v444_v45 = vsel %vm8889_vm2, %v439_v37, %v443_v21  ;;  %280 = vst [vmem:[#allocation2 + $0x60] sm:$0xf] %v7558_v36  ;;  %281 = vst [vmem:[#allocation2 + $0x64] sm:$0x1] %v7559_v41  ;;  %v7569_v11 = vpack.c.bf16 %v91_v1, %v91_v1  ;;  %v1023_v14 = vrot.slane %v8884_v6, 5  ;;  %v1015_v15 = vrot.slane %v8876_v51, 5 }
  0x46   :  { %7978 = vmatmul.mubr.bf16.gmra.mxu1 %v7135_v60  ;;  %v7119_v4 = vcombine.low %v444_v45, %v458_v59  ;;  %285 = vst [vmem:[#allocation2 + $0x74] sm:$0x1] %v7563_v57  ;;  %287 = vst [vmem:[#allocation2 + $0x7c] sm:$0x1] %v7565_v62  ;;  %v1027_v51 = vrot.slane %v8895_v26, 5  ;;  %v8555_v6 = vld [vmem:[#allocation3 + $0x168] sm:$0xff]  }
  0x47   :  { %8026 = vmatpush3.bf16.msra.mxu1 %v8531_v43  ;;  %7992 = vmatpush3.bf16.msra.mxu0 %v8526_v52  ;;  %v8532_v43 = vld [vmem:[#allocation3 + $0xa0] sm:$0xff]   ;;  %288 = vst [vmem:[#allocation2 + $0x80] sm:$0xf] %v7566_v2  ;;  %289 = vst [vmem:[#allocation2 + $0x84] sm:$0x1] %v7567_v8 }
  0x48   :  { %8027 = vmatprep.subr.bf16.mxu1 %v8533_v61  ;;  %7993 = vmatprep.subr.bf16.mxu0 %v8932_v16  ;;  %v84_v52 = vld [vmem:[%s10956_s0 + $0xe0] sm:$0xff]  ;;  %290 = vst [vmem:[#allocation2 + $0x88] sm:$0xf] %v7568_v9  ;;  %v305_v17 = vld [vmem:[#allocation2 + $0x58] sm:$0xf] }
  0x49   :  { %v7562_v56 = vpack.c.bf16 %v84_v52, %v84_v52  ;;  %v8990_v18 = vld [vmem:[#allocation2 + $0x54] sm:$0x1]  ;;  %291 = vst [vmem:[#allocation2 + $0x8c] sm:$0x1] %v7569_v11  ;;  %v8992_v20 = vld [vmem:[#allocation2 + $0x5c] sm:$0x1] }
  0x4a   :  { %7946 = vmatmul.mubr.bf16.gmra.mxu0 %v7119_v4  ;;  %v469_v23 = vshll.u32 %v8990_v18, 16  ;;  %v474_v24 = vshrl.u32 %v305_v17, 16  ;;  %v477_v25 = vshll.u32 %v305_v17, 16  ;;  %v483_v27 = vshll.u32 %v8992_v20, 16  ;;  %v8544_v4 = vld [vmem:[#allocation3 + $0x80] sm:$0xff]  }
  0x4b   :  { %8028 = vmatpush3.bf16.msra.mxu1 %v8533_v61  ;;  %v7564_v61 = vpack.c.bf16 %v86_v54, %v86_v54  ;;  %7994 = vmatpush3.bf16.msra.mxu0 %v8932_v16  ;;  %284 = vst [vmem:[#allocation2 + $0x70] sm:$0xf] %v7562_v56  ;;  %v304_v16 = vld [vmem:[#allocation2 + $0x50] sm:$0xf]  ;;  %v307_v29 = vld [vmem:[#allocation2 + $0x68] sm:$0xf] }
  0x4c   :  { %8029 = vmatprep.subr.bf16.mxu1 %v8537_v40  ;;  %7995 = vmatprep.subr.bf16.mxu0 %v8532_v43  ;;  %v460_v21 = vshrl.u32 %v304_v16, 16  ;;  %v463_v22 = vshll.u32 %v304_v16, 16  ;;  %v7136_v28 = vcombine.low %v304_v16, %v305_v17  ;;  %v306_v60 = vld [vmem:[#allocation2 + $0x60] sm:$0xf]  ;;  %v471_v32 = vrot.slane %v469_v23, 5  ;;  %v8542_v56 = vld [vmem:[#allocation3 + $0x88] sm:$0xff]  }
  0x4d   :  { %286 = vst [vmem:[#allocation2 + $0x78] sm:$0xf] %v7564_v61  ;;  %v476_v34 = vrot.slane %v474_v24, 4  ;;  %v8996_v35 = vld [vmem:[#allocation2 + $0x64] sm:$0x1]  ;;  %v479_v37 = vrot.slane %v477_v25, 5  ;;  %v7137_v2 = vcombine.low %v306_v60, %v307_v29 }
  0x4e   :  { %v462_v30 = vrot.slane %v460_v21, 4  ;;  %v465_v31 = vrot.slane %v463_v22, 5  ;;  %v485_v38 = vrot.slane %v483_v27, 5  ;;  %7981 = vmatprep.mubr.bf16.mxu1 %v7136_v28  ;;  %v8998_v39 = vld [vmem:[#allocation2 + $0x6c] sm:$0x1]  ;;  %v497_v41 = vshll.u32 %v8996_v35, 16 }
  0x4f   :  { %8030 = vmatpush3.bf16.msra.mxu1 %v8537_v40  ;;  %7996 = vmatpush3.bf16.msra.mxu0 %v8532_v43  ;;  %v488_v40 = vshrl.u32 %v306_v60, 16  ;;  %v491_v43 = vshll.u32 %v306_v60, 16  ;;  %v502_v44 = vshrl.u32 %v307_v29, 16  ;;  %v505_v45 = vshll.u32 %v307_v29, 16  ;;  %v9004_v62 = vld [vmem:[#allocation2 + $0x74] sm:$0x1] }
  0x50   :  { %8031 = vmatprep.subr.bf16.mxu1 %v8539_v50  ;;  %7997 = vmatprep.subr.bf16.mxu0 %v8536_v7  ;;  %v466_v36 = vor.u32 %v465_v31, %v462_v30  ;;  %v511_v54 = vshll.u32 %v8998_v39, 16  ;;  %v499_v58 = vrot.slane %v497_v41, 5  ;;  %v9008_v9 = vld [vmem:[#allocation2 + $0x7c] sm:$0x1]  ;;  %v9012_v16 = vld [vmem:[#allocation2 + $0x80] sm:$0xf] }
  0x51   :  { %v490_v52 = vrot.slane %v488_v40, 4  ;;  %v493_v53 = vrot.slane %v491_v43, 5  ;;  %v504_v59 = vrot.slane %v502_v44, 4  ;;  %v507_v61 = vrot.slane %v505_v45, 5  ;;  %7982 = vmatmul.mubr.bf16.gmra.mxu1 %v7137_v2  ;;  %v311_v24 = vld [vmem:[#allocation2 + $0x88] sm:$0xf] }
  0x52   :  { %v9001_v46 = vld [vmem:[#allocation2 + $0x70] sm:$0xf]  ;;  %v467_v57 = vrot.slane %v466_v36, 4  ;;  %v513_v1 = vrot.slane %v511_v54, 5  ;;  %v525_v22 = vshll.u32 %v9004_v62, 16  ;;  %v539_v40 = vshll.u32 %v9008_v9, 16 }
  0x53   :  { %8032 = vmatpush3.bf16.msra.mxu1 %v8539_v50  ;;  %7998 = vmatpush3.bf16.msra.mxu0 %v8536_v7  ;;  %v480_v50 = vor.u32 %v479_v37, %v476_v34  ;;  %v494_v0 = vor.u32 %v493_v53, %v490_v52  ;;  %v508_v8 = vor.u32 %v507_v61, %v504_v59  ;;  %v516_v11 = vshrl.u32 %v9001_v46, 16  ;;  %v9017_v25 = vld [vmem:[#allocation2 + $0x84] sm:$0x1]  ;;  %v9028_v36 = vld [vmem:[#allocation2 + $0x8c] sm:$0x1]  ;;  %v9032_v52 = vld [vmem:[#allocation3 + $0x138] sm:$0xff]  }
  0x54   :  { %8033 = vmatprep.subr.bf16.mxu1 %v8543_v13  ;;  %7999 = vmatprep.subr.bf16.mxu0 %v8538_v19  ;;  %v309_v55 = vld [vmem:[#allocation2 + $0x78] sm:$0xf]  ;;  %v472_v7 = vsel %vm8889_vm2, %v467_v57, %v471_v32  ;;  %v527_v31 = vrot.slane %v525_v22, 5  ;;  %v544_v45 = vshrl.u32 %v9012_v16, 16  ;;  %v541_v54 = vrot.slane %v539_v40, 5  ;;  %v72_v22 = vld [vmem:[%s10956_s0 + $0x80] sm:$0xff] }
  0x55   :  { %v481_v63 = vrot.slane %v480_v50, 4  ;;  %v495_v21 = vrot.slane %v494_v0, 4  ;;  %v530_v23 = vshrl.u32 %v309_v55, 16  ;;  %v509_v28 = vrot.slane %v508_v8, 4  ;;  %v958_v50 = vld [vmem:[#allocation2] sm:$0xe] }
  0x56   :  { %v518_v60 = vrot.slane %v516_v11, 4  ;;  %v533_v34 = vshll.u32 %v309_v55, 16  ;;  %v7138_v43 = vcombine.low %v9001_v46, %v309_v55  ;;  %v553_v57 = vshll.u32 %v9017_v25, 16 }
  0x57   :  { %8034 = vmatpush3.bf16.msra.mxu1 %v8543_v13  ;;  %8000 = vmatpush3.bf16.msra.mxu0 %v8538_v19  ;;  %v519_v13 = vshll.u32 %v9001_v46, 16  ;;  %v486_v17 = vsel %vm8889_vm2, %v481_v63, %v485_v38  ;;  %v9019_v19 = vld [vmem:[#allocation3 + $0x178] sm:$0xff]   ;;  %v500_v30 = vsel %vm8889_vm2, %v495_v21, %v499_v58  ;;  %v532_v32 = vrot.slane %v530_v23, 4  ;;  %v959_v46 = vld [vmem:[#allocation2 + $0x8] sm:$0xe] }
  0x58   :  { %8035 = vmatprep.subr.bf16.mxu1 %v8545_v47  ;;  %8001 = vmatprep.subr.bf16.mxu0 %v8542_v56  ;;  %v7120_v27 = vcombine.low %v472_v7, %v486_v17  ;;  %v514_v37 = vsel %vm8889_vm2, %v509_v28, %v513_v1  ;;  %v535_v44 = vrot.slane %v533_v34, 5  ;;  %v558_v58 = vshrl.u32 %v311_v24, 16  ;;  %v960_v63 = vld [vmem:[#allocation2 + $0x10] sm:$0xe] }
  0x59   :  { %v521_v29 = vrot.slane %v519_v13, 5  ;;  %v7121_v41 = vcombine.low %v500_v30, %v514_v37  ;;  %7985 = vmatprep.mubr.bf16.mxu1 %v7138_v43  ;;  %v561_v61 = vshll.u32 %v311_v24, 16  ;;  %v555_v1 = vrot.slane %v553_v57, 5  ;;  %v8547_v28 = vld [vmem:[#allocation2 + $0x8] ss:$8 sps:$4 sm:$0xff]  }
  0x5a   :  { %7949 = vmatprep.mubr.bf16.mxu0 %v7120_v27  ;;  %v536_v55 = vor.u32 %v535_v44, %v532_v32  ;;  %v560_v2 = vrot.slane %v558_v58, 4  ;;  %v567_v7 = vshll.u32 %v9028_v36, 16  ;;  %v7139_v17 = vcombine.low %v9012_v16, %v311_v24  ;;  %v962_v43 = vld [vmem:[#allocation2 + $0x20] sm:$0xe]  ;;  %v964_v58 = vld [vmem:[#allocation2 + $0x30] sm:$0xe] }
  0x5b   :  { %8036 = vmatpush3.bf16.msra.mxu1 %v8545_v47  ;;  %v522_v38 = vor.u32 %v521_v29, %v518_v60  ;;  %8002 = vmatpush3.bf16.msra.mxu0 %v8542_v56  ;;  %v547_v47 = vshll.u32 %v9012_v16, 16  ;;  %v546_v56 = vrot.slane %v544_v45, 4  ;;  %v563_v13 = vrot.slane %v561_v61, 5  ;;  %v963_v45 = vld [vmem:[#allocation2 + $0x28] sm:$0xe] }
  0x5c   :  { %8085 = vmatprep.subr.bf16.mxu1 %v9019_v19  ;;  %8003 = vmatprep.subr.bf16.mxu0 %v8544_v4  ;;  %v537_v8 = vrot.slane %v536_v55, 4  ;;  %v10979_v21 = vmov 0  ;;  %v7148_v23 = vrot.slane %v958_v50, 9  ;;  %v7149_v27 = vrot.slane %v959_v46, 9  ;;  %v8551_v50 = vld [vmem:[#allocation3 + $0x170] sm:$0xff]  }
  0x5d   :  { %v523_v53 = vrot.slane %v522_v38, 4  ;;  %7950 = vmatmul.mubr.bf16.gmra.mxu0 %v7121_v41  ;;  %v549_v59 = vrot.slane %v547_v47, 5  ;;  %v10980_v21 = vsel %vm9041_vm5, 4294967295, %v10979_v21  ;;  %v564_v24 = vor.u32 %v563_v13, %v560_v2  ;;  %7986 = vmatmul.mubr.bf16.gmra.mxu1 %v7139_v17  ;;  %v965_v46 = vld [vmem:[#allocation2 + $0x38] sm:$0xe] }
  0x5e   :  { %10981 = vst [vmem:[#allocation13_spill] sm:$0xff] %v10980_v21  ;;  %v542_v60 = vsel %vm8889_vm2, %v537_v8, %v541_v54  ;;  %v569_v29 = vrot.slane %v567_v7, 5  ;;  %v1016_v32 = vsel %vm9041_vm5, %v7149_v27, %v1015_v15  ;;  %v7150_v34 = vrot.slane %v960_v63, 9  ;;  %8037 = vmatprep.mubr.bf16.mxu1 %v8547_v28  ;;  %v967_v61 = vld [vmem:[#allocation2 + $0x58] sm:$0xe] }
  0x5f   :  { %v528_v0 = vsel %vm8889_vm2, %v523_v53, %v527_v31  ;;  %8004 = vmatpush3.bf16.msra.mxu0 %v8544_v4  ;;  %v550_v11 = vor.u32 %v549_v59, %v546_v56  ;;  %v961_v4 = vld [vmem:[#allocation2 + $0x18] sm:$0xe]  ;;  %v1012_v31 = vsel %vm9041_vm5, %v7148_v23, %v1011_v3  ;;  %v565_v38 = vrot.slane %v564_v24, 4  ;;  %v966_v59 = vld [vmem:[#allocation2 + $0x50] sm:$0xe] }
  0x60   :  { %8053 = vmatprep.subr.bf16.mxu0 %v9032_v52  ;;  %v7122_v30 = vcombine.low %v528_v0, %v542_v60  ;;  %v7151_v40 = vrot.slane %v961_v4, 9  ;;  %v7550_v41 = vpack.c.bf16 %v72_v22, %v72_v22  ;;  %v7164_v44 = vcombine.low %v1012_v31, %v1016_v32  ;;  %v8548_v3 = vld [vmem:[#allocation2 + $0x18] ss:$8 sps:$4 sm:$0xff]   ;;  %v969_v13 = vld [vmem:[#allocation2 + $0x68] sm:$0xe] }
  0x61   :  { %v551_v16 = vrot.slane %v550_v11, 4  ;;  %v570_v49 = vsel %vm8889_vm2, %v565_v38, %v569_v29  ;;  %v1031_v15 = vrot.slane %v8901_v33, 5  ;;  %v7152_v53 = vrot.slane %v962_v43, 9  ;;  %v8553_v33 = vld [vmem:[#allocation2 + $0x28] ss:$8 sps:$4 sm:$0xff]   ;;  %v8557_v22 = vld [vmem:[#allocation3 + $0x160] sm:$0xff]  }
  0x62   :  { %7953 = vmatprep.mubr.bf16.mxu0 %v7122_v30  ;;  %v7153_v54 = vrot.slane %v963_v45, 9  ;;  %v1035_v57 = vrot.slane %v8908_v42, 5  ;;  %272 = vst [vmem:[#allocation2 + $0x40] sm:$0xf] %v7550_v41  ;;  %v1020_v55 = vsel %vm9041_vm5, %v7150_v34, %v1019_v10  ;;  %v1024_v26 = vsel %vm9041_vm5, %v7151_v40, %v1023_v14  ;;  %v8550_v14 = vld [vmem:[#allocation3 + $0x130] sm:$0xff]   ;;  %v8561_v29 = vld [vmem:[#allocation3 + $0x158] sm:$0xff]  }
  0x63   :  { %v556_v37 = vsel %vm8889_vm2, %v551_v16, %v555_v1  ;;  %v1028_v42 = vsel %vm9041_vm5, %v7152_v53, %v1027_v51  ;;  %v7165_v5 = vcombine.low %v1020_v55, %v1024_v26  ;;  %v1039_v10 = vrot.slane %v8910_v48, 5  ;;  %v968_v2 = vld [vmem:[#allocation2 + $0x60] sm:$0xe]  ;;  %v970_v38 = vld [vmem:[#allocation2 + $0x70] sm:$0xe]  ;;  %v8558_v53 = vld [vmem:[#allocation3 + $0x118] sm:$0xff]  }
  0x64   :  { %v7123_v47 = vcombine.low %v556_v37, %v570_v49  ;;  %v1032_v56 = vsel %vm9041_vm5, %v7153_v54, %v1031_v15  ;;  %v7154_v63 = vrot.slane %v964_v58, 9  ;;  %v7155_v0 = vrot.slane %v965_v46, 9  ;;  %v8559_v48 = vld [vmem:[#allocation2 + $0x58] ss:$8 sps:$4 sm:$0xff]   ;;  %v8560_v37 = vld [vmem:[#allocation2 + $0x68] ss:$8 sps:$4 sm:$0xff]  }
  0x65   :  { %8038 = vmatmul.mubr.bf16.vlgmr.msra.gmra.mxu1 %v8548_v3  ;;  %v1043_v1 = vrot.slane %v8990_v18, 5  ;;  %v7166_v7 = vcombine.low %v1028_v42, %v1032_v56  ;;  %v7156_v8 = vrot.slane %v966_v59, 9  ;;  %v7157_v11 = vrot.slane %v967_v61, 9  ;;  %v8552_v18 = vld [vmem:[#allocation3 + $0x128] sm:$0xff]   ;;  %v8556_v32 = vld [vmem:[#allocation3 + $0x120] sm:$0xff]   ;;  %v8563_v3 = vld [vmem:[#allocation3 + $0x150] sm:$0xff]  }
  0x66   :  { %7954 = vmatmul.mubr.bf16.gmra.mxu0 %v7123_v47  ;;  %8086 = vmatpush3.bf16.msra.mxu1 %v9019_v19  ;;  %v1047_v19 = vrot.slane %v8992_v20, 5  ;;  %v1036_v23 = vsel %vm9041_vm5, %v7154_v63, %v1035_v57  ;;  %v1040_v27 = vsel %vm9041_vm5, %v7155_v0, %v1039_v10  ;;  %v7158_v4 = vrot.slane %v968_v2, 9  ;;  %v971_v40 = vld [vmem:[#allocation2 + $0x78] sm:$0xe]  ;;  %v972_v43 = vld [vmem:[#allocation2 + $0x80] sm:$0xe] }
  0x67   :  { %8005 = vmatprep.mubr.bf16.mxu0 %v7164_v44  ;;  %8041 = vmatprep.mubr.bf16.mxu1 %v8553_v33  ;;  %v1051_v20 = vrot.slane %v8996_v35, 5  ;;  %v1044_v28 = vsel %vm9041_vm5, %v7156_v8, %v1043_v1  ;;  %v7159_v16 = vrot.slane %v969_v13, 9  ;;  %v1055_v24 = vrot.slane %v8998_v39, 5  ;;  %v973_v49 = vld [vmem:[#allocation2 + $0x88] sm:$0xe]  ;;  %v8562_v26 = vld [vmem:[#allocation3 + $0x110] sm:$0xff]  }
  0x68   :  { %8087 = vmatprep.subr.bf16.mxu1 %v8551_v50  ;;  %v1048_v60 = vsel %vm9041_vm5, %v7157_v11, %v1047_v19  ;;  %v1059_v30 = vrot.slane %v9004_v62, 5  ;;  %v1063_v35 = vrot.slane %v9008_v9, 5  ;;  %v7167_v31 = vcombine.low %v1036_v23, %v1040_v27  ;;  %v8565_v45 = vld [vmem:[#allocation2 + $0x78] ss:$8 sps:$4 sm:$0xff]   ;;  %v8567_v58 = vld [vmem:[#allocation3 + $0x148] sm:$0xff]  }
  0x69   :  { %v8554_v17 = vld [vmem:[#allocation2 + $0x38] ss:$8 sps:$4 sm:$0xff]   ;;  %v7168_v34 = vcombine.low %v1044_v28, %v1048_v60  ;;  %v7160_v39 = vrot.slane %v970_v38, 9  ;;  %v7161_v41 = vrot.slane %v971_v40, 9  ;;  %v7162_v44 = vrot.slane %v972_v43, 9  ;;  %v8564_v28 = vld [vmem:[#allocation3 + $0x108] sm:$0xff]  }
  0x6a   :  { %8088 = vmatpush3.bf16.msra.mxu1 %v8551_v50  ;;  %v1071_v62 = vrot.slane %v9028_v36, 5  ;;  %v7163_v9 = vrot.slane %v973_v49, 9  ;;  %v1052_v15 = vsel %vm9041_vm5, %v7158_v4, %v1051_v20  ;;  %v1056_v47 = vsel %vm9041_vm5, %v7159_v16, %v1055_v24  ;;  %v1526_v46 = vld [vmem:[#allocation2 + $0x8] sm:$0xf]  ;;  %v9112_v55 = vld [vmem:[#allocation2 + $0xc] sm:$0x1] }
  0x6b   :  { %8089 = vmatprep.subr.bf16.mxu1 %v8555_v6  ;;  %v1060_v36 = vsel %vm9041_vm5, %v7160_v39, %v1059_v30  ;;  %v1064_v50 = vsel %vm9041_vm5, %v7161_v41, %v1063_v35  ;;  %v7169_v54 = vcombine.low %v1052_v15, %v1056_v47  ;;  %v1528_v56 = vld [vmem:[#allocation2 + $0x10] sm:$0xf]  ;;  %v1559_v10 = vshrl.u32 %v1526_v46, 16  ;;  %v1530_v0 = vld [vmem:[#allocation2 + $0x18] sm:$0xf]  ;;  %v8569_v1 = vld [vmem:[#allocation3 + $0x140] sm:$0xff]  }
  0x6c   :  { %v7170_v33 = vcombine.low %v1060_v36, %v1064_v50  ;;  %v9116_v42 = vsel %vm9041_vm5, %v7163_v9, %v1071_v62  ;;  %v1568_v59 = vshll.u32 %v9112_v55, 16  ;;  %v1573_v61 = vshrl.u32 %v1528_v56, 16  ;;  %v1532_v8 = vld [vmem:[#allocation2 + $0x20] sm:$0xf]  ;;  %v1992_v40 = vld [vmem:[#allocation2 + $0x8] sm:$0xe] }
  0x6d   :  { %8042 = vmatmul.mubr.bf16.gmra.mxu1 %v8554_v17  ;;  %v1561_v19 = vrot.slane %v1559_v10, 4  ;;  %v1587_v4 = vshrl.u32 %v1530_v0, 16  ;;  %v1590_v20 = vshll.u32 %v1530_v0, 16  ;;  %v1601_v24 = vshrl.u32 %v1532_v8, 16  ;;  %v8568_v43 = vld [vmem:[#allocation3 + $0x100] sm:$0xff]  }
  0x6e   :  { %8006 = vmatmul.mubr.bf16.vlgmr.msra.gmra.mxu0 %v7165_v5  ;;  %8090 = vmatpush3.bf16.msra.mxu1 %v8555_v6  ;;  %v9118_v5 = vld [vmem:[#allocation2 + $0x14] sm:$0x1]  ;;  %v1562_v6 = vshll.u32 %v1526_v46, 16  ;;  %v1570_v11 = vrot.slane %v1568_v59, 5  ;;  %v1575_v13 = vrot.slane %v1573_v61, 4  ;;  %v7212_v62 = vrot.slane %v1992_v40, 9 }
  0x6f   :  { %8054 = vmatpush3.bf16.msra.mxu0 %v9032_v52  ;;  %8009 = vmatprep.mubr.bf16.mxu0 %v7166_v7  ;;  %v1067_v52 = vrot.slane %v9017_v25, 5  ;;  %v92_v25 = vld [vmem:[%s10956_s0 + $0x120] sm:$0xff]  ;;  %v1582_v63 = vshll.u32 %v9118_v5, 16  ;;  %v9122_v7 = vld [vmem:[#allocation2 + $0x1c] sm:$0x1]  ;;  %v1589_v35 = vrot.slane %v1587_v4, 4 }
  0x70   :  { %8055 = vmatprep.subr.bf16.mxu0 %v8550_v14  ;;  %8045 = vmatprep.mubr.bf16.mxu1 %v8559_v48  ;;  %v7570_v51 = vpack.c.bf16 %v92_v25, %v92_v25  ;;  %v1564_v2 = vrot.slane %v1562_v6, 5  ;;  %v9124_v48 = vld [vmem:[#allocation2 + $0x24] sm:$0x1]  ;;  %v1596_v16 = vshll.u32 %v9122_v7, 16  ;;  %v1995_v15 = vld [vmem:[#allocation2 + $0x20] sm:$0xe] }
  0x71   :  { %8091 = vmatprep.subr.bf16.mxu1 %v8557_v22  ;;  %v9110_v57 = vsel %vm9041_vm5, %v7162_v44, %v1067_v52  ;;  %v1592_v52 = vrot.slane %v1590_v20, 5  ;;  %v1993_v44 = vld [vmem:[#allocation2 + $0x10] sm:$0xe]  ;;  %v2046_v50 = vrot.slane %v9118_v5, 5  ;;  %v2050_v46 = vrot.slane %v9122_v7, 5 }
  0x72   :  { %8092 = vmatpush3.bf16.msra.mxu1 %v8557_v22  ;;  %292 = vst [vmem:[#allocation2 + $0x90] sm:$0xf] %v7570_v51  ;;  %v1584_v22 = vrot.slane %v1582_v63, 5  ;;  %v7171_v23 = vcombine.low %v9110_v57, %v9116_v42  ;;  %v7213_v51 = vrot.slane %v1993_v44, 9  ;;  %v1534_v59 = vld [vmem:[#allocation2 + $0x28] sm:$0xf] }
  0x73   :  { %8056 = vmatpush3.bf16.msra.mxu0 %v8550_v14  ;;  %8093 = vmatprep.subr.bf16.mxu1 %v8561_v29  ;;  %v1576_v14 = vshll.u32 %v1528_v56, 16  ;;  %v1593_v41 = vor.u32 %v1592_v52, %v1589_v35  ;;  %v2054_v56 = vrot.slane %v9124_v48, 5  ;;  %v9148_v61 = vld [vmem:[#allocation2 + $0x2c] sm:$0x1]  ;;  %v1536_v0 = vld [vmem:[#allocation2 + $0x30] sm:$0xf] }
  0x74   :  { %8057 = vmatprep.subr.bf16.mxu0 %v8552_v18  ;;  %v2047_v42 = vsel %vm9041_vm5, %v7213_v51, %v2046_v50  ;;  %v1538_v4 = vld [vmem:[#allocation2 + $0x38] sm:$0xf]  ;;  %v1540_v52 = vld [vmem:[#allocation2 + $0x40] sm:$0xf]  ;;  %v8574_v44 = vld [vmem:[#allocation3 + $0x1a8] sm:$0xff]  }
  0x75   :  { %8046 = vmatmul.mubr.bf16.gmra.mxu1 %v8560_v37  ;;  %v1578_v17 = vrot.slane %v1576_v14, 5  ;;  %v1603_v37 = vrot.slane %v1601_v24, 4  ;;  %v1594_v36 = vrot.slane %v1593_v41, 4  ;;  %v1643_v24 = vshrl.u32 %v1538_v4, 16 }
  0x76   :  { %8010 = vmatmul.mubr.bf16.gmra.mxu0 %v7167_v31  ;;  %8094 = vmatpush3.bf16.msra.mxu1 %v8561_v29  ;;  %v1604_v29 = vshll.u32 %v1532_v8, 16  ;;  %v1610_v31 = vshll.u32 %v9124_v48, 16  ;;  %v8573_v8 = vld [vmem:[#allocation3 + $0x1f0] sm:$0xff]   ;;  %v1660_v40 = vshll.u32 %v1540_v52, 16 }
  0x77   :  { %8058 = vmatpush3.bf16.msra.mxu0 %v8552_v18  ;;  %8013 = vmatprep.mubr.bf16.mxu0 %v7168_v34  ;;  %v1565_v18 = vor.u32 %v1564_v2, %v1561_v19  ;;  %v1579_v60 = vor.u32 %v1578_v17, %v1575_v13  ;;  %v1598_v34 = vrot.slane %v1596_v16, 5  ;;  %v1615_v19 = vshrl.u32 %v1534_v59, 16  ;;  %v1539_v16 = vld [vmem:[#allocation2 + $0x3c] sm:$0x1] }
  0x78   :  { %8059 = vmatprep.subr.bf16.mxu0 %v8556_v32  ;;  %8049 = vmatprep.mubr.bf16.mxu1 %v8565_v45  ;;  %v1606_v38 = vrot.slane %v1604_v29, 5  ;;  %v1612_v49 = vrot.slane %v1610_v31, 5  ;;  %v2042_v45 = vrot.slane %v9112_v55, 5  ;;  %v1618_v2 = vshll.u32 %v1534_v59, 16  ;;  %v8572_v29 = vld [vmem:[#allocation3 + $0x1b0] sm:$0xff]  }
  0x79   :  { %8095 = vmatprep.subr.bf16.mxu1 %v8563_v3  ;;  %v8566_v27 = vld [vmem:[#allocation2 + $0x88] ss:$8 sps:$4 sm:$0xff]   ;;  %v1566_v30 = vrot.slane %v1565_v18, 4  ;;  %v1599_v55 = vsel %vm8889_vm2, %v1594_v36, %v1598_v34  ;;  %v1629_v13 = vshrl.u32 %v1536_v0, 16  ;;  %v1632_v17 = vshll.u32 %v1536_v0, 16 }
  0x7a   :  { %8096 = vmatpush3.bf16.msra.mxu1 %v8563_v3  ;;  %v1994_v3 = vld [vmem:[#allocation2 + $0x18] sm:$0xe]  ;;  %v1607_v25 = vor.u32 %v1606_v38, %v1603_v37  ;;  %v1617_v48 = vrot.slane %v1615_v19, 4  ;;  %v1646_v31 = vshll.u32 %v1538_v4, 16  ;;  %v1645_v37 = vrot.slane %v1643_v24, 4 }
  0x7b   :  { %8060 = vmatpush3.bf16.msra.mxu0 %v8556_v32  ;;  %8097 = vmatprep.subr.bf16.mxu1 %v8567_v58  ;;  %v1580_v32 = vrot.slane %v1579_v60, 4  ;;  %v1571_v39 = vsel %vm8889_vm2, %v1566_v30, %v1570_v11  ;;  %v1624_v11 = vshll.u32 %v9148_v61, 16  ;;  %v1634_v60 = vrot.slane %v1632_v17, 5  ;;  %v1997_v36 = vld [vmem:[#allocation2 + $0x30] sm:$0xe] }
  0x7c   :  { %8061 = vmatprep.subr.bf16.mxu0 %v8558_v53  ;;  %v1608_v57 = vrot.slane %v1607_v25, 4  ;;  %v1657_v38 = vshrl.u32 %v1540_v52, 16  ;;  %v1648_v41 = vrot.slane %v1646_v31, 5  ;;  %v1662_v25 = vrot.slane %v1660_v40, 5 }
  0x7d   :  { %8050 = vmatmul.mubr.bf16.gmra.mxu1 %v8566_v27  ;;  %v1585_v9 = vsel %vm8889_vm2, %v1580_v32, %v1584_v22  ;;  %v73_v22 = vld [vmem:[%s10956_s0 + $0x88] sm:$0x3]  ;;  %v1626_v20 = vrot.slane %v1624_v11, 5  ;;  %v1652_v32 = vshll.u32 %v1539_v16, 16  ;;  %v1544_v11 = vld [vmem:[#allocation2 + $0x60] sm:$0xf] }
  0x7e   :  { %8014 = vmatmul.mubr.bf16.gmra.mxu0 %v7169_v54  ;;  %8098 = vmatpush3.bf16.msra.mxu1 %v8567_v58  ;;  %v7196_v47 = vcombine.low %v1571_v39, %v1585_v9  ;;  %v8571_v54 = vld [vmem:[#allocation3 + $0x1f8] sm:$0xff]   ;;  %v2043_v58 = vsel %vm9041_vm5, %v7212_v62, %v2042_v45  ;;  %v1613_v5 = vsel %vm8889_vm2, %v1608_v57, %v1612_v49  ;;  %v2058_v62 = vrot.slane %v9148_v61, 5  ;;  %v1996_v45 = vld [vmem:[#allocation2 + $0x28] sm:$0xe]  ;;  %v8577_v57 = vld [vmem:[#allocation3 + $0x1e0] sm:$0xff]  }
  0x7f   :  { %8062 = vmatpush3.bf16.msra.mxu0 %v8558_v53  ;;  %8017 = vmatprep.mubr.bf16.mxu0 %v7170_v33  ;;  %v7214_v53 = vrot.slane %v1994_v3, 9  ;;  %v8570_v33 = vld [vmem:[#allocation3 + $0x1b8] sm:$0xff]   ;;  %v7228_v10 = vcombine.low %v2043_v58, %v2047_v42  ;;  %v7197_v14 = vcombine.low %v1599_v55, %v1613_v5  ;;  %v7551_v18 = vpack.c.bf16 %v73_v22, %v73_v22  ;;  %v1999_v55 = vld [vmem:[#allocation2 + $0x40] sm:$0xe]  ;;  %v9180_v22 = vld [vmem:[#allocation2 + $0x64] sm:$0x1] }
  0x80   :  { %8063 = vmatprep.subr.bf16.mxu0 %v8562_v26  ;;  %8099 = vmatprep.subr.bf16.mxu1 %v8569_v1  ;;  %v9159_v49 = vrot.slane %v1652_v32, 5  ;;  %v1659_v9 = vrot.slane %v1657_v38, 4  ;;  %v7216_v50 = vrot.slane %v1996_v45, 9  ;;  %v1685_v4 = vshrl.u32 %v1544_v11, 16  ;;  %v8578_v38 = vld [vmem:[#allocation3 + $0x198] sm:$0xff]   ;;  %v8581_v45 = vld [vmem:[#allocation3 + $0x1d0] sm:$0xff]  }
  0x81   :  { %v2051_v6 = vsel %vm9041_vm5, %v7214_v53, %v2050_v46  ;;  %8101 = vmatprep.mubr.bf16.mxu1 %v7228_v10  ;;  %273 = vst [vmem:[#allocation2 + $0x44] sm:$0x1] %v7551_v18  ;;  %v1998_v53 = vld [vmem:[#allocation2 + $0x38] sm:$0xe]  ;;  %v7219_v10 = vrot.slane %v1999_v55, 9 }
  0x82   :  { %8100 = vmatpush3.bf16.msra.mxu1 %v8569_v1  ;;  %v9152_v1 = vld [vmem:[#allocation2 + $0x34] sm:$0x1]  ;;  %v1663_v46 = vor.u32 %v1662_v25, %v1659_v9  ;;  %v2059_v5 = vsel %vm9041_vm5, %v7216_v50, %v2058_v62  ;;  %v1687_v32 = vrot.slane %v1685_v4, 4 }
  0x83   :  { %8064 = vmatpush3.bf16.msra.mxu0 %v8562_v26  ;;  %v7215_v26 = vrot.slane %v1995_v15, 9  ;;  %8149 = vmatprep.subr.bf16.mxu1 %v8571_v54  ;;  %v1638_v27 = vshll.u32 %v9152_v1, 16  ;;  %v2062_v51 = vrot.slane %v9152_v1, 5  ;;  %v8580_v25 = vld [vmem:[#allocation3 + $0x190] sm:$0xff]  }
  0x84   :  { %8065 = vmatprep.subr.bf16.mxu0 %v8564_v28  ;;  %v1664_v59 = vrot.slane %v1663_v46, 4  ;;  %v8583_v46 = vld [vmem:[#allocation3 + $0x1c8] sm:$0xff]  }
  0x85   :  { %v2055_v63 = vsel %vm9041_vm5, %v7215_v26, %v2054_v56  ;;  %v1640_v35 = vrot.slane %v1638_v27, 5  ;;  %v7217_v26 = vrot.slane %v1997_v36, 9 }
  0x86   :  { %8018 = vmatmul.mubr.bf16.gmra.mxu0 %v7171_v23  ;;  %v7229_v7 = vcombine.low %v2051_v6, %v2055_v63  ;;  %v1620_v23 = vrot.slane %v1618_v2, 5 }
  0x87   :  { %8066 = vmatpush3.bf16.msra.mxu0 %v8564_v28  ;;  %8069 = vmatprep.mubr.bf16.mxu0 %v7196_v47  ;;  %v1631_v28 = vrot.slane %v1629_v13, 4  ;;  %v1649_v47 = vor.u32 %v1648_v41, %v1645_v37  ;;  %v2063_v61 = vsel %vm9041_vm5, %v7217_v26, %v2062_v51  ;;  %v1548_v37 = vld [vmem:[#allocation2 + $0x70] sm:$0xf] }
  0x88   :  { %8067 = vmatprep.subr.bf16.mxu0 %v8568_v43  ;;  %8102 = vmatmul.mubr.bf16.vlgmr.msra.gmra.mxu1 %v7229_v7  ;;  %v1621_v30 = vor.u32 %v1620_v23, %v1617_v48  ;;  %v1541_v6 = vld [vmem:[#allocation2 + $0x44] sm:$0x1]  ;;  %v7230_v0 = vcombine.low %v2059_v5, %v2063_v61  ;;  %v1542_v7 = vld [vmem:[#allocation2 + $0x58] sm:$0xf]  ;;  %v1716_v9 = vshll.u32 %v1548_v37, 16 }
  0x89   :  { %8150 = vmatpush3.bf16.msra.mxu1 %v8571_v54  ;;  %v1635_v34 = vor.u32 %v1634_v60, %v1631_v28  ;;  %v2066_v54 = vrot.slane %v1539_v16, 5  ;;  %v1650_v56 = vrot.slane %v1649_v47, 4  ;;  %v1666_v63 = vshll.u32 %v1541_v6, 16  ;;  %v1546_v28 = vld [vmem:[#allocation2 + $0x68] sm:$0xf]  ;;  %v8579_v60 = vld [vmem:[#allocation3 + $0x1d8] sm:$0xff]  }
  0x8a   :  { %8151 = vmatprep.subr.bf16.mxu1 %v8573_v8  ;;  %v1622_v39 = vrot.slane %v1621_v30, 4  ;;  %v2070_v19 = vrot.slane %v1541_v6, 5  ;;  %8105 = vmatprep.mubr.bf16.mxu1 %v7230_v0  ;;  %v1671_v48 = vshrl.u32 %v1542_v7, 16  ;;  %v1674_v23 = vshll.u32 %v1542_v7, 16  ;;  %v2002_v5 = vld [vmem:[#allocation2 + $0x68] sm:$0xe] }
  0x8b   :  { %8068 = vmatpush3.bf16.msra.mxu0 %v8568_v43  ;;  %v8575_v43 = vld [vmem:[#allocation3 + $0x1e8] sm:$0xff]   ;;  %v1636_v3 = vrot.slane %v1635_v34, 4  ;;  %v1655_v2 = vsel %vm8889_vm2, %v1650_v56, %v9159_v49  ;;  %v1668_v13 = vrot.slane %v1666_v63, 5  ;;  %v1694_v30 = vshll.u32 %v9180_v22, 16 }
  0x8c   :  { %8117 = vmatprep.subr.bf16.mxu0 %v8570_v33  ;;  %v1627_v15 = vsel %vm8889_vm2, %v1622_v39, %v1626_v20  ;;  %v2071_v17 = vsel %vm9041_vm5, %v7219_v10, %v2070_v19  ;;  %v1688_v20 = vshll.u32 %v1544_v11, 16  ;;  %v1673_v24 = vrot.slane %v1671_v48, 4  ;;  %v1549_v39 = vld [vmem:[#allocation2 + $0x74] sm:$0x1] }
  0x8d   :  { %8152 = vmatpush3.bf16.msra.mxu1 %v8573_v8  ;;  %v1641_v58 = vsel %vm8889_vm2, %v1636_v3, %v1640_v35  ;;  %v9176_v8 = vld [vmem:[#allocation2 + $0x5c] sm:$0x1]  ;;  %v1669_v16 = vsel %vm8889_vm2, %v1664_v59, %v1668_v13  ;;  %v9186_v35 = vld [vmem:[#allocation2 + $0x6c] sm:$0x1]  ;;  %v1699_v41 = vshrl.u32 %v1546_v28, 16  ;;  %v1702_v49 = vshll.u32 %v1546_v28, 16 }
  0x8e   :  { %8070 = vmatmul.mubr.bf16.vlgmr.msra.gmra.mxu0 %v7197_v14  ;;  %8153 = vmatprep.subr.bf16.mxu1 %v8575_v43  ;;  %v7198_v42 = vcombine.low %v1627_v15, %v1641_v58  ;;  %v8576_v14 = vld [vmem:[#allocation3 + $0x1a0] sm:$0xff]   ;;  %v1680_v18 = vshll.u32 %v9176_v8, 16  ;;  %v7199_v52 = vcombine.low %v1655_v2, %v1669_v16  ;;  %v1690_v34 = vrot.slane %v1688_v20, 5  ;;  %v2000_v58 = vld [vmem:[#allocation2 + $0x58] sm:$0xe] }
  0x8f   :  { %8118 = vmatpush3.bf16.msra.mxu0 %v8570_v33  ;;  %v7218_v33 = vrot.slane %v1998_v53, 9  ;;  %v1708_v62 = vshll.u32 %v9186_v35, 16  ;;  %v1713_v3 = vshrl.u32 %v1548_v37, 16  ;;  %v1701_v15 = vrot.slane %v1699_v41, 4  ;;  %v1550_v20 = vld [vmem:[#allocation2 + $0x78] sm:$0xf] }
  0x90   :  { %8119 = vmatprep.subr.bf16.mxu0 %v8572_v29  ;;  %8073 = vmatprep.mubr.bf16.mxu0 %v7198_v42  ;;  %v1682_v31 = vrot.slane %v1680_v18, 5  ;;  %v1704_v47 = vrot.slane %v1702_v49, 5  ;;  %v1722_v36 = vshll.u32 %v1549_v39, 16  ;;  %v2001_v42 = vld [vmem:[#allocation2 + $0x60] sm:$0xe]  ;;  %v7220_v56 = vrot.slane %v2000_v58, 9 }
  0x91   :  { %v2067_v1 = vsel %vm9041_vm5, %v7218_v33, %v2066_v54  ;;  %8154 = vmatpush3.bf16.msra.mxu1 %v8575_v43  ;;  %v1696_v43 = vrot.slane %v1694_v30, 5  ;;  %v1710_v53 = vrot.slane %v1708_v62, 5  ;;  %v1715_v54 = vrot.slane %v1713_v3, 4  ;;  %v9206_v28 = vld [vmem:[#allocation2 + $0x7c] sm:$0x1] }
  0x92   :  { %8155 = vmatprep.subr.bf16.mxu1 %v8577_v57  ;;  %v7231_v27 = vcombine.low %v2067_v1, %v2071_v17  ;;  %v1705_v55 = vor.u32 %v1704_v47, %v1701_v15  ;;  %v1724_v33 = vrot.slane %v1722_v36, 5  ;;  %v2074_v59 = vrot.slane %v9176_v8, 5  ;;  %v8582_v17 = vld [vmem:[#allocation3 + $0x188] sm:$0xff]   ;;  %v1556_v15 = vld [vmem:[#allocation2 + $0x90] sm:$0xf]  ;;  %v9217_v58 = vld [vmem:[#allocation3 + $0x238] sm:$0xff]  }
  0x93   :  { %8120 = vmatpush3.bf16.msra.mxu0 %v8572_v29  ;;  %v1676_v29 = vrot.slane %v1674_v23, 5  ;;  %v7221_v61 = vrot.slane %v2001_v42, 9  ;;  %v2078_v1 = vrot.slane %v9180_v22, 5  ;;  %v7222_v19 = vrot.slane %v2002_v5, 9  ;;  %v8585_v22 = vld [vmem:[#allocation3 + $0x1c0] sm:$0xff]   ;;  %v74_v42 = vld [vmem:[%s10956_s0 + $0x90] sm:$0xff] }
  0x94   :  { %8121 = vmatprep.subr.bf16.mxu0 %v8574_v44  ;;  %8106 = vmatmul.mubr.bf16.gmra.mxu1 %v7231_v27  ;;  %v1706_v0 = vrot.slane %v1705_v55, 4  ;;  %v2075_v7 = vsel %vm9041_vm5, %v7220_v56, %v2074_v59  ;;  %v2082_v11 = vrot.slane %v9186_v35, 5  ;;  %v2086_v23 = vrot.slane %v1549_v39, 5  ;;  %v93_v37 = vld [vmem:[%s10956_s0 + $0x128] sm:$0x3] }
  0x95   :  { %v1677_v40 = vor.u32 %v1676_v29, %v1673_v24  ;;  %8156 = vmatpush3.bf16.msra.mxu1 %v8577_v57  ;;  %v1718_v57 = vrot.slane %v1716_v9, 5  ;;  %v2079_v48 = vsel %vm9041_vm5, %v7221_v61, %v2078_v1  ;;  %v1552_v24 = vld [vmem:[#allocation2 + $0x80] sm:$0xf]  ;;  %v9210_v29 = vld [vmem:[#allocation2 + $0x84] sm:$0x1]  ;;  %v1727_v30 = vshrl.u32 %v1550_v20, 16 }
  0x96   :  { %8074 = vmatmul.mubr.bf16.gmra.mxu0 %v7199_v52  ;;  %8157 = vmatprep.subr.bf16.mxu1 %v8579_v60  ;;  %v1711_v8 = vsel %vm8889_vm2, %v1706_v0, %v1710_v53  ;;  %v7232_v18 = vcombine.low %v2075_v7, %v2079_v48  ;;  %v2083_v4 = vsel %vm9041_vm5, %v7222_v19, %v2082_v11  ;;  %v1730_v35 = vshll.u32 %v1550_v20, 16  ;;  %v1554_v49 = vld [vmem:[#allocation2 + $0x88] sm:$0xf]  ;;  %v1555_v9 = vld [vmem:[#allocation2 + $0x8c] sm:$0x1] }
  0x97   :  { %8122 = vmatpush3.bf16.msra.mxu0 %v8574_v44  ;;  %v1691_v44 = vor.u32 %v1690_v34, %v1687_v32  ;;  %v1678_v51 = vrot.slane %v1677_v40, 4  ;;  %v1719_v6 = vor.u32 %v1718_v57, %v1715_v54  ;;  %v1741_v32 = vshrl.u32 %v1552_v24, 16  ;;  %v2006_v1 = vld [vmem:[#allocation2 + $0x88] sm:$0xe] }
  0x98   :  { %8123 = vmatprep.subr.bf16.mxu0 %v8576_v14  ;;  %8109 = vmatprep.mubr.bf16.mxu1 %v7232_v18  ;;  %v1744_v34 = vshll.u32 %v1552_v24, 16  ;;  %v1729_v40 = vrot.slane %v1727_v30, 4  ;;  %v1750_v39 = vshll.u32 %v9210_v29, 16  ;;  %v7571_v41 = vpack.c.bf16 %v93_v37, %v93_v37 }
  0x99   :  { %v1692_v50 = vrot.slane %v1691_v44, 4  ;;  %v1683_v26 = vsel %vm8889_vm2, %v1678_v51, %v1682_v31  ;;  %8158 = vmatpush3.bf16.msra.mxu1 %v8579_v60  ;;  %v1720_v2 = vrot.slane %v1719_v6, 4  ;;  %v1736_v31 = vshll.u32 %v9206_v28, 16  ;;  %v2004_v6 = vld [vmem:[#allocation2 + $0x78] sm:$0xe] }
  0x9a   :  { %8159 = vmatprep.subr.bf16.mxu1 %v8581_v45  ;;  %v1743_v62 = vrot.slane %v1741_v32, 4  ;;  %v1746_v3 = vrot.slane %v1744_v34, 5  ;;  %v1752_v51 = vrot.slane %v1750_v39, 5  ;;  %293 = vst [vmem:[#allocation2 + $0x94] sm:$0x1] %v7571_v41  ;;  %v1758_v47 = vshll.u32 %v1554_v49, 16 }
  0x9b   :  { %8124 = vmatpush3.bf16.msra.mxu0 %v8576_v14  ;;  %v1697_v10 = vsel %vm8889_vm2, %v1692_v50, %v1696_v43  ;;  %v2003_v14 = vld [vmem:[#allocation2 + $0x70] sm:$0xe]  ;;  %v1725_v27 = vsel %vm8889_vm2, %v1720_v2, %v1724_v33  ;;  %v1732_v43 = vrot.slane %v1730_v35, 5  ;;  %v1738_v44 = vrot.slane %v1736_v31, 5  ;;  %v9246_v41 = vld [vmem:[#allocation2 + $0x1c] sm:$0x1] }
  0x9c   :  { %8125 = vmatprep.subr.bf16.mxu0 %v8578_v38  ;;  %v7200_v63 = vcombine.low %v1683_v26, %v1697_v10  ;;  %v7223_v13 = vrot.slane %v2003_v14, 9  ;;  %v7201_v60 = vcombine.low %v1711_v8, %v1725_v27  ;;  %v1764_v36 = vshll.u32 %v1555_v9, 16  ;;  %v8586_v32 = vld [vmem:[#allocation2 + $0x10] ss:$8 sps:$4 sm:$0xff]  }
  0x9d   :  { %8160 = vmatpush3.bf16.msra.mxu1 %v8581_v45  ;;  %v1733_v45 = vor.u32 %v1732_v43, %v1729_v40  ;;  %v1747_v50 = vor.u32 %v1746_v3, %v1743_v62  ;;  %v1769_v54 = vshrl.u32 %v1556_v15, 16  ;;  %v1772_v57 = vshll.u32 %v1556_v15, 16  ;;  %v9244_v40 = vld [vmem:[#allocation2 + $0x14] sm:$0x1]  ;;  %v2559_v43 = vld [vmem:[#allocation2 + $0x18] sm:$0xf] }
  0x9e   :  { %8077 = vmatprep.mubr.bf16.mxu0 %v7200_v63  ;;  %8161 = vmatprep.subr.bf16.mxu1 %v8583_v46  ;;  %v2087_v16 = vsel %vm9041_vm5, %v7223_v13, %v2086_v23  ;;  %v1760_v26 = vrot.slane %v1758_v47, 5  ;;  %v1766_v55 = vrot.slane %v1764_v36, 5  ;;  %v2090_v33 = vrot.slane %v9206_v28, 5  ;;  %v2005_v63 = vld [vmem:[#allocation2 + $0x80] sm:$0xe] }
  0x9f   :  { %8126 = vmatpush3.bf16.msra.mxu0 %v8578_v38  ;;  %v7233_v52 = vcombine.low %v2083_v4, %v2087_v16  ;;  %v8584_v38 = vld [vmem:[#allocation3 + $0x180] sm:$0xff]   ;;  %v1748_v56 = vrot.slane %v1747_v50, 4  ;;  %v1771_v5 = vrot.slane %v1769_v54, 4  ;;  %v1774_v10 = vrot.slane %v1772_v57, 5  ;;  %v2007_v13 = vld [vmem:[#allocation2 + $0x90] sm:$0xe] }
  0xa0   :  { %8127 = vmatprep.subr.bf16.mxu0 %v8580_v25  ;;  %8078 = vmatmul.mubr.bf16.gmra.mxu0 %v7201_v60  ;;  %v2094_v59 = vrot.slane %v9210_v29, 5  ;;  %v7224_v0 = vrot.slane %v2004_v6, 9  ;;  %v2098_v19 = vrot.slane %v1555_v9, 5  ;;  %v7225_v11 = vrot.slane %v2005_v63, 9  ;;  %v9250_v36 = vld [vmem:[#allocation2 + $0x24] sm:$0x1] }
  0xa1   :  { %8162 = vmatpush3.bf16.msra.mxu1 %v8583_v46  ;;  %v1734_v46 = vrot.slane %v1733_v45, 4  ;;  %v1753_v2 = vsel %vm8889_vm2, %v1748_v56, %v1752_v51  ;;  %v1775_v7 = vor.u32 %v1774_v10, %v1771_v5  ;;  %v1557_v27 = vld [vmem:[#allocation2 + $0x94] sm:$0x1]  ;;  %v7552_v20 = vpack.c.bf16 %v74_v42, %v74_v42  ;;  %v2561_v45 = vld [vmem:[#allocation2 + $0x20] sm:$0xf] }
  0xa2   :  { %8110 = vmatmul.mubr.bf16.gmra.mxu1 %v7233_v52  ;;  %8163 = vmatprep.subr.bf16.mxu1 %v8585_v22  ;;  %v2091_v23 = vsel %vm9041_vm5, %v7224_v0, %v2090_v33  ;;  %v2095_v4 = vsel %vm9041_vm5, %v7225_v11, %v2094_v59  ;;  %v1778_v28 = vshll.u32 %v1557_v27, 16  ;;  %v2102_v24 = vrot.slane %v1557_v27, 5  ;;  %v94_v52 = vld [vmem:[%s10956_s0 + $0x130] sm:$0xff]  ;;  %v9252_v42 = vld [vmem:[#allocation2 + $0x2c] sm:$0x1] }
  0xa3   :  { %8128 = vmatpush3.bf16.msra.mxu0 %v8580_v25  ;;  %v1755_v25 = vshrl.u32 %v1554_v49, 16  ;;  %v1739_v61 = vsel %vm8889_vm2, %v1734_v46, %v1738_v44  ;;  %v1776_v18 = vrot.slane %v1775_v7, 4  ;;  %v7234_v60 = vcombine.low %v2091_v23, %v2095_v4  ;;  %274 = vst [vmem:[#allocation2 + $0x48] sm:$0xf] %v7552_v20  ;;  %v2563_v46 = vld [vmem:[#allocation2 + $0x28] sm:$0xf] }
  0xa4   :  { %8129 = vmatprep.subr.bf16.mxu0 %v8582_v17  ;;  %v7202_v8 = vcombine.low %v1739_v61, %v1753_v2  ;;  %v1780_v30 = vrot.slane %v1778_v28, 5  ;;  %v7572_v34 = vpack.c.bf16 %v94_v52, %v94_v52  ;;  %v2599_v62 = vshll.u32 %v9244_v40, 16  ;;  %v8589_v11 = vld [vmem:[#allocation3 + $0x230] sm:$0xff]   ;;  %v8592_v4 = vld [vmem:[#allocation3 + $0x228] sm:$0xff]  }
  0xa5   :  { %v1757_v53 = vrot.slane %v1755_v25, 4  ;;  %8164 = vmatpush3.bf16.msra.mxu1 %v8585_v22  ;;  %v7227_v22 = vrot.slane %v2007_v13, 9  ;;  %8113 = vmatprep.mubr.bf16.mxu1 %v7234_v60  ;;  %v2604_v3 = vshrl.u32 %v2559_v43, 16  ;;  %v2607_v9 = vshll.u32 %v2559_v43, 16  ;;  %v2565_v20 = vld [vmem:[#allocation2 + $0x30] sm:$0xf] }
  0xa6   :  { %8081 = vmatprep.mubr.bf16.mxu0 %v7202_v8  ;;  %v1781_v37 = vsel %vm8889_vm2, %v1776_v18, %v1780_v30  ;;  %294 = vst [vmem:[#allocation2 + $0x98] sm:$0xf] %v7572_v34  ;;  %v2613_v25 = vshll.u32 %v9246_v41, 16  ;;  %v2601_v47 = vrot.slane %v2599_v62, 5  ;;  %v2618_v50 = vshrl.u32 %v2561_v45, 16 }
  0xa7   :  { %8130 = vmatpush3.bf16.msra.mxu0 %v8582_v17  ;;  %v1761_v14 = vor.u32 %v1760_v26, %v1757_v53  ;;  %v7226_v17 = vrot.slane %v2006_v1, 9  ;;  %v2103_v35 = vsel %vm9041_vm5, %v7227_v22, %v2102_v24  ;;  %v2606_v53 = vrot.slane %v2604_v3, 4  ;;  %v8590_v8 = vld [vmem:[#allocation2 + $0x30] ss:$8 sps:$4 sm:$0xff]  }
  0xa8   :  { %8131 = vmatprep.subr.bf16.mxu0 %v8584_v38  ;;  %v2609_v54 = vrot.slane %v2607_v9, 5  ;;  %v2615_v57 = vrot.slane %v2613_v25, 5  ;;  %v2621_v26 = vshll.u32 %v2561_v45, 16  ;;  %v2620_v56 = vrot.slane %v2618_v50, 4  ;;  %v2567_v24 = vld [vmem:[#allocation2 + $0x38] sm:$0xf] }
  0xa9   :  { %v1762_v48 = vrot.slane %v1761_v14, 4  ;;  %v2099_v16 = vsel %vm9041_vm5, %v7226_v17, %v2098_v19  ;;  %v2627_v5 = vshll.u32 %v9250_v36, 16  ;;  %v2632_v10 = vshrl.u32 %v2563_v46, 16  ;;  %v75_v43 = vld [vmem:[%s10956_s0 + $0x98] sm:$0x3] }
  0xaa   :  { %v7235_v31 = vcombine.low %v2099_v16, %v2103_v35  ;;  %v2610_v6 = vor.u32 %v2609_v54, %v2606_v53  ;;  %v2623_v59 = vrot.slane %v2621_v26, 5  ;;  %v2635_v61 = vshll.u32 %v2563_v46, 16  ;;  %v9264_v16 = vld [vmem:[#allocation2 + $0x34] sm:$0x1]  ;;  %v8591_v30 = vld [vmem:[#allocation2 + $0x40] ss:$8 sps:$4 sm:$0xff]  }
  0xab   :  { %8132 = vmatpush3.bf16.msra.mxu0 %v8584_v38  ;;  %v1767_v29 = vsel %vm8889_vm2, %v1762_v48, %v1766_v55  ;;  %v2557_v38 = vld [vmem:[#allocation2 + $0x10] sm:$0xf]  ;;  %v8587_v55 = vld [vmem:[#allocation2 + $0x20] ss:$8 sps:$4 sm:$0xff]   ;;  %v2641_v14 = vshll.u32 %v9252_v42, 16  ;;  %v2629_v0 = vrot.slane %v2627_v5, 5 }
  0xac   :  { %8181 = vmatprep.subr.bf16.mxu0 %v9217_v58  ;;  %v7203_v39 = vcombine.low %v1767_v29, %v1781_v37  ;;  %8114 = vmatmul.mubr.bf16.gmra.mxu1 %v7235_v31  ;;  %v2590_v49 = vshrl.u32 %v2557_v38, 16  ;;  %v2593_v44 = vshll.u32 %v2557_v38, 16  ;;  %v2634_v1 = vrot.slane %v2632_v10, 4  ;;  %v9266_v35 = vld [vmem:[#allocation2 + $0x3c] sm:$0x1]  ;;  %v8593_v46 = vld [vmem:[#allocation3 + $0x220] sm:$0xff]  }
  0xad   :  { %v2611_v19 = vrot.slane %v2610_v6, 4  ;;  %v2624_v2 = vor.u32 %v2623_v59, %v2620_v56  ;;  %v2637_v7 = vrot.slane %v2635_v61, 5  ;;  %v3073_v13 = vrot.slane %v9244_v40, 5  ;;  %v9275_v9 = vld [vmem:[#allocation2 + $0x44] sm:$0x1]  ;;  %v8596_v59 = vld [vmem:[#allocation3 + $0x218] sm:$0xff]  }
  0xae   :  { %8082 = vmatmul.mubr.bf16.gmra.mxu0 %v7203_v39  ;;  %v2592_v51 = vrot.slane %v2590_v49, 4  ;;  %v2595_v15 = vrot.slane %v2593_v44, 5  ;;  %v2643_v27 = vrot.slane %v2641_v14, 5  ;;  %v2646_v29 = vshrl.u32 %v2565_v20, 16  ;;  %v2569_v39 = vld [vmem:[#allocation2 + $0x40] sm:$0xf] }
  0xaf   :  { %8133 = vmatprep.mubr.bf16.mxu0 %v8586_v32  ;;  %v2616_v48 = vsel %vm8889_vm2, %v2611_v19, %v2615_v57  ;;  %v2625_v23 = vrot.slane %v2624_v2, 4  ;;  %v2638_v22 = vor.u32 %v2637_v7, %v2634_v1  ;;  %v2649_v52 = vshll.u32 %v2565_v20, 16  ;;  %v8595_v19 = vld [vmem:[#allocation2 + $0x70] ss:$8 sps:$4 sm:$0xff]  }
  0xb0   :  { %v2596_v33 = vor.u32 %v2595_v15, %v2592_v51  ;;  %v2655_v31 = vshll.u32 %v9264_v16, 16  ;;  %v2660_v32 = vshrl.u32 %v2567_v24, 16  ;;  %v2663_v34 = vshll.u32 %v2567_v24, 16  ;;  %v2571_v15 = vld [vmem:[#allocation2 + $0x48] sm:$0xf] }
  0xb1   :  { %v2630_v28 = vsel %vm8889_vm2, %v2625_v23, %v2629_v0  ;;  %v2639_v60 = vrot.slane %v2638_v22, 4  ;;  %v2648_v37 = vrot.slane %v2646_v29, 4  ;;  %v2669_v38 = vshll.u32 %v9266_v35, 16  ;;  %v2575_v23 = vld [vmem:[#allocation2 + $0x68] sm:$0xf] }
  0xb2   :  { %v2597_v63 = vrot.slane %v2596_v33, 4  ;;  %v2651_v44 = vrot.slane %v2649_v52, 5  ;;  %v2657_v62 = vrot.slane %v2655_v31, 5  ;;  %v2662_v3 = vrot.slane %v2660_v32, 4  ;;  %v9284_v22 = vld [vmem:[#allocation2 + $0x6c] sm:$0x1] }
  0xb3   :  { %v2665_v25 = vrot.slane %v2663_v34, 5  ;;  %v2671_v45 = vrot.slane %v2669_v38, 5  ;;  %v7553_v51 = vpack.c.bf16 %v75_v43, %v75_v43  ;;  %v2677_v53 = vshll.u32 %v2569_v39, 16  ;;  %v9292_v43 = vld [vmem:[#allocation2 + $0x74] sm:$0x1] }
  0xb4   :  { %v2602_v17 = vsel %vm8889_vm2, %v2597_v63, %v2601_v47  ;;  %v2674_v47 = vshrl.u32 %v2569_v39, 16  ;;  %v2652_v50 = vor.u32 %v2651_v44, %v2648_v37  ;;  %v2683_v54 = vshll.u32 %v9275_v9, 16  ;;  %v8594_v63 = vld [vmem:[#allocation2 + $0x60] ss:$8 sps:$4 sm:$0xff]  }
  0xb5   :  { %v7260_v18 = vcombine.low %v2602_v17, %v2616_v48  ;;  %v2688_v57 = vshrl.u32 %v2571_v15, 16  ;;  %v2666_v26 = vor.u32 %v2665_v25, %v2662_v3  ;;  %275 = vst [vmem:[#allocation2 + $0x4c] sm:$0x1] %v7553_v51  ;;  %v2691_v33 = vshll.u32 %v2571_v15, 16  ;;  %v9282_v17 = vld [vmem:[#allocation2 + $0x64] sm:$0x1] }
  0xb6   :  { %8134 = vmatmul.mubr.bf16.vlgmr.msra.gmra.mxu0 %v8587_v55  ;;  %v2676_v55 = vrot.slane %v2674_v47, 4  ;;  %v2653_v56 = vrot.slane %v2652_v50, 4  ;;  %v2679_v5 = vrot.slane %v2677_v53, 5  ;;  %v2685_v10 = vrot.slane %v2683_v54, 5  ;;  %v9296_v3 = vld [vmem:[#allocation2 + $0x7c] sm:$0x1] }
  0xb7   :  { %8182 = vmatpush3.bf16.msra.mxu0 %v9217_v58  ;;  %8137 = vmatprep.mubr.bf16.mxu0 %v8590_v8  ;;  %v2644_v58 = vsel %vm8889_vm2, %v2639_v60, %v2643_v27  ;;  %v2690_v6 = vrot.slane %v2688_v57, 4  ;;  %v2667_v61 = vrot.slane %v2666_v26, 4  ;;  %v2693_v14 = vrot.slane %v2691_v33, 5  ;;  %v2577_v60 = vld [vmem:[#allocation2 + $0x70] sm:$0xf]  ;;  %v8600_v57 = vld [vmem:[#allocation3 + $0x208] sm:$0xff]  }
  0xb8   :  { %8165 = vmatprep.mubr.bf16.mxu1 %v7260_v18  ;;  %8183 = vmatprep.subr.bf16.mxu0 %v8589_v11  ;;  %v7261_v49 = vcombine.low %v2630_v28, %v2644_v58  ;;  %v2658_v0 = vsel %vm8889_vm2, %v2653_v56, %v2657_v62  ;;  %v2680_v1 = vor.u32 %v2679_v5, %v2676_v55  ;;  %v8597_v18 = vld [vmem:[#allocation3 + $0x210] sm:$0xff]   ;;  %v2711_v20 = vshll.u32 %v9282_v17, 16  ;;  %v2579_v62 = vld [vmem:[#allocation2 + $0x78] sm:$0xf] }
  0xb9   :  { %v2672_v2 = vsel %vm8889_vm2, %v2667_v61, %v2671_v45  ;;  %v2694_v7 = vor.u32 %v2693_v14, %v2690_v6  ;;  %v2716_v28 = vshrl.u32 %v2575_v23, 16  ;;  %v3077_v24 = vrot.slane %v9246_v41, 5 }
  0xba   :  { %8166 = vmatmul.mubr.bf16.vlgmr.msra.gmra.mxu1 %v7261_v49  ;;  %v7262_v8 = vcombine.low %v2658_v0, %v2672_v2  ;;  %v2681_v48 = vrot.slane %v2680_v1, 4  ;;  %v2719_v31 = vshll.u32 %v2575_v23, 16  ;;  %v2725_v32 = vshll.u32 %v9284_v22, 16  ;;  %v8598_v1 = vld [vmem:[#allocation2 + $0x80] ss:$8 sps:$4 sm:$0xff]  }
  0xbb   :  { %8184 = vmatpush3.bf16.msra.mxu0 %v8589_v11  ;;  %v2573_v11 = vld [vmem:[#allocation2 + $0x60] sm:$0xf]  ;;  %v2713_v37 = vrot.slane %v2711_v20, 5  ;;  %v2718_v38 = vrot.slane %v2716_v28, 4  ;;  %v2730_v51 = vshrl.u32 %v2577_v60, 16  ;;  %v2733_v15 = vshll.u32 %v2577_v60, 16 }
  0xbc   :  { %8185 = vmatprep.subr.bf16.mxu0 %v8592_v4  ;;  %v2702_v27 = vshrl.u32 %v2573_v11, 16  ;;  %8169 = vmatprep.mubr.bf16.mxu1 %v7262_v8  ;;  %v9288_v29 = vld [vmem:[#allocation2 + $0x4c] sm:$0x1]  ;;  %v2686_v39 = vsel %vm8889_vm2, %v2681_v48, %v2685_v10  ;;  %v2721_v49 = vrot.slane %v2719_v31, 5  ;;  %v2727_v44 = vrot.slane %v2725_v32, 5 }
  0xbd   :  { %v2697_v34 = vshll.u32 %v9288_v29, 16  ;;  %v2739_v50 = vshll.u32 %v9292_v43, 16  ;;  %v2744_v53 = vshrl.u32 %v2579_v62, 16  ;;  %v2747_v54 = vshll.u32 %v2579_v62, 16  ;;  %v8599_v2 = vld [vmem:[#allocation2 + $0x90] ss:$8 sps:$4 sm:$0xff]  }
  0xbe   :  { %8138 = vmatmul.mubr.bf16.gmra.mxu0 %v8591_v30  ;;  %v2695_v30 = vrot.slane %v2694_v7, 4  ;;  %v2704_v52 = vrot.slane %v2702_v27, 4  ;;  %v2722_v47 = vor.u32 %v2721_v49, %v2718_v38  ;;  %v2732_v55 = vrot.slane %v2730_v51, 4  ;;  %v2581_v23 = vld [vmem:[#allocation2 + $0x80] sm:$0xf] }
  0xbf   :  { %8186 = vmatpush3.bf16.msra.mxu0 %v8592_v4  ;;  %8141 = vmatprep.mubr.bf16.mxu0 %v8594_v63  ;;  %v2705_v4 = vshll.u32 %v2573_v11, 16  ;;  %v2699_v25 = vrot.slane %v2697_v34, 5  ;;  %v2735_v33 = vrot.slane %v2733_v15, 5  ;;  %v2741_v10 = vrot.slane %v2739_v50, 5  ;;  %v9306_v27 = vld [vmem:[#allocation2 + $0x84] sm:$0x1] }
  0xc0   :  { %8187 = vmatprep.subr.bf16.mxu0 %v8593_v46  ;;  %v2723_v5 = vrot.slane %v2722_v47, 4  ;;  %v2746_v6 = vrot.slane %v2744_v53, 4  ;;  %v2749_v63 = vrot.slane %v2747_v54, 5  ;;  %v2753_v0 = vshll.u32 %v9296_v3, 16  ;;  %v9308_v20 = vld [vmem:[#allocation2 + $0x8c] sm:$0x1] }
  0xc1   :  { %v2707_v58 = vrot.slane %v2705_v4, 5  ;;  %v2736_v14 = vor.u32 %v2735_v33, %v2732_v55  ;;  %v2583_v4 = vld [vmem:[#allocation2 + $0x88] sm:$0xf]  ;;  %v2758_v60 = vshrl.u32 %v2581_v23, 16  ;;  %v2767_v31 = vshll.u32 %v9306_v27, 16 }
  0xc2   :  { %v2750_v8 = vor.u32 %v2749_v63, %v2746_v6  ;;  %v2755_v48 = vrot.slane %v2753_v0, 5  ;;  %v2772_v32 = vshrl.u32 %v2583_v4, 16  ;;  %v2775_v34 = vshll.u32 %v2583_v4, 16  ;;  %v9319_v62 = vld [vmem:[#allocation2 + $0x94] sm:$0x1] }
  0xc3   :  { %8188 = vmatpush3.bf16.msra.mxu0 %v8593_v46  ;;  %v2708_v45 = vor.u32 %v2707_v58, %v2704_v52  ;;  %v2700_v46 = vsel %vm8889_vm2, %v2695_v30, %v2699_v25  ;;  %v2737_v11 = vrot.slane %v2736_v14, 4  ;;  %v2761_v30 = vshll.u32 %v2581_v23, 16  ;;  %v95_v52 = vld [vmem:[%s10956_s0 + $0x138] sm:$0x3] }
  0xc4   :  { %8189 = vmatprep.subr.bf16.mxu0 %v8596_v59  ;;  %v7263_v56 = vcombine.low %v2686_v39, %v2700_v46  ;;  %v2751_v28 = vrot.slane %v2750_v8, 4  ;;  %v2781_v58 = vshll.u32 %v9308_v20, 16  ;;  %v2760_v39 = vrot.slane %v2758_v60, 4  ;;  %v2587_v25 = vld [vmem:[#allocation2 + $0x98] sm:$0xf] }
  0xc5   :  { %v2709_v26 = vrot.slane %v2708_v45, 4  ;;  %v2763_v49 = vrot.slane %v2761_v30, 5  ;;  %v2769_v51 = vrot.slane %v2767_v31, 5  ;;  %v2774_v15 = vrot.slane %v2772_v32, 4  ;;  %v3027_v60 = vld [vmem:[#allocation2 + $0x30] sm:$0xe] }
  0xc6   :  { %8142 = vmatmul.mubr.bf16.gmra.mxu0 %v8595_v19  ;;  %8170 = vmatmul.mubr.bf16.gmra.mxu1 %v7263_v56  ;;  %v2728_v19 = vsel %vm8889_vm2, %v2723_v5, %v2727_v44  ;;  %v2756_v38 = vsel %vm8889_vm2, %v2751_v28, %v2755_v48  ;;  %v7573_v44 = vpack.c.bf16 %v95_v52, %v95_v52  ;;  %v2777_v47 = vrot.slane %v2775_v34, 5  ;;  %v3023_v56 = vld [vmem:[#allocation2 + $0x10] sm:$0xe]  ;;  %v3026_v48 = vld [vmem:[#allocation2 + $0x28] sm:$0xe] }
  0xc7   :  { %8190 = vmatpush3.bf16.msra.mxu0 %v8596_v59  ;;  %v8601_v59 = vld [vmem:[#allocation3 + $0x200] sm:$0xff]   ;;  %v2714_v61 = vsel %vm8889_vm2, %v2709_v26, %v2713_v37  ;;  %8145 = vmatprep.mubr.bf16.mxu0 %v8598_v1  ;;  %v2585_v37 = vld [vmem:[#allocation2 + $0x90] sm:$0xf]  ;;  %v2764_v50 = vor.u32 %v2763_v49, %v2760_v39  ;;  %v2783_v53 = vrot.slane %v2781_v58, 5  ;;  %v2795_v26 = vshll.u32 %v9319_v62, 16 }
  0xc8   :  { %8191 = vmatprep.subr.bf16.mxu0 %v8597_v18  ;;  %v7264_v7 = vcombine.low %v2714_v61, %v2728_v19  ;;  %295 = vst [vmem:[#allocation2 + $0x9c] sm:$0x1] %v7573_v44  ;;  %v2786_v54 = vshrl.u32 %v2585_v37, 16  ;;  %v2778_v46 = vor.u32 %v2777_v47, %v2774_v15  ;;  %v2800_v55 = vshrl.u32 %v2587_v25, 16  ;;  %v3024_v61 = vld [vmem:[#allocation2 + $0x18] sm:$0xe] }
  0xc9   :  { %v2803_v33 = vshll.u32 %v2587_v25, 16  ;;  %v2765_v5 = vrot.slane %v2764_v50, 4  ;;  %v7276_v14 = vrot.slane %v3023_v56, 9  ;;  %v2797_v0 = vrot.slane %v2795_v26, 5  ;;  %v3028_v32 = vld [vmem:[#allocation2 + $0x38] sm:$0xe] }
  0xca   :  { %8173 = vmatprep.mubr.bf16.mxu1 %v7264_v7  ;;  %v2779_v63 = vrot.slane %v2778_v46, 4  ;;  %v2802_v1 = vrot.slane %v2800_v55, 4  ;;  %v7277_v8 = vrot.slane %v3024_v61, 9  ;;  %v3081_v28 = vrot.slane %v9250_v36, 5  ;;  %v3030_v39 = vld [vmem:[#allocation2 + $0x48] sm:$0xe] }
  0xcb   :  { %8192 = vmatpush3.bf16.msra.mxu0 %v8597_v18  ;;  %v2742_v18 = vsel %vm8889_vm2, %v2737_v11, %v2741_v10  ;;  %v2788_v10 = vrot.slane %v2786_v54, 4  ;;  %v2805_v19 = vrot.slane %v2803_v33, 5  ;;  %v3074_v11 = vsel %vm9041_vm5, %v7276_v14, %v3073_v13  ;;  %v3029_v13 = vld [vmem:[#allocation2 + $0x40] sm:$0xe]  ;;  %v3033_v46 = vld [vmem:[#allocation2 + $0x70] sm:$0xe] }
  0xcc   :  { %8193 = vmatprep.subr.bf16.mxu0 %v8600_v57  ;;  %v7265_v45 = vcombine.low %v2742_v18, %v2756_v38  ;;  %v2784_v23 = vsel %vm8889_vm2, %v2779_v63, %v2783_v53  ;;  %v3078_v40 = vsel %vm9041_vm5, %v7277_v8, %v3077_v24  ;;  %v7279_v31 = vrot.slane %v3026_v48, 9  ;;  %v3031_v25 = vld [vmem:[#allocation2 + $0x60] sm:$0xe]  ;;  %v3034_v26 = vld [vmem:[#allocation2 + $0x78] sm:$0xe] }
  0xcd   :  { %v2806_v4 = vor.u32 %v2805_v19, %v2802_v1  ;;  %v3085_v36 = vrot.slane %v9252_v42, 5  ;;  %v7280_v24 = vrot.slane %v3027_v60, 9  ;;  %v3089_v44 = vrot.slane %v9264_v16, 5  ;;  %v3032_v42 = vld [vmem:[#allocation2 + $0x68] sm:$0xe] }
  0xce   :  { %8146 = vmatmul.mubr.bf16.gmra.mxu0 %v8599_v2  ;;  %8174 = vmatmul.mubr.bf16.gmra.mxu1 %v7265_v45  ;;  %v3025_v2 = vld [vmem:[#allocation2 + $0x20] sm:$0xe]  ;;  %v3093_v15 = vrot.slane %v9266_v35, 5  ;;  %v7282_v47 = vrot.slane %v3029_v13, 9  ;;  %v7283_v55 = vrot.slane %v3030_v39, 9  ;;  %v3101_v33 = vrot.slane %v9288_v29, 5 }
  0xcf   :  { %8194 = vmatpush3.bf16.msra.mxu0 %v8600_v57  ;;  %v2789_v57 = vshll.u32 %v2585_v37, 16  ;;  %v7278_v18 = vrot.slane %v3025_v2, 9  ;;  %v9335_v34 = vld [vmem:[#allocation2 + $0x9c] sm:$0x1]  ;;  %v2807_v58 = vrot.slane %v2806_v4, 4  ;;  %v7292_v37 = vcombine.low %v3074_v11, %v3078_v40 }
  0xd0   :  { %8195 = vmatprep.subr.bf16.mxu0 %v8601_v59  ;;  %v2809_v49 = vshll.u32 %v9335_v34, 16  ;;  %v3086_v45 = vsel %vm9041_vm5, %v7279_v31, %v3085_v36  ;;  %v3090_v54 = vsel %vm9041_vm5, %v7280_v24, %v3089_v44  ;;  %v7284_v56 = vrot.slane %v3031_v25, 9  ;;  %v3036_v61 = vld [vmem:[#allocation2 + $0x88] sm:$0xe]  ;;  %v3037_v14 = vld [vmem:[#allocation2 + $0x90] sm:$0xe] }
  0xd1   :  { %v2791_v6 = vrot.slane %v2789_v57, 5  ;;  %v3082_v38 = vsel %vm9041_vm5, %v7278_v18, %v3081_v28  ;;  %8197 = vmatprep.mubr.bf16.mxu0 %v7292_v37  ;;  %v3097_v57 = vrot.slane %v9275_v9, 5  ;;  %v3105_v9 = vrot.slane %v9282_v17, 5  ;;  %v3038_v19 = vld [vmem:[#allocation2 + $0x98] sm:$0xe] }
  0xd2   :  { %v2811_v50 = vrot.slane %v2809_v49, 5  ;;  %v7293_v53 = vcombine.low %v3082_v38, %v3086_v45  ;;  %v7285_v1 = vrot.slane %v3032_v42, 9  ;;  %v3109_v29 = vrot.slane %v9284_v22, 5 }
  0xd3   :  { %8196 = vmatpush3.bf16.msra.mxu0 %v8601_v59  ;;  %v2770_v59 = vsel %vm8889_vm2, %v2765_v5, %v2769_v51  ;;  %v2792_v7 = vor.u32 %v2791_v6, %v2788_v10  ;;  %v7281_v51 = vrot.slane %v3028_v32, 9  ;;  %v3035_v5 = vld [vmem:[#allocation2 + $0x80] sm:$0xe]  ;;  %v3098_v6 = vsel %vm9041_vm5, %v7282_v47, %v3097_v57 }
  0xd4   :  { %v7266_v30 = vcombine.low %v2770_v59, %v2784_v23  ;;  %v2812_v35 = vsel %vm8889_vm2, %v2807_v58, %v2811_v50  ;;  %v3106_v2 = vsel %vm9041_vm5, %v7284_v56, %v3105_v9  ;;  %v7286_v59 = vrot.slane %v3033_v46, 9 }
  0xd5   :  { %v2793_v52 = vrot.slane %v2792_v7, 4  ;;  %v3094_v16 = vsel %vm9041_vm5, %v7281_v51, %v3093_v15  ;;  %v3110_v7 = vsel %vm9041_vm5, %v7285_v1, %v3109_v29  ;;  %v3113_v17 = vrot.slane %v9292_v43, 5 }
  0xd6   :  { %8177 = vmatprep.mubr.bf16.mxu1 %v7266_v30  ;;  %8198 = vmatmul.mubr.bf16.vlgmr.msra.gmra.mxu0 %v7293_v53  ;;  %v7294_v10 = vcombine.low %v3090_v54, %v3094_v16  ;;  %v7287_v11 = vrot.slane %v3034_v26, 9  ;;  %v3117_v8 = vrot.slane %v9296_v3, 5  ;;  %v7296_v23 = vcombine.low %v3106_v2, %v3110_v7 }
  0xd7   :  { %v2798_v41 = vsel %vm8889_vm2, %v2793_v52, %v2797_v0  ;;  %v3102_v0 = vsel %vm9041_vm5, %v7283_v55, %v3101_v33  ;;  %v7288_v4 = vrot.slane %v3035_v5, 9  ;;  %v3121_v22 = vrot.slane %v9306_v27, 5 }
  0xd8   :  { %v7267_v63 = vcombine.low %v2798_v41, %v2812_v35  ;;  %8201 = vmatprep.mubr.bf16.mxu0 %v7294_v10  ;;  %v7295_v48 = vcombine.low %v3098_v6, %v3102_v0  ;;  %v7289_v18 = vrot.slane %v3036_v61, 9  ;;  %v3125_v28 = vrot.slane %v9308_v20, 5 }
  0xd9   :  { %v7290_v60 = vrot.slane %v3037_v14, 9  ;;  %v3129_v30 = vrot.slane %v9319_v62, 5  ;;  %v7291_v52 = vrot.slane %v3038_v19, 9  ;;  %v3133_v40 = vrot.slane %v9335_v34, 5 }
  0xda   :  { %8178 = vmatmul.mubr.bf16.gmra.mxu1 %v7267_v63  ;;  %v3114_v43 = vsel %vm9041_vm5, %v7286_v59, %v3113_v17  ;;  %v3118_v3 = vsel %vm9041_vm5, %v7287_v11, %v3117_v8  ;;  %v3122_v27 = vsel %vm9041_vm5, %v7288_v4, %v3121_v22  ;;  %v3126_v20 = vsel %vm9041_vm5, %v7289_v18, %v3125_v28 }
  0xdb   :  { %v7297_v31 = vcombine.low %v3114_v43, %v3118_v3  ;;  %v7298_v32 = vcombine.low %v3122_v27, %v3126_v20  ;;  %v3130_v13 = vsel %vm9041_vm5, %v7290_v60, %v3129_v30  ;;  %v3134_v34 = vsel %vm9041_vm5, %v7291_v52, %v3133_v40 }
  0xdc   :  { %v7299_v37 = vcombine.low %v3130_v13, %v3134_v34 }
  0xde   :  { %8202 = vmatmul.mubr.bf16.gmra.mxu0 %v7295_v48 }
  0xdf   :  { %8205 = vmatprep.mubr.bf16.mxu0 %v7296_v23 }
  0xe6   :  { %8206 = vmatmul.mubr.bf16.gmra.mxu0 %v7297_v31 }
  0xe7   :  { %8209 = vmatprep.mubr.bf16.mxu0 %v7298_v32 }
  0xee   :  { %8210 = vmatmul.mubr.bf16.gmra.mxu0 %v7299_v37 }
  0xfe   :  { %v7975_v62 = vpop.f32.mrf.mxu1 }
 0x100   :  { %v895_v58 = vpop.f32.mrf.mxu1 }
 0x102   :  { %v7976_v38 = vpop.f32.mrf.mxu1  ;;  %v7943_v36 = vpop.f32.mrf.mxu0 }
 0x103   :  { %v904_v39 = vadd.f32 %v7975_v62, %v7943_v36 }
 0x104   :  { %v9383_v41 = vpop.f32.mrf.mxu1  ;;  %v702_v49 = vpop.f32.mrf.mxu0 }
 0x105   :  { %v896_v24 = vadd.f32 %v895_v58, %v702_v49 }
 0x106   :  { %v7944_v44 = vpop.f32.mrf.mxu0  ;;  %v7979_v45 = vpop.f32.mrf.mxu1 }
 0x107   :  { %v907_v25 = vadd.f32 %v7976_v38, %v7944_v44 }
 0x108   :  { %v9385_v51 = vpop.f32.mrf.mxu0  ;;  %v911_v15 = vpop.f32.mrf.mxu1 }
 0x10a   :  { %v7947_v47 = vpop.f32.mrf.mxu0  ;;  %v7980_v53 = vpop.f32.mrf.mxu1 }
 0x10b   :  { %v920_v42 = vadd.f32 %v7979_v45, %v7947_v47 }
 0x10c   :  { %v718_v50 = vpop.f32.mrf.mxu0  ;;  %v9387_v26 = vpop.f32.mrf.mxu1 }
 0x10d   :  { %v912_v54 = vadd.f32 %v911_v15, %v718_v50 }
 0x10e   :  { %v7948_v57 = vpop.f32.mrf.mxu0 }
 0x10f   :  { %v923_v46 = vadd.f32 %v7980_v53, %v7948_v57 }
 0x110   :  { %v9389_v55 = vpop.f32.mrf.mxu0 }
 0x111   :  { %v7983_v16 = vpop.f32.mrf.mxu1 }
 0x113   :  { %v927_v33 = vpop.f32.mrf.mxu1 }
 0x115   :  { %v7984_v56 = vpop.f32.mrf.mxu1 }
 0x117   :  { %v9391_v35 = vpop.f32.mrf.mxu1 }
 0x11d   :  { %v7951_v5 = vpop.f32.mrf.mxu0  ;;  %v7987_v14 = vpop.f32.mrf.mxu1 }
 0x11e   :  { %v936_v10 = vadd.f32 %v7983_v16, %v7951_v5 }
 0x11f   :  { %v734_v6 = vpop.f32.mrf.mxu0  ;;  %v943_v0 = vpop.f32.mrf.mxu1 }
 0x120   :  { %v928_v9 = vadd.f32 %v927_v33, %v734_v6 }
 0x121   :  { %v7952_v61 = vpop.f32.mrf.mxu0  ;;  %v7988_v29 = vpop.f32.mrf.mxu1 }
 0x122   :  { %v939_v63 = vadd.f32 %v7984_v56, %v7952_v61 }
 0x123   :  { %v9393_v1 = vpop.f32.mrf.mxu0  ;;  %v9395_v19 = vpop.f32.mrf.mxu1 }
 0x125   :  { %v8039_v7 = vpop.f32.mrf.mxu1 }
 0x126   :  { %v7955_v2 = vpop.f32.mrf.mxu0 }
 0x127   :  { %v952_v59 = vadd.f32 %v7987_v14, %v7955_v2  ;;  %v9397_v8 = vpop.f32.mrf.mxu1 }
 0x128   :  { %v750_v17 = vpop.f32.mrf.mxu0 }
 0x129   :  { %v944_v11 = vadd.f32 %v943_v0, %v750_v17  ;;  %v9399_v4 = vpop.f32.mrf.mxu1 }
 0x12a   :  { %v7956_v48 = vpop.f32.mrf.mxu0 }
 0x12b   :  { %v955_v23 = vadd.f32 %v7988_v29, %v7956_v48  ;;  %v9403_v18 = vpop.f32.mrf.mxu1 }
 0x12c   :  { %v9401_v22 = vpop.f32.mrf.mxu0 }
 0x12d   :  { %v8043_v52 = vpop.f32.mrf.mxu1 }
 0x12e   :  { %v8007_v28 = vpop.f32.mrf.mxu0 }
 0x12f   :  { %v1269_v60 = vadd.f32 %v8007_v28, %v904_v39  ;;  %v9407_v27 = vpop.f32.mrf.mxu1 }
 0x130   :  { %v1204_v30 = vpop.f32.mrf.mxu0 }
 0x131   :  { %v9405_v40 = vadd.f32 %v1204_v30, %v896_v24  ;;  %v1512_v43 = vadd.f32 %v8039_v7, %v1269_v60  ;;  %v9413_v32 = vpop.f32.mrf.mxu1 }
 0x132   :  { %v8008_v3 = vpop.f32.mrf.mxu0 }
 0x133   :  { %v9409_v20 = vadd.f32 %v8008_v3, %v907_v25  ;;  %v9415_v13 = vpop.f32.mrf.mxu1 }
 0x134   :  { %v9411_v31 = vpop.f32.mrf.mxu0 }
 0x135   :  { %v8047_v37 = vpop.f32.mrf.mxu1 }
 0x136   :  { %v8011_v62 = vpop.f32.mrf.mxu0 }
 0x137   :  { %v1273_v34 = vadd.f32 %v8011_v62, %v920_v42  ;;  %v9419_v49 = vpop.f32.mrf.mxu1 }
 0x138   :  { %v1220_v58 = vpop.f32.mrf.mxu0 }
 0x139   :  { %v9417_v38 = vadd.f32 %v1220_v58, %v912_v54  ;;  %v1516_v36 = vadd.f32 %v8043_v52, %v1273_v34  ;;  %v9425_v25 = vpop.f32.mrf.mxu1 }
 0x13a   :  { %v8012_v39 = vpop.f32.mrf.mxu0  ;;  %10982 = vst [vmem:[#allocation14_spill] sm:$0xff] %v9425_v25 }
 0x13b   :  { %v9421_v24 = vadd.f32 %v8012_v39, %v923_v46  ;;  %v9427_v15 = vpop.f32.mrf.mxu1 }
 0x13c   :  { %v9423_v44 = vpop.f32.mrf.mxu0 }
 0x13d   :  { %v8051_v42 = vpop.f32.mrf.mxu1 }
 0x13e   :  { %v8015_v45 = vpop.f32.mrf.mxu0 }
 0x13f   :  { %v1277_v47 = vadd.f32 %v8015_v45, %v936_v10  ;;  %v9431_v16 = vpop.f32.mrf.mxu1 }
 0x140   :  { %v1236_v50 = vpop.f32.mrf.mxu0  ;;  %10983 = vst [vmem:[#allocation15_spill] sm:$0xff] %v9431_v16 }
 0x141   :  { %v9429_v53 = vadd.f32 %v1236_v50, %v928_v9  ;;  %v1520_v54 = vadd.f32 %v8047_v37, %v1277_v47  ;;  %v9437_v56 = vpop.f32.mrf.mxu1 }
 0x142   :  { %v8016_v57 = vpop.f32.mrf.mxu0  ;;  %10985 = vst [vmem:[#allocation17_spill] sm:$0xff] %v9437_v56 }
 0x143   :  { %v9433_v33 = vadd.f32 %v8016_v57, %v939_v63  ;;  %v9439_v61 = vpop.f32.mrf.mxu1 }
 0x144   :  { %v9435_v46 = vpop.f32.mrf.mxu0  ;;  %10986 = vst [vmem:[#allocation18_spill] sm:$0xff] %v9439_v61 }
 0x145   :  { %10984 = vst [vmem:[#allocation16_spill] sm:$0xff] %v9433_v33 }
 0x146   :  { %v8019_v5 = vpop.f32.mrf.mxu0 }
 0x147   :  { %v1281_v6 = vadd.f32 %v8019_v5, %v952_v59 }
 0x148   :  { %v1252_v14 = vpop.f32.mrf.mxu0  ;;  %v9445_v2 = vpop.f32.mrf.mxu1 }
 0x149   :  { %v9441_v10 = vadd.f32 %v1252_v14, %v944_v11  ;;  %v1524_v0 = vadd.f32 %v8051_v42, %v1281_v6 }
 0x14a   :  { %v8020_v9 = vpop.f32.mrf.mxu0  ;;  %v9449_v63 = vpop.f32.mrf.mxu1 }
 0x14b   :  { %10987 = vst [vmem:[#allocation19_spill] sm:$0xff] %v9441_v10  ;;  %v9443_v29 = vadd.f32 %v8020_v9, %v955_v23 }
 0x14c   :  { %v9447_v7 = vpop.f32.mrf.mxu0  ;;  %v9453_v59 = vpop.f32.mrf.mxu1 }
 0x14d   :  { %10988 = vst [vmem:[#allocation20_spill] sm:$0xff] %v9443_v29  ;;  %10989 = vst [vmem:[#allocation21_spill] sm:$0xff] %v9447_v7  ;;  %v899_v7 = vadd.f32 %v9383_v41, %v9385_v51 }
 0x14e   :  { %v8071_v17 = vpop.f32.mrf.mxu0  ;;  %v9457_v11 = vpop.f32.mrf.mxu1 }
 0x14f   :  { %v9451_v48 = vadd.f32 %v8071_v17, %v1512_v43  ;;  %v1268_v25 = vadd.f32 %v9411_v31, %v899_v7  ;;  %v1513_v31 = vadd.f32 %v9399_v4, %v9409_v20 }
 0x150   :  { %v1913_v28 = vpop.f32.mrf.mxu0 }
 0x152   :  { %v9455_v60 = vpop.f32.mrf.mxu0 }
 0x154   :  { %v1916_v30 = vpop.f32.mrf.mxu0  ;;  %v9459_v52 = vpop.f32.mrf.mxu1 }
 0x156   :  { %v8075_v23 = vpop.f32.mrf.mxu0  ;;  %v9461_v3 = vpop.f32.mrf.mxu1 }
 0x157   :  { %v9463_v62 = vadd.f32 %v8075_v23, %v1516_v36 }
 0x158   :  { %v9465_v34 = vpop.f32.mrf.mxu0  ;;  %v9469_v43 = vpop.f32.mrf.mxu1 }
 0x15a   :  { %v9467_v58 = vpop.f32.mrf.mxu0  ;;  %v9473_v39 = vpop.f32.mrf.mxu1 }
 0x15c   :  { %v9471_v37 = vpop.f32.mrf.mxu0 }
 0x160   :  { %v8079_v45 = vpop.f32.mrf.mxu0 }
 0x161   :  { %v9475_v47 = vadd.f32 %v8079_v45, %v1520_v54 }
 0x162   :  { %v9477_v50 = vpop.f32.mrf.mxu1  ;;  %v9481_v57 = vpop.f32.mrf.mxu0 }
 0x163   :  { %10990 = vst [vmem:[#allocation22_spill] sm:$0xff] %v9475_v47  ;;  %10991 = vst [vmem:[#allocation23_spill] sm:$0xff] %v9477_v50 }
 0x164   :  { %v9479_v42 = vpop.f32.mrf.mxu1  ;;  %v9485_v5 = vpop.f32.mrf.mxu0 }
 0x165   :  { %10992 = vst [vmem:[#allocation24_spill] sm:$0xff] %v9479_v42  ;;  %10994 = vst [vmem:[#allocation26_spill] sm:$0xff] %v9485_v5 }
 0x166   :  { %v9483_v36 = vpop.f32.mrf.mxu1  ;;  %v9489_v14 = vpop.f32.mrf.mxu0 }
 0x167   :  { %10993 = vst [vmem:[#allocation25_spill] sm:$0xff] %v9483_v36 }
 0x168   :  { %v9487_v6 = vpop.f32.mrf.mxu1 }
 0x169   :  { %10995 = vst [vmem:[#allocation27_spill] sm:$0xff] %v9487_v6 }
 0x16c   :  { %v9491_v9 = vpop.f32.mrf.mxu1 }
 0x16d   :  { %10996 = vst [vmem:[#allocation28_spill] sm:$0xff] %v9491_v9 }
 0x16e   :  { %v8083_v17 = vpop.f32.mrf.mxu0  ;;  %v9497_v45 = vpop.f32.mrf.mxu1 }
 0x16f   :  { %v9493_v23 = vadd.f32 %v8083_v17, %v1524_v0  ;;  %10999 = vst [vmem:[#allocation31_spill] sm:$0xff] %v9497_v45 }
 0x170   :  { %v9495_v54 = vpop.f32.mrf.mxu0  ;;  %v9503_v56 = vpop.f32.mrf.mxu1 }
 0x171   :  { %10997 = vst [vmem:[#allocation29_spill] sm:$0xff] %v9493_v23  ;;  %10998 = vst [vmem:[#allocation30_spill] sm:$0xff] %v9495_v54 }
 0x172   :  { %v9499_v21 = vpop.f32.mrf.mxu0  ;;  %11002 = vst [vmem:[#allocation34_spill] sm:$0xff] %v9503_v56  ;;  %v9505_v50 = vpop.f32.mrf.mxu1 }
 0x173   :  { %11000 = vst [vmem:[#allocation32_spill] sm:$0xff] %v9499_v21  ;;  %11003 = vst [vmem:[#allocation35_spill] sm:$0xff] %v9505_v50 }
 0x174   :  { %v9501_v12 = vpop.f32.mrf.mxu0 }
 0x175   :  { %11001 = vst [vmem:[#allocation33_spill] sm:$0xff] %v9501_v12 }
 0x176   :  { %v8135_v29 = vpop.f32.mrf.mxu0 }
 0x178   :  { %v2478_v36 = vpop.f32.mrf.mxu0 }
 0x17a   :  { %v8136_v47 = vpop.f32.mrf.mxu0  ;;  %v8167_v9 = vpop.f32.mrf.mxu1 }
 0x17c   :  { %v2481_v61 = vpop.f32.mrf.mxu0  ;;  %v2944_v17 = vpop.f32.mrf.mxu1 }
 0x17e   :  { %v9507_v6 = vpop.f32.mrf.mxu0  ;;  %v8168_v54 = vpop.f32.mrf.mxu1 }
 0x17f   :  { %11004 = vst [vmem:[#allocation36_spill] sm:$0xff] %v9507_v6 }
 0x180   :  { %v2494_v0 = vpop.f32.mrf.mxu0  ;;  %v2947_v56 = vpop.f32.mrf.mxu1 }
 0x182   :  { %v9509_v23 = vpop.f32.mrf.mxu0 }
 0x183   :  { %11005 = vst [vmem:[#allocation37_spill] sm:$0xff] %v9509_v23 }
 0x184   :  { %v2497_v45 = vpop.f32.mrf.mxu0 }
 0x186   :  { %v9511_v21 = vpop.f32.mrf.mxu0  ;;  %v9519_v50 = vpop.f32.mrf.mxu1 }
 0x187   :  { %11006 = vst [vmem:[#allocation38_spill] sm:$0xff] %v9511_v21  ;;  %11010 = vst [vmem:[#allocation42_spill] sm:$0xff] %v9519_v50 }
 0x188   :  { %v9513_v12 = vpop.f32.mrf.mxu0  ;;  %v2960_v42 = vpop.f32.mrf.mxu1 }
 0x189   :  { %11007 = vst [vmem:[#allocation39_spill] sm:$0xff] %v9513_v12 }
 0x18a   :  { %v9515_v5 = vpop.f32.mrf.mxu0  ;;  %v9528_v21 = vpop.f32.mrf.mxu1 }
 0x18b   :  { %11008 = vst [vmem:[#allocation40_spill] sm:$0xff] %v9515_v5  ;;  %v1510_v5 = vadd.f32 %v9397_v8, %v9405_v40  ;;  %v1514_v8 = vadd.f32 %v9407_v27, %v9417_v38 }
 0x18c   :  { %v9517_v16 = vpop.f32.mrf.mxu0  ;;  %v2963_v50 = vpop.f32.mrf.mxu1 }
 0x18d   :  { %11009 = vst [vmem:[#allocation41_spill] sm:$0xff] %v9517_v16  ;;  %v1511_v16 = vadd.f32 %v9403_v18, %v1268_v25  ;;  %v1976_v33 = vadd.f32 %v1913_v28, %v1510_v5  ;;  %v1979_v18 = vadd.f32 %v9455_v60, %v1513_v31  ;;  %v947_v5 = vadd.f32 %v9395_v19, %v9401_v22 }
 0x18e   :  { %v9521_v10 = vpop.f32.mrf.mxu0  ;;  %v9542_v7 = vpop.f32.mrf.mxu1 }
 0x18f   :  { %11011 = vst [vmem:[#allocation43_spill] sm:$0xff] %v9521_v10  ;;  %v915_v10 = vadd.f32 %v9387_v26, %v9389_v55  ;;  %v1977_v6 = vadd.f32 %v1916_v30, %v1511_v16  ;;  %v2298_v40 = vadd.f32 %v9449_v63, %v1976_v33  ;;  %v1980_v16 = vadd.f32 %v9465_v34, %v1514_v8  ;;  %v11015_v8 = vld [vmem:[#allocation21_spill] sm:$0xff] }
 0x190   :  { %v9525_v23 = vpop.f32.mrf.mxu0  ;;  %v9556_v38 = vpop.f32.mrf.mxu1  ;;  %v2301_v63 = vadd.f32 %v9453_v59, %v1979_v18  ;;  %v1280_v18 = vadd.f32 %v11015_v8, %v947_v5  ;;  %v11030_v5 = vld [vmem:[#allocation33_spill] sm:$0xff]  ;;  %v11034_v8 = vld [vmem:[#allocation31_spill] sm:$0xff] }
 0x191   :  { %v1272_v41 = vadd.f32 %v9423_v44, %v915_v10  ;;  %v2299_v26 = vadd.f32 %v9457_v11, %v1977_v6  ;;  %v2300_v44 = vadd.f32 %v9445_v2, %v9451_v48  ;;  %v2541_v4 = vadd.f32 %v2478_v36, %v2298_v40  ;;  %v11016_v40 = vld [vmem:[#allocation24_spill] sm:$0xff] }
 0x192   :  { %v9530_v12 = vpop.f32.mrf.mxu0  ;;  %v931_v10 = vadd.f32 %v9391_v35, %v9393_v1  ;;  %v2302_v60 = vadd.f32 %v9461_v3, %v1980_v16  ;;  %v1518_v35 = vadd.f32 %v9419_v49, %v9429_v53  ;;  %v9567_v59 = vpop.f32.mrf.mxu1 }
 0x193   :  { %v1515_v55 = vadd.f32 %v9415_v13, %v1272_v41  ;;  %v2542_v20 = vadd.f32 %v2481_v61, %v2299_v26  ;;  %v2543_v28 = vadd.f32 %v8135_v29, %v2300_v44  ;;  %v1517_v13 = vadd.f32 %v9413_v32, %v9421_v24  ;;  %v11014_v41 = vld [vmem:[#allocation14_spill] sm:$0xff]  ;;  %v11019_v44 = vld [vmem:[#allocation15_spill] sm:$0xff] }
 0x194   :  { %v9538_v51 = vpop.f32.mrf.mxu0  ;;  %v1276_v2 = vadd.f32 %v9435_v46, %v931_v10  ;;  %v2544_v61 = vadd.f32 %v8136_v47, %v2301_v63  ;;  %v3007_v11 = vadd.f32 %v2944_v17, %v2541_v4  ;;  %v2545_v32 = vadd.f32 %v2494_v0, %v2302_v60  ;;  %v11020_v4 = vld [vmem:[#allocation26_spill] sm:$0xff]  ;;  %v11021_v10 = vld [vmem:[#allocation27_spill] sm:$0xff] }
 0x195   :  { %v1981_v27 = vadd.f32 %v9471_v37, %v1515_v55  ;;  %v3008_v30 = vadd.f32 %v2947_v56, %v2542_v20  ;;  %v1983_v1 = vadd.f32 %v9467_v58, %v1517_v13  ;;  %v3009_v37 = vadd.f32 %v8167_v9, %v2543_v28  ;;  %v2979_v9 = vpop.f32.mrf.mxu1  ;;  %v11022_v28 = vld [vmem:[#allocation42_spill] sm:$0xff] }
 0x196   :  { %v8199_v25 = vpop.f32.mrf.mxu0  ;;  %v1519_v3 = vadd.f32 %v9427_v15, %v1276_v2  ;;  %v2304_v56 = vadd.f32 %v9459_v52, %v9463_v62  ;;  %v1984_v49 = vadd.f32 %v9481_v57, %v1518_v35  ;;  %v3010_v58 = vadd.f32 %v8168_v54, %v2544_v61  ;;  %v11012_v52 = vld [vmem:[#allocation36_spill] sm:$0xff]  ;;  %v11023_v2 = vld [vmem:[#allocation39_spill] sm:$0xff]  ;;  %v11024_v61 = vld [vmem:[#allocation18_spill] sm:$0xff] }
 0x197   :  { %v2303_v34 = vadd.f32 %v9473_v39, %v1981_v27  ;;  %v9577_v39 = vadd.f32 %v8199_v25, %v3009_v37  ;;  %v2305_v6 = vadd.f32 %v9469_v43, %v1983_v1  ;;  %v3011_v57 = vadd.f32 %v2960_v42, %v2545_v32  ;;  %v11017_v43 = vld [vmem:[#allocation37_spill] sm:$0xff]  ;;  %v11018_v42 = vld [vmem:[#allocation19_spill] sm:$0xff] }
 0x198   :  { %v3266_v33 = vpop.f32.mrf.mxu0  ;;  %v1985_v15 = vadd.f32 %v9489_v14, %v1519_v3  ;;  %v2547_v62 = vadd.f32 %v11012_v52, %v2304_v56  ;;  %v2306_v19 = vadd.f32 %v11016_v40, %v1984_v49  ;;  %v1522_v16 = vadd.f32 %v11019_v44, %v11018_v42  ;;  %v11026_v35 = vld [vmem:[#allocation23_spill] sm:$0xff]  ;;  %v11028_v3 = vld [vmem:[#allocation41_spill] sm:$0xff] }
 0x199   :  { %v9569_v24 = vadd.f32 %v3266_v33, %v3007_v11  ;;  %v2546_v47 = vadd.f32 %v2497_v45, %v2303_v34  ;;  %v11013_v45 = vld [vmem:[#allocation16_spill] sm:$0xff]  ;;  %v2548_v26 = vadd.f32 %v11017_v43, %v2305_v6  ;;  %v1523_v11 = vadd.f32 %v11024_v61, %v1280_v18  ;;  %v11027_v34 = vld [vmem:[#allocation30_spill] sm:$0xff]  ;;  %v8602_v52 = vld [vmem:[#allocation6 + $0x38] sm:$0xff]  }
 0x19a   :  { %v8200_v48 = vpop.f32.mrf.mxu0  ;;  %v1521_v31 = vadd.f32 %v11014_v41, %v11013_v45  ;;  %v2307_v27 = vadd.f32 %v11021_v10, %v1985_v15  ;;  %v9601_v33 = vpop.f32.mrf.mxu1  ;;  %v3013_v13 = vadd.f32 %v11022_v28, %v2547_v62  ;;  %v11031_v62 = vld [vmem:[#allocation38_spill] sm:$0xff]  ;;  %v11032_v41 = vld [vmem:[#allocation20_spill] sm:$0xff]  ;;  %8245 = vmatprep.subr.bf16.mxu0 %v8602_v52  ;;  %v11037_v42 = vld [vmem:[#allocation35_spill] sm:$0xff] }
 0x19b   :  { %v9586_v17 = vadd.f32 %v8200_v48, %v3010_v58  ;;  %v3012_v14 = vadd.f32 %v2963_v50, %v2546_v47  ;;  %v2549_v48 = vadd.f32 %v11023_v2, %v2306_v19  ;;  %v3014_v32 = vadd.f32 %v9528_v21, %v2548_v26  ;;  %v11029_v47 = vld [vmem:[#allocation25_spill] sm:$0xff]  ;;  %v11035_v19 = vld [vmem:[#allocation40_spill] sm:$0xff]  ;;  %8246 = vmatpush3.bf16.msra.mxu0 %v8602_v52 }
 0x19c   :  { %v3269_v29 = vpop.f32.mrf.mxu0  ;;  %v1987_v20 = vadd.f32 %v11020_v4, %v1521_v31  ;;  %v2550_v56 = vadd.f32 %v11028_v3, %v2307_v27  ;;  %v1989_v6 = vadd.f32 %v11030_v5, %v1523_v11  ;;  %v2992_v15 = vpop.f32.mrf.mxu1 }
 0x19d   :  { %v9571_v46 = vadd.f32 %v3269_v29, %v3008_v30  ;;  %v11025_v30 = vld [vmem:[#allocation22_spill] sm:$0xff]  ;;  %v1988_v29 = vadd.f32 %v11027_v34, %v1522_v16  ;;  %v8604_v34 = vld [vmem:[#allocation6 + $0x28] sm:$0xff]  }
 0x19e   :  { %v8203_v53 = vpop.f32.mrf.mxu0  ;;  %v2308_v1 = vadd.f32 %v11026_v35, %v11025_v30  ;;  %v3016_v26 = vadd.f32 %v2979_v9, %v2550_v56  ;;  %v2311_v44 = vadd.f32 %v11037_v42, %v1989_v6  ;;  %v8180_v16 = vpop.f32.mrf.mxu1  ;;  %v11038_v9 = vld [vmem:[#allocation29_spill] sm:$0xff]  ;;  %v8613_v42 = vld [vmem:[#allocation6 + $0x58] sm:$0xff]  }
 0x19f   :  { %v3345_v36 = vadd.f32 %v9571_v46, %v9569_v24  ;;  %v9614_v49 = vadd.f32 %v8203_v53, %v3013_v13  ;;  %v11033_v53 = vld [vmem:[#allocation17_spill] sm:$0xff]  ;;  %v2310_v18 = vadd.f32 %v11034_v8, %v1988_v29  ;;  %v11039_v13 = vld [vmem:[#allocation28_spill] sm:$0xff]  ;;  %v11041_v29 = vld [vmem:[#allocation43_spill] sm:$0xff] }
 0x1a0   :  { %v3282_v0 = vpop.f32.mrf.mxu0  ;;  %v1525_v31 = vadd.f32 %v11033_v53, %v11032_v41  ;;  %v2312_v2 = vadd.f32 %v11039_v13, %v11038_v9  ;;  %v2554_v61 = vadd.f32 %v9538_v51, %v2311_v44  ;;  %v2995_v35 = vpop.f32.mrf.mxu1  ;;  %v9668_v13 = vld [vmem:[#allocation6 + $0xf8] sm:$0xff]  }
 0x1a1   :  { %v3346_v54 = vadd.f32 %v3345_v36, %v9577_v39  ;;  %v9594_v55 = vadd.f32 %v3282_v0, %v3011_v57  ;;  %v2309_v36 = vadd.f32 %v11029_v47, %v1987_v20  ;;  %v2551_v57 = vadd.f32 %v11031_v62, %v2308_v1  ;;  %v8603_v20 = vld [vmem:[#allocation6 + $0x30] sm:$0xff]  }
 0x1a2   :  { %v8204_v22 = vpop.f32.mrf.mxu0  ;;  %v2553_v27 = vadd.f32 %v9525_v23, %v2310_v18  ;;  %8247 = vmatprep.subr.bf16.mxu0 %v8603_v20  ;;  %v3020_v47 = vadd.f32 %v2995_v35, %v2554_v61  ;;  %v8608_v18 = vld [vmem:[#allocation6 + $0x18] sm:$0xff]  }
 0x1a3   :  { %v3347_v25 = vadd.f32 %v3346_v54, %v9586_v17  ;;  %v3015_v54 = vadd.f32 %v9556_v38, %v2549_v48  ;;  %v9621_v45 = vadd.f32 %v8204_v22, %v3014_v32  ;;  %v2552_v43 = vadd.f32 %v11035_v19, %v2309_v36  ;;  %v11036_v38 = vld [vmem:[#allocation32_spill] sm:$0xff]  ;;  %8248 = vmatpush3.bf16.msra.mxu0 %v8603_v20  ;;  %v8609_v19 = vld [vmem:[#allocation6 + $0x68] sm:$0xff]   ;;  %v8615_v20 = vld [vmem:[#allocation6 + $0x50] sm:$0xff]  }
 0x1a4   :  { %v3285_v63 = vpop.f32.mrf.mxu0  ;;  %v1991_v22 = vadd.f32 %v11036_v38, %v1525_v31  ;;  %v3017_v10 = vadd.f32 %v9542_v7, %v2551_v57  ;;  %v11040_v7 = vld [vmem:[#allocation34_spill] sm:$0xff]  ;;  %v2555_v32 = vadd.f32 %v11041_v29, %v2312_v2  ;;  %v3019_v3 = vadd.f32 %v2992_v15, %v2553_v27  ;;  %8249 = vmatprep.subr.bf16.mxu0 %v8604_v34  ;;  %v8612_v38 = vld [vmem:[#allocation6 + $0x8] sm:$0xff]  }
 0x1a5   :  { %v3348_v50 = vadd.f32 %v3347_v25, %v9594_v55  ;;  %v9606_v60 = vadd.f32 %v3285_v63, %v3012_v14  ;;  %v8607_v57 = vld [vmem:[#allocation6 + $0x70] sm:$0xff]  }
 0x1a6   :  { %v8207_v37 = vpop.f32.mrf.mxu0  ;;  %v2313_v23 = vadd.f32 %v11040_v7, %v1991_v22  ;;  %v3021_v15 = vadd.f32 %v9601_v33, %v2555_v32 }
 0x1a7   :  { %v3349_v58 = vadd.f32 %v3348_v50, %v9606_v60  ;;  %v3018_v50 = vadd.f32 %v9567_v59, %v2552_v43  ;;  %v9642_v11 = vadd.f32 %v8207_v37, %v3017_v10  ;;  %v8605_v59 = vld [vmem:[#allocation6 + $0x78] sm:$0xff]   ;;  %8250 = vmatpush3.bf16.msra.mxu0 %v8604_v34 }
 0x1a8   :  { %v3298_v0 = vpop.f32.mrf.mxu0  ;;  %v2556_v51 = vadd.f32 %v9530_v12, %v2313_v23  ;;  %8213 = vmatprep.subr.bf16.mxu1 %v8605_v59  ;;  %v9706_v34 = vld [vmem:[#allocation6 + $0xb8] sm:$0xff]  }
 0x1a9   :  { %v3350_v21 = vadd.f32 %v3349_v58, %v9614_v49  ;;  %v9628_v14 = vadd.f32 %v3298_v0, %v3015_v54  ;;  %8214 = vmatpush3.bf16.msra.mxu1 %v8605_v59  ;;  %v8606_v0 = vld [vmem:[#allocation6 + $0x20] sm:$0xff]   ;;  %11042 = vst [vmem:[#allocation36_spill] sm:$0xff] %v9706_v34 }
 0x1aa   :  { %v8208_v40 = vpop.f32.mrf.mxu0  ;;  %8251 = vmatprep.subr.bf16.mxu0 %v8606_v0  ;;  %v3022_v54 = vadd.f32 %v8180_v16, %v2556_v51  ;;  %8215 = vmatprep.subr.bf16.mxu1 %v8607_v57  ;;  %v8614_v16 = vld [vmem:[#allocation6] sm:$0xff]  }
 0x1ab   :  { %v3351_v25 = vadd.f32 %v3350_v21, %v9621_v45  ;;  %v9647_v56 = vadd.f32 %v8208_v40, %v3018_v50  ;;  %8252 = vmatpush3.bf16.msra.mxu0 %v8606_v0  ;;  %v8619_v50 = vld [vmem:[#allocation6 + $0x48] sm:$0xff]  }
 0x1ac   :  { %v3301_v4 = vpop.f32.mrf.mxu0  ;;  %8253 = vmatprep.subr.bf16.mxu0 %v8608_v18 }
 0x1ad   :  { %v3352_v63 = vadd.f32 %v3351_v25, %v9628_v14  ;;  %v9636_v28 = vadd.f32 %v3301_v4, %v3016_v26  ;;  %8216 = vmatpush3.bf16.msra.mxu1 %v8607_v57  ;;  %v8610_v26 = vld [vmem:[#allocation6 + $0x10] sm:$0xff]   ;;  %v8611_v25 = vld [vmem:[#allocation6 + $0x60] sm:$0xff]  }
 0x1ae   :  { %v8211_v48 = vpop.f32.mrf.mxu0  ;;  %8217 = vmatprep.subr.bf16.mxu1 %v8609_v19 }
 0x1af   :  { %v3353_v30 = vadd.f32 %v3352_v63, %v9636_v28  ;;  %v3343_v12 = vadd.f32 %v8211_v48, %v3021_v15  ;;  %8254 = vmatpush3.bf16.msra.mxu0 %v8608_v18 }
 0x1b0   :  { %v3314_v1 = vpop.f32.mrf.mxu0  ;;  %8255 = vmatprep.subr.bf16.mxu0 %v8610_v26 }
 0x1b1   :  { %v3354_v58 = vadd.f32 %v3353_v30, %v9642_v11  ;;  %v3341_v36 = vadd.f32 %v3314_v1, %v3019_v3  ;;  %8218 = vmatpush3.bf16.msra.mxu1 %v8609_v19 }
 0x1b2   :  { %v8212_v37 = vpop.f32.mrf.mxu0  ;;  %8219 = vmatprep.subr.bf16.mxu1 %v8611_v25 }
 0x1b3   :  { %v3355_v5 = vadd.f32 %v3354_v58, %v9647_v56  ;;  %v3344_v41 = vadd.f32 %v8212_v37, %v3022_v54  ;;  %8256 = vmatpush3.bf16.msra.mxu0 %v8610_v26 }
 0x1b4   :  { %v3317_v6 = vpop.f32.mrf.mxu0  ;;  %8257 = vmatprep.subr.bf16.mxu0 %v8612_v38 }
 0x1b5   :  { %v3356_v52 = vadd.f32 %v3355_v5, %v3341_v36  ;;  %v9653_v62 = vadd.f32 %v3317_v6, %v3020_v47  ;;  %8220 = vmatpush3.bf16.msra.mxu1 %v8611_v25 }
 0x1b6   :  { %8221 = vmatprep.subr.bf16.mxu1 %v8613_v42 }
 0x1b7   :  { %v3357_v21 = vadd.f32 %v3356_v52, %v9653_v62  ;;  %8258 = vmatpush3.bf16.msra.mxu0 %v8612_v38 }
 0x1b8   :  { %8259 = vmatprep.subr.bf16.mxu0 %v8614_v16 }
 0x1b9   :  { %v3358_v53 = vadd.f32 %v3357_v21, %v3343_v12  ;;  %8222 = vmatpush3.bf16.msra.mxu1 %v8613_v42 }
 0x1ba   :  { %8223 = vmatprep.subr.bf16.mxu1 %v8615_v20 }
 0x1bb   :  { %v3359_v31 = vadd.f32 %v3358_v53, %v3344_v41  ;;  %8260 = vmatpush3.bf16.msra.mxu0 %v8614_v16 }
 0x1bc   :  { %8309 = vmatprep.subr.bf16.mxu0 %v9668_v13 }
 0x1bd   :  { %v3360_v8 = vrot.slane %v3359_v31, 4  ;;  %8224 = vmatpush3.bf16.msra.mxu1 %v8615_v20  ;;  %v3426_v20 = vlaneseq }
 0x1be   :  { %8225 = vmatprep.subr.bf16.mxu1 %v8619_v50 }
 0x1bf   :  { %v3361_v40 = vadd.f32 %v3360_v8, %v3359_v31 }
 0x1c1   :  { %v3362_v33 = vrot.slane %v3361_v40, 2  ;;  %8226 = vmatpush3.bf16.msra.mxu1 %v8619_v50 }
 0x1c3   :  { %v3363_v43 = vadd.f32 %v3362_v33, %v3361_v40 }
 0x1c5   :  { %v3364_v22 = vrot.slane %v3363_v43, 1 }
 0x1c7   :  { %v3365_v44 = vadd.f32 %v3364_v22, %v3363_v43  ;;  %v9739_v22 = vld [vmem:[#allocation2] sm:$0xf] }
 0x1c8   :  { %v3863_v16 = vshll.u32 %v9739_v22, 16 }
 0x1c9   :  { %v3366_v4 = vmul.f32 0.0078125, %v3365_v44  ;;  %v3860_v44 = vshrl.u32 %v9739_v22, 16 }
 0x1cb   :  { %v9657_v10 = vsub.f32 %v9569_v24, %v3366_v4  ;;  %v9660_v27 = vsub.f32 %v9571_v46, %v3366_v4  ;;  %v9663_v63 = vsub.f32 %v9577_v39, %v3366_v4  ;;  %v9666_v9 = vsub.f32 %v9586_v17, %v3366_v4 }
 0x1cc   :  { %v9671_v2 = vsub.f32 %v9594_v55, %v3366_v4  ;;  %v9674_v48 = vsub.f32 %v9614_v49, %v3366_v4  ;;  %v9677_v24 = vsub.f32 %v9621_v45, %v3366_v4  ;;  %v9680_v46 = vsub.f32 %v9628_v14, %v3366_v4 }
 0x1cd   :  { %v9683_v39 = vsub.f32 %v9642_v11, %v3366_v4  ;;  %v9686_v17 = vsub.f32 %v9647_v56, %v3366_v4  ;;  %v9688_v55 = vsub.f32 %v3341_v36, %v3366_v4  ;;  %v9690_v61 = vsub.f32 %v3343_v12, %v3366_v4  ;;  %v8622_v11 = vld [vmem:[#allocation6 + $0x40] sm:$0xff]  }
 0x1ce   :  { %v9692_v49 = vsub.f32 %v3344_v41, %v3366_v4  ;;  %v3383_v45 = vmul.f32 %v9657_v10, %v9657_v10  ;;  %v3384_v14 = vmul.f32 %v9660_v27, %v9660_v27  ;;  %v3385_v30 = vmul.f32 %v9663_v63, %v9663_v63  ;;  %8227 = vmatprep.subr.bf16.mxu1 %v8622_v11 }
 0x1cf   :  { %v9702_v23 = vsub.f32 %v9606_v60, %v3366_v4  ;;  %v3386_v35 = vmul.f32 %v9666_v9, %v9666_v9  ;;  %v3387_v29 = vmul.f32 %v9671_v2, %v9671_v2  ;;  %8228 = vmatpush3.bf16.msra.mxu1 %v8622_v11  ;;  %v3389_v60 = vmul.f32 %v9674_v48, %v9674_v48 }
 0x1d0   :  { %v3399_v7 = vadd.f32 %v3384_v14, %v3383_v45  ;;  %8277 = vmatprep.subr.bf16.mxu1 %v9706_v34  ;;  %v9716_v59 = vsub.f32 %v9636_v28, %v3366_v4  ;;  %v3390_v51 = vmul.f32 %v9677_v24, %v9677_v24  ;;  %v3391_v47 = vmul.f32 %v9680_v46, %v9680_v46  ;;  %v3757_v34 = vld [vmem:[#allocation2 + $0x40] sm:$0xf] }
 0x1d1   :  { %v3388_v3 = vmul.f32 %v9702_v23, %v9702_v23  ;;  %v3393_v0 = vmul.f32 %v9683_v39, %v9683_v39  ;;  %v9727_v52 = vsub.f32 %v9653_v62, %v3366_v4  ;;  %v3394_v28 = vmul.f32 %v9686_v17, %v9686_v17  ;;  %v9743_v4 = vld [vmem:[#allocation2 + $0x50] sm:$0xf] }
 0x1d2   :  { %v3400_v1 = vadd.f32 %v3399_v7, %v3385_v30  ;;  %v3392_v5 = vmul.f32 %v9716_v59, %v9716_v59  ;;  %v3395_v54 = vmul.f32 %v9688_v55, %v9688_v55  ;;  %v3397_v53 = vmul.f32 %v9690_v61, %v9690_v61  ;;  %11043 = vst [vmem:[#allocation16_spill] sm:$0xff] %v9743_v4  ;;  %v9749_v7 = vld [vmem:[#allocation2 + $0x4] sm:$0x1] }
 0x1d3   :  { %v3396_v21 = vmul.f32 %v9727_v52, %v9727_v52  ;;  %v3398_v62 = vmul.f32 %v9692_v49, %v9692_v49  ;;  %v3862_v50 = vrot.slane %v3860_v44, 4  ;;  %v3865_v45 = vrot.slane %v3863_v16, 5 }
 0x1d4   :  { %v3401_v32 = vadd.f32 %v3400_v1, %v3386_v35  ;;  %v3972_v14 = vshrl.u32 %v9743_v4, 16  ;;  %v3975_v11 = vshll.u32 %v9743_v4, 16  ;;  %v9747_v30 = vshrl.u32 %v3426_v20, 7  ;;  %v3760_v4 = vld [vmem:[#allocation2 + $0x44] sm:$0x1] }
 0x1d5   :  { %v3866_v35 = vor.u32 %v3865_v45, %v3862_v50  ;;  %v3869_v1 = vshll.u32 %v9749_v7, 16 }
 0x1d6   :  { %v3402_v56 = vadd.f32 %v3401_v32, %v3387_v29  ;;  %11044 = vst [vmem:[#allocation14_spill] sm:$0xff] %v9747_v30  ;;  %v3974_v29 = vrot.slane %v3972_v14, 4  ;;  %v3977_v32 = vrot.slane %v3975_v11, 5 }
 0x1d8   :  { %v3403_v58 = vadd.f32 %v3402_v56, %v3388_v3  ;;  %v3421_v3 = vld [vmem:[%s10959_s3] sm:$0x1]  ;;  %v10968_v56 = vsub.s32 0, %v9747_v30 }
 0x1da   :  { %v3404_v37 = vadd.f32 %v3403_v58, %v3389_v60  ;;  %v9756_v60 = vld [vmem:[#allocation2 + $0x54] sm:$0x1]  ;;  %v9758_v58 = vrot.slane %v3866_v35, 4 }
 0x1db   :  { %11045 = vst [vmem:[#allocation21_spill] sm:$0xff] %v9756_v60 }
 0x1dc   :  { %v3405_v36 = vadd.f32 %v3404_v37, %v3390_v51  ;;  %11046 = vst [vmem:[#allocation24_spill] sm:$0xff] %v9758_v58  ;;  %v9760_v51 = vrot.slane %v3869_v1, 5  ;;  %v3978_v37 = vor.u32 %v3977_v32, %v3974_v29 }
 0x1de   :  { %v3406_v6 = vadd.f32 %v3405_v36, %v3391_v47  ;;  %11047 = vst [vmem:[#allocation37_spill] sm:$0xff] %v9760_v51  ;;  %v3981_v47 = vshll.u32 %v9756_v60, 16 }
 0x1e0   :  { %v3407_v15 = vadd.f32 %v3406_v6, %v3392_v5  ;;  %v9763_v6 = vld [vmem:[#allocation2] sm:$0xe] }
 0x1e2   :  { %v3408_v57 = vadd.f32 %v3407_v15, %v3393_v0  ;;  %v9765_v0 = vld [vmem:[#allocation2 + $0x50] sm:$0xe] }
 0x1e3   :  { %11048 = vst [vmem:[#allocation19_spill] sm:$0xff] %v9765_v0  ;;  %v8702_v0 = vld [vmem:[#allocation2 + $0x8] sm:$0xf] }
 0x1e4   :  { %v3409_v12 = vadd.f32 %v3408_v57, %v3394_v28  ;;  %v11068_v57 = vrot.slane %v9749_v7, 5 }
 0x1e6   :  { %v3410_v41 = vadd.f32 %v3409_v12, %v3395_v54  ;;  %v9773_v54 = vrot.slane %v3978_v37, 4  ;;  %v9775_v12 = vrot.slane %v3981_v47, 5 }
 0x1e8   :  { %v3411_v31 = vadd.f32 %v3410_v41, %v3396_v21  ;;  %v3724_v21 = vld [vmem:[#allocation2 + $0x14] sm:$0x1] }
 0x1ea   :  { %v3412_v8 = vadd.f32 %v3411_v31, %v3397_v53 }
 0x1ec   :  { %v3413_v18 = vadd.f32 %v3412_v8, %v3398_v62 }
 0x1ee   :  { %v3414_v40 = vrot.slane %v3413_v18, 4 }
 0x1f0   :  { %v3415_v33 = vadd.f32 %v3414_v40, %v3413_v18 }
 0x1f2   :  { %v3416_v19 = vrot.slane %v3415_v33, 2 }
 0x1f4   :  { %v3417_v43 = vadd.f32 %v3416_v19, %v3415_v33 }
 0x1f6   :  { %v3418_v26 = vrot.slane %v3417_v43, 1 }
 0x1f8   :  { %v3419_v25 = vadd.f32 %v3418_v26, %v3417_v43 }
 0x1fa   :  { %v3420_v38 = vmul.f32 0.0078125, %v3419_v25  ;;  %v7308_v25 = vld [vmem:[%s10960_s4] ss:$0 sm:$0xff] }
 0x1fc   :  { %v3422_v42 = vadd.f32 1e-05, %v3420_v38 }
 0x1fe   :  { %8698 = vrsqrt.f32 %v3422_v42 }
 0x20b   :  { %v8699_v36 = vpop.eup %8698 }
 0x20c   :  { %v3424_v5 = vmul.f32 %v8699_v36, %v3421_v3 }
 0x20e   :  { %v3429_v15 = vrot.slane %v3424_v5, %v10968_v56 }
 0x210   :  { %v3431_v62 = vmul.f32 %v3429_v15, %v9657_v10  ;;  %v3432_v8 = vmul.f32 %v3429_v15, %v9660_v27  ;;  %v3433_v18 = vmul.f32 %v3429_v15, %v9663_v63  ;;  %v3434_v40 = vmul.f32 %v3429_v15, %v9666_v9 }
 0x211   :  { %v3435_v33 = vmul.f32 %v3429_v15, %v9671_v2  ;;  %v3436_v19 = vmul.f32 %v3429_v15, %v9702_v23  ;;  %v3437_v43 = vmul.f32 %v3429_v15, %v9674_v48  ;;  %v3438_v26 = vmul.f32 %v3429_v15, %v9677_v24 }
 0x212   :  { %v3439_v10 = vmul.f32 %v3429_v15, %v9680_v46  ;;  %v3440_v27 = vmul.f32 %v3429_v15, %v9716_v59  ;;  %v3441_v63 = vmul.f32 %v3429_v15, %v9683_v39  ;;  %v3442_v9 = vmul.f32 %v3429_v15, %v9686_v17 }
 0x213   :  { %v3443_v2 = vmul.f32 %v3429_v15, %v9688_v55  ;;  %v3444_v23 = vmul.f32 %v3429_v15, %v9727_v52  ;;  %v3445_v48 = vmul.f32 %v3429_v15, %v9690_v61  ;;  %v3446_v24 = vmul.f32 %v3429_v15, %v9692_v49 }
 0x214   :  { %v3454_v38 = vadd.f32 %v7308_v25, %v3431_v62  ;;  %v3455_v42 = vadd.f32 %v7308_v25, %v3432_v8  ;;  %v3456_v44 = vadd.f32 %v7308_v25, %v3433_v18  ;;  %v3457_v16 = vadd.f32 %v7308_v25, %v3434_v40 }
 0x215   :  { %v3458_v20 = vadd.f32 %v7308_v25, %v3435_v33  ;;  %v3459_v46 = vadd.f32 %v7308_v25, %v3436_v19  ;;  %v3460_v50 = vadd.f32 %v7308_v25, %v3437_v43  ;;  %v3461_v59 = vadd.f32 %v7308_v25, %v3438_v26 }
 0x216   :  { %v3462_v45 = vadd.f32 %v7308_v25, %v3439_v10  ;;  %v3463_v39 = vadd.f32 %v7308_v25, %v3440_v27  ;;  %v3464_v14 = vadd.f32 %v7308_v25, %v3441_v63  ;;  %v3465_v17 = vadd.f32 %v7308_v25, %v3442_v9 }
 0x217   :  { %v3466_v11 = vadd.f32 %v7308_v25, %v3443_v2  ;;  %v3467_v55 = vadd.f32 %v7308_v25, %v3444_v23  ;;  %v3468_v35 = vadd.f32 %v7308_v25, %v3445_v48  ;;  %v3469_v52 = vadd.f32 %v7308_v25, %v3446_v24 }
 0x218   :  { %v3470_v1 = vmax.f32 %v3454_v38, 0.0  ;;  %v3471_v61 = vmax.f32 %v3455_v42, 0.0  ;;  %v3472_v29 = vmax.f32 %v3456_v44, 0.0  ;;  %v3473_v49 = vmax.f32 %v3457_v16, 0.0 }
 0x219   :  { %v3474_v32 = vmax.f32 %v3458_v20, 0.0  ;;  %v3475_v3 = vmax.f32 %v3459_v46, 0.0  ;;  %v3476_v37 = vmax.f32 %v3460_v50, 0.0  ;;  %v3477_v47 = vmax.f32 %v3461_v59, 0.0 }
 0x21a   :  { %v3478_v36 = vmax.f32 %v3462_v45, 0.0  ;;  %v3479_v5 = vmax.f32 %v3463_v39, 0.0  ;;  %v3480_v15 = vmax.f32 %v3464_v14, 0.0  ;;  %v3481_v62 = vmax.f32 %v3465_v17, 0.0 }
 0x21b   :  { %v3482_v8 = vmax.f32 %v3466_v11, 0.0  ;;  %v3483_v18 = vmax.f32 %v3467_v55, 0.0  ;;  %v3484_v40 = vmax.f32 %v3468_v35, 0.0  ;;  %v3485_v33 = vmax.f32 %v3469_v52, 0.0 }
 0x21c   :  { %v7574_v19 = vpack.c.bf16 %v3470_v1, %v3470_v1  ;;  %v7575_v43 = vpack.c.bf16 %v3471_v61, %v3471_v61  ;;  %v7576_v26 = vpack.c.bf16 %v3472_v29, %v3472_v29  ;;  %v7577_v25 = vpack.c.bf16 %v3473_v49, %v3473_v49 }
 0x21d   :  { %v7578_v10 = vpack.c.bf16 %v3474_v32, %v3474_v32  ;;  %v7579_v27 = vpack.c.bf16 %v3475_v3, %v3475_v3  ;;  %v7580_v63 = vpack.c.bf16 %v3476_v37, %v3476_v37  ;;  %v7581_v9 = vpack.c.bf16 %v3477_v47, %v3477_v47  ;;  %v3745_v47 = vld [vmem:[#allocation2 + $0x30] sm:$0xf]  ;;  %v3748_v3 = vld [vmem:[#allocation2 + $0x34] sm:$0x1] }
 0x21e   :  { %v7582_v2 = vpack.c.bf16 %v3478_v36, %v3478_v36  ;;  %v9800_v23 = vpack.c.bf16 %v3479_v5, %v3479_v5  ;;  %v9802_v48 = vpack.c.bf16 %v3480_v15, %v3480_v15  ;;  %v9804_v24 = vpack.c.bf16 %v3481_v62, %v3481_v62  ;;  %v3742_v5 = vld [vmem:[#allocation2 + $0x2c] sm:$0x1] }
 0x21f   :  { %v9806_v38 = vpack.c.bf16 %v3482_v8, %v3482_v8  ;;  %v9808_v42 = vpack.c.bf16 %v3483_v18, %v3483_v18  ;;  %v9810_v44 = vpack.c.bf16 %v3484_v40, %v3484_v40  ;;  %v9812_v16 = vpack.c.bf16 %v3485_v33, %v3485_v33 }
 0x220   :  { %v3551_v20 = vshrl.u32 %v7574_v19, 16  ;;  %v3554_v46 = vshll.u32 %v7574_v19, 16  ;;  %v3559_v50 = vshrl.u32 %v7575_v43, 16  ;;  %v3562_v59 = vshll.u32 %v7575_v43, 16 }
 0x221   :  { %v3567_v45 = vshrl.u32 %v7576_v26, 16  ;;  %v3570_v39 = vshll.u32 %v7576_v26, 16  ;;  %v3575_v14 = vshrl.u32 %v7577_v25, 16  ;;  %v3578_v17 = vshll.u32 %v7577_v25, 16 }
 0x222   :  { %v9814_v11 = vrot.slane %v3551_v20, 7  ;;  %v9816_v55 = vrot.slane %v3559_v50, 7  ;;  %v3583_v35 = vshrl.u32 %v7578_v10, 16  ;;  %v3586_v52 = vshll.u32 %v7578_v10, 16 }
 0x223   :  { %v9818_v1 = vrot.slane %v3567_v45, 7  ;;  %v9820_v61 = vrot.slane %v3575_v14, 7  ;;  %v3591_v29 = vshrl.u32 %v7579_v27, 16  ;;  %v3594_v49 = vshll.u32 %v7579_v27, 16 }
 0x224   :  { %v9823_v32 = vor.u32 %v3554_v46, %v9814_v11  ;;  %v9827_v37 = vor.u32 %v3562_v59, %v9816_v55  ;;  %v9838_v8 = vrot.slane %v3583_v35, 7  ;;  %v3599_v40 = vshrl.u32 %v7580_v63, 16  ;;  %v3751_v46 = vld [vmem:[#allocation2 + $0x38] sm:$0xf] }
 0x225   :  { %v9831_v36 = vor.u32 %v3570_v39, %v9818_v1  ;;  %v9835_v15 = vor.u32 %v3578_v17, %v9820_v61  ;;  %v9840_v18 = vrot.slane %v3591_v29, 7  ;;  %v3602_v33 = vshll.u32 %v7580_v63, 16  ;;  %v3736_v29 = vld [vmem:[#allocation2 + $0x24] sm:$0x1] }
 0x226   :  { %v3607_v19 = vshrl.u32 %v7581_v9, 16  ;;  %v3610_v43 = vshll.u32 %v7581_v9, 16  ;;  %v3615_v26 = vshrl.u32 %v7582_v2, 16  ;;  %v3618_v25 = vshll.u32 %v7582_v2, 16 }
 0x227   :  { %v9843_v10 = vor.u32 %v3586_v52, %v9838_v8  ;;  %v9847_v20 = vor.u32 %v3594_v49, %v9840_v18  ;;  %v9850_v50 = vrot.slane %v3599_v40, 7  ;;  %v3623_v63 = vshrl.u32 %v9800_v23, 16 }
 0x228   :  { %v9852_v59 = vrot.slane %v3607_v19, 7  ;;  %v9854_v45 = vrot.slane %v3615_v26, 7  ;;  %v3626_v9 = vshll.u32 %v9800_v23, 16  ;;  %v3631_v2 = vshrl.u32 %v9802_v48, 16  ;;  %v3733_v23 = vld [vmem:[#allocation2 + $0x20] sm:$0xf] }
 0x229   :  { %v3634_v39 = vshll.u32 %v9802_v48, 16  ;;  %v3639_v14 = vshrl.u32 %v9804_v24, 16  ;;  %v9862_v17 = vor.u32 %v3602_v33, %v9850_v50  ;;  %v9873_v40 = vrot.slane %v3623_v63, 7 }
 0x22a   :  { %v9866_v52 = vor.u32 %v3610_v43, %v9852_v59  ;;  %v9870_v49 = vor.u32 %v3618_v25, %v9854_v45  ;;  %v9875_v48 = vrot.slane %v3631_v2, 7  ;;  %v3642_v33 = vshll.u32 %v9804_v24, 16  ;;  %v3718_v24 = vld [vmem:[#allocation2 + $0xc] sm:$0x1] }
 0x22b   :  { %v9877_v19 = vrot.slane %v3639_v14, 7  ;;  %v3647_v26 = vshrl.u32 %v9806_v38, 16  ;;  %v3650_v43 = vshll.u32 %v9806_v38, 16  ;;  %v9883_v56 = vor.u32 %v3626_v9, %v9873_v40  ;;  %v3721_v14 = vld [vmem:[#allocation2 + $0x10] sm:$0xf] }
 0x22c   :  { %v9887_v53 = vor.u32 %v3634_v39, %v9875_v48  ;;  %v3655_v39 = vshrl.u32 %v9808_v42, 16  ;;  %v3658_v41 = vshll.u32 %v9808_v42, 16  ;;  %v3663_v63 = vshrl.u32 %v9810_v44, 16  ;;  %v3727_v9 = vld [vmem:[#allocation2 + $0x18] sm:$0xf] }
 0x22d   :  { %v9897_v38 = vor.u32 %v3642_v33, %v9877_v19  ;;  %v9900_v31 = vrot.slane %v3647_v26, 7  ;;  %v3666_v33 = vshll.u32 %v9810_v44, 16  ;;  %v3671_v25 = vshrl.u32 %v9812_v16, 16  ;;  %v3730_v26 = vld [vmem:[#allocation2 + $0x1c] sm:$0x1] }
 0x22e   :  { %v9917_v27 = vrot.slane %v3655_v39, 7  ;;  %v3674_v62 = vshll.u32 %v9812_v16, 16  ;;  %v3739_v42 = vld [vmem:[#allocation2 + $0x28] sm:$0xf]  ;;  %v9920_v44 = vrot.slane %v3663_v63, 7  ;;  %v11054_v60 = vrot.slane %v9814_v11, 4 }
 0x22f   :  { %v9914_v35 = vor.u32 %v3650_v43, %v9900_v31  ;;  %v9922_v30 = vrot.slane %v3671_v25, 7  ;;  %v3713_v43 = vsel %vm9892_vm10, %v9823_v32, %v8702_v0  ;;  %v3754_v16 = vld [vmem:[#allocation2 + $0x3c] sm:$0x1]  ;;  %v3722_v63 = vsel %vm9892_vm10, %v9827_v37, %v3721_v14  ;;  %v3763_v32 = vld [vmem:[#allocation2 + $0x58] sm:$0xf] }
 0x230   :  { %v3719_v39 = vsel %vm9905_vm11, %v11054_v60, %v3718_v24  ;;  %v9932_v51 = vor.u32 %v3658_v41, %v9917_v27  ;;  %v11055_v0 = vrot.slane %v9816_v55, 4  ;;  %v3766_v60 = vld [vmem:[#allocation2 + $0x5c] sm:$0x1]  ;;  %3714 = vst [vmem:[#allocation2 + $0x8] sm:$0xf] %v3713_v43  ;;  %v9943_v24 = vor.u32 %v3666_v33, %v9920_v44 }
 0x231   :  { %3720 = vst [vmem:[#allocation2 + $0xc] sm:$0x1] %v3719_v39  ;;  %v3669_v41 = vrot.slane %v9920_v44, 4  ;;  %v9947_v25 = vor.u32 %v3674_v62, %v9922_v30  ;;  %v3677_v58 = vrot.slane %v9922_v30, 4  ;;  %v3769_v37 = vld [vmem:[#allocation2 + $0x60] sm:$0xf]  ;;  %v3734_v62 = vsel %vm9892_vm10, %v9835_v15, %v3733_v23 }
 0x232   :  { %v3725_v11 = vsel %vm9905_vm11, %v11055_v0, %v3724_v21  ;;  %v3772_v14 = vld [vmem:[#allocation2 + $0x64] sm:$0x1]  ;;  %3723 = vst [vmem:[#allocation2 + $0x10] sm:$0xf] %v3722_v63  ;;  %v3728_v21 = vsel %vm9892_vm10, %v9831_v36, %v3727_v9  ;;  %v11056_v55 = vrot.slane %v9818_v1, 4  ;;  %v11057_v43 = vrot.slane %v9820_v61, 4 }
 0x233   :  { %3726 = vst [vmem:[#allocation2 + $0x14] sm:$0x1] %v3725_v11  ;;  %v3775_v63 = vld [vmem:[#allocation2 + $0x68] sm:$0xf]  ;;  %v3778_v0 = vld [vmem:[#allocation2 + $0x6c] sm:$0x1]  ;;  %v3740_v36 = vsel %vm9892_vm10, %v9843_v10, %v3739_v42  ;;  %v3746_v15 = vsel %vm9892_vm10, %v9847_v20, %v3745_v47 }
 0x234   :  { %v3731_v33 = vsel %vm9905_vm11, %v11056_v55, %v3730_v26  ;;  %v3737_v39 = vsel %vm9905_vm11, %v11057_v43, %v3736_v29  ;;  %v3781_v11 = vld [vmem:[#allocation2 + $0x70] sm:$0xf]  ;;  %v11058_v1 = vrot.slane %v9838_v8, 4  ;;  %v11059_v61 = vrot.slane %v9840_v18, 4  ;;  %v3784_v23 = vld [vmem:[#allocation2 + $0x74] sm:$0x1] }
 0x235   :  { %v3787_v26 = vld [vmem:[#allocation2 + $0x78] sm:$0xf]  ;;  %v3790_v55 = vld [vmem:[#allocation2 + $0x7c] sm:$0x1]  ;;  %3729 = vst [vmem:[#allocation2 + $0x18] sm:$0xf] %v3728_v21 }
 0x236   :  { %v3743_v9 = vsel %vm9905_vm11, %v11058_v1, %v3742_v5  ;;  %v3749_v29 = vsel %vm9905_vm11, %v11059_v61, %v3748_v3  ;;  %3732 = vst [vmem:[#allocation2 + $0x1c] sm:$0x1] %v3731_v33  ;;  %3735 = vst [vmem:[#allocation2 + $0x20] sm:$0xf] %v3734_v62  ;;  %v3752_v5 = vsel %vm9892_vm10, %v9862_v17, %v3751_v46  ;;  %v11060_v8 = vrot.slane %v9850_v50, 4 }
 0x237   :  { %3738 = vst [vmem:[#allocation2 + $0x24] sm:$0x1] %v3737_v39  ;;  %v3758_v3 = vsel %vm9892_vm10, %v9866_v52, %v3757_v34  ;;  %v11061_v18 = vrot.slane %v9852_v59, 4  ;;  %v3793_v20 = vld [vmem:[#allocation2 + $0x80] sm:$0xf]  ;;  %v3764_v46 = vsel %vm9892_vm10, %v9870_v49, %v3763_v32  ;;  %v11062_v50 = vrot.slane %v9854_v45, 4 }
 0x238   :  { %v3755_v47 = vsel %vm9905_vm11, %v11060_v8, %v3754_v16  ;;  %v3796_v42 = vld [vmem:[#allocation2 + $0x84] sm:$0x1]  ;;  %v3799_v21 = vld [vmem:[#allocation2 + $0x88] sm:$0xf]  ;;  %3741 = vst [vmem:[#allocation2 + $0x28] sm:$0xf] %v3740_v36  ;;  %v3776_v45 = vsel %vm9892_vm10, %v9887_v53, %v3775_v63  ;;  %v3788_v53 = vsel %vm9892_vm10, %v9914_v35, %v3787_v26 }
 0x239   :  { %v3761_v10 = vsel %vm9905_vm11, %v11061_v18, %v3760_v4  ;;  %3744 = vst [vmem:[#allocation2 + $0x2c] sm:$0x1] %v3743_v9  ;;  %3747 = vst [vmem:[#allocation2 + $0x30] sm:$0xf] %v3746_v15  ;;  %v3767_v34 = vsel %vm9905_vm11, %v11062_v50, %v3766_v60  ;;  %v3770_v4 = vsel %vm9892_vm10, %v9883_v56, %v3769_v37  ;;  %v11063_v59 = vrot.slane %v9873_v40, 4  ;;  %v8621_v8 = vld [vmem:[#allocation6 + $0xf0] sm:$0xff]  }
 0x23a   :  { %3750 = vst [vmem:[#allocation2 + $0x34] sm:$0x1] %v3749_v29  ;;  %3762 = vst [vmem:[#allocation2 + $0x44] sm:$0x1] %v3761_v10  ;;  %v3802_v52 = vld [vmem:[#allocation2 + $0x8c] sm:$0x1]  ;;  %v3782_v40 = vsel %vm9892_vm10, %v9897_v38, %v3781_v11 }
 0x23b   :  { %v3773_v17 = vsel %vm9905_vm11, %v11063_v59, %v3772_v14  ;;  %v3805_v16 = vld [vmem:[#allocation2 + $0x90] sm:$0xf]  ;;  %v3808_v33 = vld [vmem:[#allocation2 + $0x94] sm:$0x1]  ;;  %3753 = vst [vmem:[#allocation2 + $0x38] sm:$0xf] %v3752_v5 }
 0x23c   :  { %3756 = vst [vmem:[#allocation2 + $0x3c] sm:$0x1] %v3755_v47  ;;  %3759 = vst [vmem:[#allocation2 + $0x40] sm:$0xf] %v3758_v3  ;;  %v11064_v49 = vrot.slane %v9875_v48, 4  ;;  %v11065_v32 = vrot.slane %v9877_v19, 4  ;;  %v3794_v19 = vsel %vm9892_vm10, %v9932_v51, %v3793_v20  ;;  %v3803_v51 = vsel %vm9905_vm11, %v3669_v41, %v3802_v52 }
 0x23d   :  { %3765 = vst [vmem:[#allocation2 + $0x58] sm:$0xf] %v3764_v46  ;;  %3768 = vst [vmem:[#allocation2 + $0x5c] sm:$0x1] %v3767_v34  ;;  %v11066_v48 = vrot.slane %v9900_v31, 4  ;;  %v11067_v37 = vrot.slane %v9917_v27, 4  ;;  %v3800_v31 = vsel %vm9892_vm10, %v9943_v24, %v3799_v21  ;;  %v3806_v27 = vsel %vm9892_vm10, %v9947_v25, %v3805_v16 }
 0x23e   :  { %v3779_v56 = vsel %vm9905_vm11, %v11064_v49, %v3778_v0  ;;  %v3785_v60 = vsel %vm9905_vm11, %v11065_v32, %v3784_v23  ;;  %3771 = vst [vmem:[#allocation2 + $0x60] sm:$0xf] %v3770_v4  ;;  %3774 = vst [vmem:[#allocation2 + $0x64] sm:$0x1] %v3773_v17  ;;  %v3812_v62 = vld [vmem:[#allocation2 + $0x8] sm:$0xf]  ;;  %v3809_v35 = vsel %vm9905_vm11, %v3677_v58, %v3808_v33 }
 0x23f   :  { %3780 = vst [vmem:[#allocation2 + $0x6c] sm:$0x1] %v3779_v56  ;;  %3786 = vst [vmem:[#allocation2 + $0x74] sm:$0x1] %v3785_v60  ;;  %v3791_v38 = vsel %vm9905_vm11, %v11066_v48, %v3790_v55  ;;  %v3797_v14 = vsel %vm9905_vm11, %v11067_v37, %v3796_v42  ;;  %v10034_v43 = vld [vmem:[#allocation2 + $0xc] sm:$0x1]  ;;  %v7341_v41 = vcombine.low %v9739_v22, %v3812_v62 }
 0x240   :  { %3777 = vst [vmem:[#allocation2 + $0x68] sm:$0xf] %v3776_v45  ;;  %3783 = vst [vmem:[#allocation2 + $0x70] sm:$0xf] %v3782_v40  ;;  %v3813_v39 = vld [vmem:[#allocation2 + $0x10] sm:$0xf]  ;;  %v3984_v58 = vsel %vm8889_vm2, %v9773_v54, %v9775_v12 }
 0x241   :  { %3792 = vst [vmem:[#allocation2 + $0x7c] sm:$0x1] %v3791_v38  ;;  %3798 = vst [vmem:[#allocation2 + $0x84] sm:$0x1] %v3797_v14  ;;  %v3874_v44 = vshrl.u32 %v3812_v62, 16  ;;  %v3877_v24 = vshll.u32 %v3812_v62, 16  ;;  %8261 = vmatprep.mubr.bf16.mxu0 %v7341_v41 }
 0x242   :  { %3789 = vst [vmem:[#allocation2 + $0x78] sm:$0xf] %v3788_v53  ;;  %3795 = vst [vmem:[#allocation2 + $0x80] sm:$0xf] %v3794_v19  ;;  %v3888_v63 = vshrl.u32 %v3813_v39, 16  ;;  %v3891_v2 = vshll.u32 %v3813_v39, 16 }
 0x243   :  { %3804 = vst [vmem:[#allocation2 + $0x8c] sm:$0x1] %v3803_v51  ;;  %3810 = vst [vmem:[#allocation2 + $0x94] sm:$0x1] %v3809_v35  ;;  %v3814_v0 = vld [vmem:[#allocation2 + $0x18] sm:$0xf] }
 0x244   :  { %3801 = vst [vmem:[#allocation2 + $0x88] sm:$0xf] %v3800_v31  ;;  %3807 = vst [vmem:[#allocation2 + $0x90] sm:$0xf] %v3806_v27  ;;  %v3815_v25 = vld [vmem:[#allocation2 + $0x20] sm:$0xf]  ;;  %v7342_v55 = vcombine.low %v3813_v39, %v3814_v0 }
 0x245   :  { %v3883_v30 = vshll.u32 %v10034_v43, 16  ;;  %v11069_v11 = vrot.slane %v9763_v6, 9  ;;  %v3876_v22 = vrot.slane %v3874_v44, 4  ;;  %v3879_v9 = vrot.slane %v3877_v24, 5  ;;  %v3816_v29 = vld [vmem:[#allocation2 + $0x28] sm:$0xf] }
 0x246   :  { %v3890_v15 = vrot.slane %v3888_v63, 4  ;;  %v3902_v61 = vshrl.u32 %v3814_v0, 16  ;;  %v3893_v23 = vrot.slane %v3891_v2, 5  ;;  %v3905_v26 = vshll.u32 %v3814_v0, 16  ;;  %v3817_v47 = vld [vmem:[#allocation2 + $0x30] sm:$0xf]  ;;  %8262 = vmatmul.mubr.bf16.vlgmr.msra.gmra.mxu0 %v7342_v55 }
 0x247   :  { %v10062_v1 = vsel %vm9041_vm5, %v11069_v11, %v11068_v57  ;;  %v3916_v5 = vshrl.u32 %v3815_v25, 16  ;;  %v3919_v7 = vshll.u32 %v3815_v25, 16  ;;  %v3930_v18 = vshrl.u32 %v3816_v29, 16  ;;  %v3818_v10 = vld [vmem:[#allocation2 + $0x38] sm:$0xf]  ;;  %8310 = vmatpush3.bf16.msra.mxu0 %v9668_v13  ;;  %v8624_v49 = vld [vmem:[#allocation6 + $0xe8] sm:$0xff]  }
 0x248   :  { %v3904_v3 = vrot.slane %v3902_v61, 4  ;;  %v3933_v6 = vshll.u32 %v3816_v29, 16  ;;  %v3907_v20 = vrot.slane %v3905_v26, 5  ;;  %v7343_v21 = vcombine.low %v3815_v25, %v3816_v29  ;;  %v10064_v50 = vld [vmem:[#allocation2 + $0x14] sm:$0x1]  ;;  %8311 = vmatprep.subr.bf16.mxu0 %v8621_v8  ;;  %v11071_v62 = vld [vmem:[#allocation24_spill] sm:$0xff] }
 0x249   :  { %v3918_v42 = vrot.slane %v3916_v5, 4  ;;  %v3880_v46 = vor.u32 %v3879_v9, %v3876_v22  ;;  %v3921_v34 = vrot.slane %v3919_v7, 5  ;;  %v10066_v4 = vrot.slane %v3930_v18, 4  ;;  %v10069_v32 = vld [vmem:[#allocation2 + $0x1c] sm:$0x1]  ;;  %v11072_v31 = vld [vmem:[#allocation37_spill] sm:$0xff] }
 0x24a   :  { %v3935_v59 = vrot.slane %v3933_v6, 5  ;;  %v3885_v17 = vrot.slane %v3883_v30, 5  ;;  %8265 = vmatprep.mubr.bf16.mxu0 %v7343_v21  ;;  %v3944_v16 = vshrl.u32 %v3817_v47, 16  ;;  %v3947_v33 = vshll.u32 %v3817_v47, 16  ;;  %v3820_v48 = vld [vmem:[#allocation2 + $0x58] sm:$0xf] }
 0x24b   :  { %v3881_v52 = vrot.slane %v3880_v46, 4  ;;  %v3958_v45 = vshrl.u32 %v3818_v10, 16  ;;  %v3961_v56 = vshll.u32 %v3818_v10, 16  ;;  %v7344_v40 = vcombine.low %v3817_v47, %v3818_v10  ;;  %v10080_v14 = vld [vmem:[#allocation2 + $0x24] sm:$0x1]  ;;  %8312 = vmatpush3.bf16.msra.mxu0 %v8621_v8  ;;  %v8628_v7 = vld [vmem:[#allocation6 + $0xb0] sm:$0xff]  }
 0x24c   :  { %v3894_v60 = vor.u32 %v3893_v23, %v3890_v15  ;;  %v3897_v53 = vshll.u32 %v10064_v50, 16  ;;  %v10074_v13 = vrot.slane %v3944_v16, 4  ;;  %v10076_v19 = vrot.slane %v3947_v33, 5  ;;  %8313 = vmatprep.subr.bf16.mxu0 %v8624_v49  ;;  %v10090_v2 = vld [vmem:[#allocation2 + $0x2c] sm:$0x1]  ;;  %v8627_v25 = vld [vmem:[#allocation6 + $0xe0] sm:$0xff]  }
 0x24d   :  { %v3886_v38 = vsel %vm8889_vm2, %v3881_v52, %v3885_v17  ;;  %v10078_v37 = vrot.slane %v3958_v45, 4  ;;  %v11073_v51 = vsel %vm8889_vm2, %v11071_v62, %v11072_v31  ;;  %v10087_v35 = vrot.slane %v3961_v56, 5  ;;  %v11074_v57 = vld [vmem:[#allocation16_spill] sm:$0xff]  ;;  %v3822_v61 = vld [vmem:[#allocation2 + $0x68] sm:$0xf]  ;;  %v8633_v62 = vld [vmem:[#allocation6 + $0xd0] sm:$0xff]  }
 0x24e   :  { %v7325_v27 = vcombine.low %v11073_v51, %v3886_v38  ;;  %v3895_v39 = vrot.slane %v3894_v60, 4  ;;  %v3899_v44 = vrot.slane %v3897_v53, 5  ;;  %v3908_v24 = vor.u32 %v3907_v20, %v3904_v3  ;;  %v3821_v15 = vld [vmem:[#allocation2 + $0x60] sm:$0xf]  ;;  %8266 = vmatmul.mubr.bf16.gmra.mxu0 %v7344_v40  ;;  %v10104_v21 = vld [vmem:[#allocation2 + $0x34] sm:$0x1] }
 0x24f   :  { %v3911_v41 = vshll.u32 %v10069_v32, 16  ;;  %v3986_v63 = vshrl.u32 %v3820_v48, 16  ;;  %v3989_v0 = vshll.u32 %v3820_v48, 16  ;;  %v7345_v11 = vcombine.low %v11074_v57, %v3820_v48  ;;  %8314 = vmatpush3.bf16.msra.mxu0 %v8624_v49  ;;  %v3824_v56 = vld [vmem:[#allocation2 + $0x78] sm:$0xf]  ;;  %v8632_v38 = vld [vmem:[#allocation6 + $0xa8] sm:$0xff]  }
 0x250   :  { %8229 = vmatprep.mubr.bf16.mxu1 %v7325_v27  ;;  %v3900_v30 = vsel %vm8889_vm2, %v3895_v39, %v3899_v44  ;;  %v3922_v22 = vor.u32 %v3921_v34, %v3918_v42  ;;  %v3925_v9 = vshll.u32 %v10080_v14, 16  ;;  %v3909_v29 = vrot.slane %v3908_v24, 4  ;;  %8315 = vmatprep.subr.bf16.mxu0 %v8627_v25  ;;  %v8630_v42 = vld [vmem:[#allocation6 + $0xd8] sm:$0xff]   ;;  %v11075_v51 = vld [vmem:[#allocation36_spill] sm:$0xff] }
 0x251   :  { %v3913_v23 = vrot.slane %v3911_v41, 5  ;;  %v10096_v26 = vrot.slane %v3986_v63, 4  ;;  %v10098_v55 = vrot.slane %v3989_v0, 5  ;;  %8269 = vmatprep.mubr.bf16.mxu0 %v7345_v11  ;;  %v3936_v47 = vor.u32 %v3935_v59, %v10066_v4  ;;  %v10108_v4 = vld [vmem:[#allocation2 + $0x3c] sm:$0x1] }
 0x252   :  { %v3923_v5 = vrot.slane %v3922_v22, 4  ;;  %v3927_v8 = vrot.slane %v3925_v9, 5  ;;  %v3939_v3 = vshll.u32 %v10090_v2, 16  ;;  %v4000_v6 = vshrl.u32 %v3821_v15, 16  ;;  %v3823_v59 = vld [vmem:[#allocation2 + $0x70] sm:$0xf] }
 0x253   :  { %v3914_v18 = vsel %vm8889_vm2, %v3909_v29, %v3913_v23  ;;  %v4003_v10 = vshll.u32 %v3821_v15, 16  ;;  %v4014_v20 = vshrl.u32 %v3822_v61, 16  ;;  %v3937_v17 = vrot.slane %v3936_v47, 4  ;;  %8316 = vmatpush3.bf16.msra.mxu0 %v8627_v25  ;;  %v10127_v24 = vld [vmem:[#allocation2 + $0x5c] sm:$0x1]  ;;  %v8636_v9 = vld [vmem:[#allocation6 + $0xc8] sm:$0xff]  }
 0x254   :  { %v7326_v46 = vcombine.low %v3900_v30, %v3914_v18  ;;  %v3928_v34 = vsel %vm8889_vm2, %v3923_v5, %v3927_v8  ;;  %v3941_v52 = vrot.slane %v3939_v3, 5  ;;  %v10110_v16 = vrot.slane %v4000_v6, 4  ;;  %8317 = vmatprep.subr.bf16.mxu0 %v8630_v42  ;;  %v3825_v41 = vld [vmem:[#allocation2 + $0x80] sm:$0xf]  ;;  %v3826_v25 = vld [vmem:[#allocation2 + $0x88] sm:$0xf] }
 0x255   :  { %v10112_v33 = vrot.slane %v4003_v10, 5  ;;  %v10114_v45 = vrot.slane %v4014_v20, 4  ;;  %v4017_v49 = vshll.u32 %v3822_v61, 16  ;;  %v7346_v60 = vcombine.low %v3821_v15, %v3822_v61  ;;  %v10131_v29 = vld [vmem:[#allocation2 + $0x64] sm:$0x1] }
 0x256   :  { %8230 = vmatmul.mubr.bf16.vlgmr.msra.gmra.mxu1 %v7326_v46  ;;  %v3942_v40 = vsel %vm8889_vm2, %v3937_v17, %v3941_v52  ;;  %v3950_v53 = vor.u32 %v10076_v19, %v10074_v13  ;;  %v3953_v48 = vshll.u32 %v10104_v21, 16  ;;  %v3964_v39 = vor.u32 %v10087_v35, %v10078_v37  ;;  %v10139_v3 = vld [vmem:[#allocation2 + $0x6c] sm:$0x1]  ;;  %v8634_v10 = vld [vmem:[#allocation6 + $0xa0] sm:$0xff]   ;;  %v10142_v52 = vld [vmem:[#allocation2 + $0x74] sm:$0x1] }
 0x257   :  { %v7327_v31 = vcombine.low %v3928_v34, %v3942_v40  ;;  %8278 = vmatpush3.bf16.msra.mxu1 %v11075_v51  ;;  %v10122_v27 = vrot.slane %v4017_v49, 5  ;;  %v3967_v44 = vshll.u32 %v10108_v4, 16  ;;  %v4028_v63 = vshrl.u32 %v3823_v59, 16  ;;  %8270 = vmatmul.mubr.bf16.gmra.mxu0 %v7346_v60  ;;  %v8638_v40 = vld [vmem:[#allocation2 + $0x8] ss:$8 sps:$4 sm:$0xff]  }
 0x258   :  { %8279 = vmatprep.subr.bf16.mxu1 %v8628_v7  ;;  %v3951_v13 = vrot.slane %v3950_v53, 4  ;;  %v3955_v19 = vrot.slane %v3953_v48, 5  ;;  %v4031_v0 = vshll.u32 %v3823_v59, 16  ;;  %v3965_v30 = vrot.slane %v3964_v39, 4  ;;  %8318 = vmatpush3.bf16.msra.mxu0 %v8630_v42  ;;  %v10148_v60 = vld [vmem:[#allocation2 + $0x7c] sm:$0x1] }
 0x259   :  { %8233 = vmatprep.mubr.bf16.mxu1 %v7327_v31  ;;  %v3969_v57 = vrot.slane %v3967_v44, 5  ;;  %v4042_v11 = vshrl.u32 %v3824_v56, 16  ;;  %v4045_v22 = vshll.u32 %v3824_v56, 16  ;;  %v4030_v35 = vrot.slane %v4028_v63, 4  ;;  %8319 = vmatprep.subr.bf16.mxu0 %v8633_v62  ;;  %v10153_v39 = vld [vmem:[#allocation2 + $0x84] sm:$0x1] }
 0x25a   :  { %v3956_v37 = vsel %vm8889_vm2, %v3951_v13, %v3955_v19  ;;  %v4033_v15 = vrot.slane %v4031_v0, 5  ;;  %v7347_v61 = vcombine.low %v3823_v59, %v3824_v56  ;;  %v3992_v47 = vor.u32 %v10098_v55, %v10096_v26  ;;  %v10146_v56 = vld [vmem:[#allocation6 + $0x98] sm:$0xff]   ;;  %v10164_v19 = vld [vmem:[#allocation2 + $0x8c] sm:$0x1] }
 0x25b   :  { %8280 = vmatpush3.bf16.msra.mxu1 %v8628_v7  ;;  %v3970_v23 = vsel %vm8889_vm2, %v3965_v30, %v3969_v57  ;;  %v10135_v5 = vrot.slane %v4042_v11, 4  ;;  %v4047_v8 = vrot.slane %v4045_v22, 5  ;;  %v3995_v6 = vshll.u32 %v10127_v24, 16  ;;  %v8642_v57 = vld [vmem:[#allocation6 + $0x178] sm:$0xff]   ;;  %v4471_v11 = vld [vmem:[#allocation2 + $0x8] sm:$0xe] }
 0x25c   :  { %v7328_v18 = vcombine.low %v3956_v37, %v3970_v23  ;;  %8273 = vmatprep.mubr.bf16.mxu0 %v7347_v61  ;;  %8281 = vmatprep.subr.bf16.mxu1 %v8632_v38  ;;  %v4056_v20 = vshrl.u32 %v3825_v41, 16  ;;  %v4059_v7 = vshll.u32 %v3825_v41, 16  ;;  %v3993_v42 = vrot.slane %v3992_v47, 4 }
 0x25d   :  { %v4070_v46 = vshrl.u32 %v3826_v25, 16  ;;  %v4073_v34 = vshll.u32 %v3826_v25, 16  ;;  %v7348_v17 = vcombine.low %v3825_v41, %v3826_v25  ;;  %v3997_v59 = vrot.slane %v3995_v6, 5  ;;  %8320 = vmatpush3.bf16.msra.mxu0 %v8633_v62  ;;  %v8639_v62 = vld [vmem:[#allocation6 + $0xc0] sm:$0xff]  }
 0x25e   :  { %8234 = vmatmul.mubr.bf16.gmra.mxu1 %v7328_v18  ;;  %v4058_v26 = vrot.slane %v4056_v20, 4  ;;  %v4061_v55 = vrot.slane %v4059_v7, 5  ;;  %v4006_v49 = vor.u32 %v10112_v33, %v10110_v16  ;;  %8321 = vmatprep.subr.bf16.mxu0 %v8636_v9  ;;  %v4009_v31 = vshll.u32 %v10131_v29, 16  ;;  %v4475_v20 = vld [vmem:[#allocation2 + $0x28] sm:$0xe] }
 0x25f   :  { %8282 = vmatpush3.bf16.msra.mxu1 %v8632_v38  ;;  %v4072_v53 = vrot.slane %v4070_v46, 4  ;;  %v4075_v48 = vrot.slane %v4073_v34, 5  ;;  %v4020_v51 = vor.u32 %v10122_v27, %v10114_v45  ;;  %v3998_v16 = vsel %vm8889_vm2, %v3993_v42, %v3997_v59  ;;  %8274 = vmatmul.mubr.bf16.gmra.mxu0 %v7348_v17  ;;  %v8641_v42 = vld [vmem:[#allocation2 + $0x18] ss:$8 sps:$4 sm:$0xff]   ;;  %v8645_v59 = vld [vmem:[#allocation6 + $0x170] sm:$0xff]  }
 0x260   :  { %8283 = vmatprep.subr.bf16.mxu1 %v8634_v10  ;;  %v4007_v33 = vrot.slane %v4006_v49, 4  ;;  %v4023_v44 = vshll.u32 %v10139_v3, 16  ;;  %v4034_v41 = vor.u32 %v4033_v15, %v4030_v35  ;;  %v7329_v38 = vcombine.low %v3984_v58, %v3998_v16  ;;  %8325 = vmatprep.mubr.bf16.mxu0 %v8638_v40  ;;  %v8640_v58 = vld [vmem:[#allocation6 + $0x90] sm:$0xff]  }
 0x261   :  { %v4011_v13 = vrot.slane %v4009_v31, 5  ;;  %v4021_v45 = vrot.slane %v4020_v51, 4  ;;  %v4037_v27 = vshll.u32 %v10142_v52, 16  ;;  %8322 = vmatpush3.bf16.msra.mxu0 %v8636_v9  ;;  %v4048_v25 = vor.u32 %v4047_v8, %v10135_v5  ;;  %v4472_v35 = vld [vmem:[#allocation2 + $0x10] sm:$0xe] }
 0x262   :  { %v4025_v63 = vrot.slane %v4023_v44, 5  ;;  %v4035_v0 = vrot.slane %v4034_v41, 4  ;;  %v4051_v30 = vshll.u32 %v10148_v60, 16  ;;  %8237 = vmatprep.mubr.bf16.mxu1 %v7329_v38  ;;  %v4062_v22 = vor.u32 %v4061_v55, %v4058_v26  ;;  %8323 = vmatprep.subr.bf16.mxu0 %v8639_v62  ;;  %v4473_v5 = vld [vmem:[#allocation2 + $0x18] sm:$0xe]  ;;  %v8643_v44 = vld [vmem:[#allocation6 + $0x88] sm:$0xff]  }
 0x263   :  { %8284 = vmatpush3.bf16.msra.mxu1 %v8634_v10  ;;  %v4012_v54 = vsel %vm8889_vm2, %v4007_v33, %v4011_v13  ;;  %v4039_v12 = vrot.slane %v4037_v27, 5  ;;  %v4065_v37 = vshll.u32 %v10153_v39, 16  ;;  %v4049_v15 = vrot.slane %v4048_v25, 4  ;;  %v4474_v10 = vld [vmem:[#allocation2 + $0x20] sm:$0xe]  ;;  %v11076_v27 = vld [vmem:[#allocation21_spill] sm:$0xff] }
 0x264   :  { %v4026_v9 = vsel %vm8889_vm2, %v4021_v45, %v4025_v63  ;;  %8285 = vmatprep.subr.bf16.mxu1 %v10146_v56  ;;  %v4053_v61 = vrot.slane %v4051_v30, 5  ;;  %v4076_v23 = vor.u32 %v4075_v48, %v4072_v53  ;;  %v4063_v18 = vrot.slane %v4062_v22, 4  ;;  %v8644_v49 = vld [vmem:[#allocation2 + $0x28] ss:$8 sps:$4 sm:$0xff]   ;;  %v4477_v33 = vld [vmem:[#allocation2 + $0x38] sm:$0xe] }
 0x265   :  { %v7330_v8 = vcombine.low %v4012_v54, %v4026_v9  ;;  %v4040_v47 = vsel %vm8889_vm2, %v4035_v0, %v4039_v12  ;;  %v4067_v6 = vrot.slane %v4065_v37, 5  ;;  %8324 = vmatpush3.bf16.msra.mxu0 %v8639_v62  ;;  %v4079_v34 = vshll.u32 %v10164_v19, 16  ;;  %v4476_v48 = vld [vmem:[#allocation2 + $0x30] sm:$0xe]  ;;  %v4479_v45 = vld [vmem:[#allocation2 + $0x58] sm:$0xe] }
 0x266   :  { %v4054_v7 = vsel %vm8889_vm2, %v4049_v15, %v4053_v61  ;;  %v4077_v46 = vrot.slane %v4076_v23, 4  ;;  %v7358_v17 = vrot.slane %v4471_v11, 9  ;;  %8373 = vmatprep.subr.bf16.mxu0 %v8642_v57  ;;  %v4524_v40 = vrot.slane %v10034_v43, 5  ;;  %v11078_v0 = vld [vmem:[#allocation19_spill] sm:$0xff]  ;;  %v10203_v54 = vld [vmem:[#allocation6 + $0x80] sm:$0xff]  }
 0x267   :  { %8238 = vmatmul.mubr.bf16.gmra.mxu1 %v7330_v8  ;;  %v7331_v26 = vcombine.low %v4040_v47, %v4054_v7  ;;  %v4068_v55 = vsel %vm8889_vm2, %v4063_v18, %v4067_v6  ;;  %v7359_v53 = vrot.slane %v4472_v35, 9  ;;  %v4081_v31 = vrot.slane %v4079_v34, 5  ;;  %v4481_v37 = vld [vmem:[#allocation2 + $0x68] sm:$0xe]  ;;  %v10214_v35 = vld [vmem:[#allocation2 + $0xc] sm:$0x1] }
 0x268   :  { %8286 = vmatpush3.bf16.msra.mxu1 %v10146_v56  ;;  %v4528_v51 = vrot.slane %v10064_v50, 5  ;;  %v7360_v62 = vrot.slane %v4473_v5, 9  ;;  %v4532_v16 = vrot.slane %v10069_v32, 5  ;;  %v4525_v41 = vsel %vm9041_vm5, %v7358_v17, %v4524_v40  ;;  %8326 = vmatmul.mubr.bf16.vlgmr.msra.gmra.mxu0 %v8641_v42  ;;  %v10218_v23 = vld [vmem:[#allocation2 + $0x14] sm:$0x1]  ;;  %v8648_v5 = vld [vmem:[#allocation6 + $0x168] sm:$0xff]  }
 0x269   :  { %8241 = vmatprep.mubr.bf16.mxu1 %v7331_v26  ;;  %8287 = vmatprep.subr.bf16.mxu1 %v8640_v58  ;;  %v7361_v38 = vrot.slane %v4474_v10, 9  ;;  %v4536_v43 = vrot.slane %v10080_v14, 5  ;;  %v7362_v13 = vrot.slane %v4475_v20, 9  ;;  %v4082_v56 = vsel %vm8889_vm2, %v4077_v46, %v4081_v31  ;;  %v4480_v14 = vld [vmem:[#allocation2 + $0x60] sm:$0xe] }
 0x26a   :  { %v7373_v50 = vcombine.low %v10062_v1, %v4525_v41  ;;  %v10193_v32 = vsel %vm9041_vm5, %v7359_v53, %v4528_v51  ;;  %v11077_v63 = vrot.slane %v11076_v27, 5  ;;  %v11079_v25 = vrot.slane %v11078_v0, 9  ;;  %8329 = vmatprep.mubr.bf16.mxu0 %v8644_v49  ;;  %8374 = vmatpush3.bf16.msra.mxu0 %v8642_v57  ;;  %v8647_v6 = vld [vmem:[#allocation2 + $0x38] ss:$8 sps:$4 sm:$0xff]   ;;  %v5501_v42 = vld [vmem:[#allocation2 + $0x10] sm:$0xe] }
 0x26b   :  { %v7332_v11 = vcombine.low %v4068_v55, %v4082_v56  ;;  %v10207_v1 = vsel %vm9041_vm5, %v7360_v62, %v4532_v16  ;;  %v10211_v12 = vsel %vm9041_vm5, %v7361_v38, %v4536_v43  ;;  %v4540_v22 = vrot.slane %v10090_v2, 5  ;;  %8375 = vmatprep.subr.bf16.mxu0 %v8645_v59  ;;  %v10227_v10 = vld [vmem:[#allocation6 + $0x160] sm:$0xff]   ;;  %v4483_v49 = vld [vmem:[#allocation2 + $0x78] sm:$0xe]  ;;  %v10245_v40 = vld [vmem:[#allocation2 + $0x1c] sm:$0x1] }
 0x26c   :  { %v10201_v30 = vsel %vm9041_vm5, %v11079_v25, %v11077_v63  ;;  %8288 = vmatpush3.bf16.msra.mxu1 %v8640_v58  ;;  %v7363_v9 = vrot.slane %v4476_v48, 9  ;;  %v4544_v57 = vrot.slane %v10104_v21, 5  ;;  %v7364_v15 = vrot.slane %v4477_v33, 9  ;;  %v5500_v58 = vld [vmem:[#allocation2 + $0x8] sm:$0xe]  ;;  %v10269_v27 = vld [vmem:[#allocation6 + $0x130] sm:$0xff]  }
 0x26d   :  { %v4548_v61 = vrot.slane %v10108_v4, 5  ;;  %8289 = vmatprep.subr.bf16.mxu1 %v8643_v44  ;;  %v10222_v8 = vsel %vm9041_vm5, %v7362_v13, %v4540_v22  ;;  %v7366_v2 = vrot.slane %v4479_v45, 9  ;;  %v4556_v47 = vrot.slane %v10127_v24, 5  ;;  %v4482_v24 = vld [vmem:[#allocation2 + $0x70] sm:$0xe]  ;;  %v8654_v63 = vld [vmem:[#allocation6 + $0x158] sm:$0xff]  }
 0x26e   :  { %v7367_v18 = vrot.slane %v4480_v14, 9  ;;  %v7374_v21 = vcombine.low %v10193_v32, %v10207_v1  ;;  %v10231_v4 = vsel %vm9041_vm5, %v7363_v9, %v4544_v57  ;;  %v4560_v7 = vrot.slane %v10131_v29, 5  ;;  %8376 = vmatpush3.bf16.msra.mxu0 %v8645_v59  ;;  %v8649_v46 = vld [vmem:[#allocation2 + $0x58] ss:$8 sps:$4 sm:$0xff]   ;;  %v10254_v31 = vld [vmem:[#allocation2 + $0x24] sm:$0x1] }
 0x26f   :  { %v10235_v20 = vsel %vm9041_vm5, %v7364_v15, %v4548_v61  ;;  %8242 = vmatmul.mubr.bf16.gmra.mxu1 %v7332_v11  ;;  %v7375_v34 = vcombine.low %v10211_v12, %v10222_v8  ;;  %v10242_v17 = vsel %vm9041_vm5, %v7366_v2, %v4556_v47  ;;  %v7368_v26 = vrot.slane %v4481_v37, 9  ;;  %v5502_v51 = vld [vmem:[#allocation2 + $0x18] sm:$0xe]  ;;  %8377 = vmatprep.subr.bf16.mxu0 %v8648_v5  ;;  %v5503_v41 = vld [vmem:[#allocation2 + $0x20] sm:$0xe]  ;;  %v8657_v32 = vld [vmem:[#allocation6 + $0x150] sm:$0xff]  }
 0x270   :  { %v4564_v55 = vrot.slane %v10139_v3, 5  ;;  %8290 = vmatpush3.bf16.msra.mxu1 %v8643_v44  ;;  %8293 = vmatprep.mubr.bf16.mxu1 %v7373_v50  ;;  %v7376_v29 = vcombine.low %v10231_v4, %v10235_v20  ;;  %v10251_v59 = vsel %vm9041_vm5, %v7367_v18, %v4560_v7  ;;  %v7421_v53 = vrot.slane %v5500_v58, 9  ;;  %v8650_v3 = vld [vmem:[#allocation6 + $0x138] sm:$0xff]   ;;  %v4484_v50 = vld [vmem:[#allocation2 + $0x80] sm:$0xe] }
 0x271   :  { %v5550_v48 = vrot.slane %v10214_v35, 5  ;;  %8291 = vmatprep.subr.bf16.mxu1 %v10203_v54  ;;  %v7422_v16 = vrot.slane %v5501_v42, 9  ;;  %v5554_v33 = vrot.slane %v10218_v23, 5  ;;  %v7369_v44 = vrot.slane %v4482_v24, 9  ;;  %8330 = vmatmul.mubr.bf16.gmra.mxu0 %v8647_v6  ;;  %v4485_v45 = vld [vmem:[#allocation2 + $0x88] sm:$0xe] }
 0x272   :  { %v10259_v62 = vsel %vm9041_vm5, %v7368_v26, %v4564_v55  ;;  %v7377_v38 = vcombine.low %v10201_v30, %v10242_v17  ;;  %v4568_v13 = vrot.slane %v10142_v52, 5  ;;  %v7370_v56 = vrot.slane %v4483_v49, 9  ;;  %8333 = vmatprep.mubr.bf16.mxu0 %v8649_v46  ;;  %8378 = vmatpush3.bf16.msra.mxu0 %v8648_v5  ;;  %v10277_v22 = vld [vmem:[#allocation2 + $0x2c] sm:$0x1]  ;;  %v5504_v15 = vld [vmem:[#allocation2 + $0x28] sm:$0xe] }
 0x273   :  { %v10266_v43 = vsel %vm9041_vm5, %v7421_v53, %v5550_v48  ;;  %v10273_v0 = vsel %vm9041_vm5, %v7422_v16, %v5554_v33  ;;  %v4572_v25 = vrot.slane %v10148_v60, 5  ;;  %v7423_v14 = vrot.slane %v5502_v51, 9  ;;  %8379 = vmatprep.subr.bf16.mxu0 %v10227_v10  ;;  %v10288_v60 = vld [vmem:[#allocation2 + $0x34] sm:$0x1]  ;;  %v5505_v47 = vld [vmem:[#allocation2 + $0x30] sm:$0xe] }
 0x274   :  { %v5558_v11 = vrot.slane %v10245_v40, 5  ;;  %8292 = vmatpush3.bf16.msra.mxu1 %v10203_v54  ;;  %v7378_v52 = vcombine.low %v10251_v59, %v10259_v62  ;;  %v10285_v37 = vsel %vm9041_vm5, %v7369_v44, %v4568_v13  ;;  %v7424_v9 = vrot.slane %v5503_v41, 9  ;;  %v5034_v18 = vld [vmem:[#allocation2 + $0x8] sm:$0xf]  ;;  %v10327_v51 = vld [vmem:[#allocation2 + $0x3c] sm:$0x1] }
 0x275   :  { %v5562_v57 = vrot.slane %v10254_v31, 5  ;;  %8341 = vmatprep.subr.bf16.mxu1 %v8650_v3  ;;  %v7437_v61 = vcombine.low %v10266_v43, %v10273_v0  ;;  %v10294_v54 = vsel %vm9041_vm5, %v7370_v56, %v4572_v25  ;;  %v7371_v5 = vrot.slane %v4484_v50, 9  ;;  %v8653_v58 = vld [vmem:[#allocation2 + $0x68] ss:$8 sps:$4 sm:$0xff]   ;;  %v5506_v33 = vld [vmem:[#allocation2 + $0x38] sm:$0xe] }
 0x276   :  { %v4576_v2 = vrot.slane %v10153_v39, 5  ;;  %v10299_v6 = vsel %vm9041_vm5, %v7423_v14, %v5558_v11  ;;  %v7372_v42 = vrot.slane %v4485_v45, 9  ;;  %v4580_v24 = vrot.slane %v10164_v19, 5  ;;  %8380 = vmatpush3.bf16.msra.mxu0 %v10227_v10  ;;  %v8655_v39 = vld [vmem:[#allocation2 + $0x78] ss:$8 sps:$4 sm:$0xff]   ;;  %v10310_v46 = vld [vmem:[#allocation6 + $0x128] sm:$0xff]  }
 0x277   :  { %v10303_v7 = vsel %vm9041_vm5, %v7424_v9, %v5562_v57  ;;  %8294 = vmatmul.mubr.bf16.vlgmr.msra.gmra.mxu1 %v7374_v21  ;;  %v7379_v26 = vcombine.low %v10285_v37, %v10294_v54  ;;  %v7425_v49 = vrot.slane %v5504_v15, 9  ;;  %v5566_v53 = vrot.slane %v10277_v22, 5  ;;  %v5036_v19 = vld [vmem:[#allocation2 + $0x10] sm:$0xf]  ;;  %8381 = vmatprep.subr.bf16.mxu0 %v8654_v63  ;;  %v5507_v50 = vld [vmem:[#allocation2 + $0x40] sm:$0xe] }
 0x278   :  { %v10316_v55 = vsel %vm9041_vm5, %v7371_v5, %v4576_v2  ;;  %8297 = vmatprep.mubr.bf16.mxu1 %v7375_v34  ;;  %8342 = vmatpush3.bf16.msra.mxu1 %v8650_v3  ;;  %v10324_v1 = vsel %vm9041_vm5, %v7372_v42, %v4580_v24  ;;  %v7426_v21 = vrot.slane %v5505_v47, 9  ;;  %v5570_v10 = vrot.slane %v10288_v60, 5  ;;  %v10337_v3 = vld [vmem:[#allocation2 + $0x44] sm:$0x1]  ;;  %v5038_v11 = vld [vmem:[#allocation2 + $0x18] sm:$0xf] }
 0x279   :  { %v5067_v48 = vshrl.u32 %v5034_v18, 16  ;;  %8343 = vmatprep.subr.bf16.mxu1 %v10269_v27  ;;  %v7438_v16 = vcombine.low %v10299_v6, %v10303_v7  ;;  %v10334_v12 = vsel %vm9041_vm5, %v7425_v49, %v5566_v53  ;;  %v5070_v8 = vshll.u32 %v5034_v18, 16  ;;  %8334 = vmatmul.mubr.bf16.gmra.mxu0 %v8653_v58  ;;  %v5040_v2 = vld [vmem:[#allocation2 + $0x20] sm:$0xf]  ;;  %v8660_v47 = vld [vmem:[#allocation6 + $0x148] sm:$0xff]  }
 0x27a   :  { %v5076_v34 = vshll.u32 %v10214_v35, 16  ;;  %v10341_v44 = vsel %vm9041_vm5, %v7426_v21, %v5570_v10  ;;  %v5081_v13 = vshrl.u32 %v5036_v19, 16  ;;  %v5084_v56 = vshll.u32 %v5036_v19, 16  ;;  %8337 = vmatprep.mubr.bf16.mxu0 %v8655_v39  ;;  %8382 = vmatpush3.bf16.msra.mxu0 %v8654_v63  ;;  %v8658_v63 = vld [vmem:[#allocation6 + $0x120] sm:$0xff]   ;;  %v10356_v19 = vld [vmem:[#allocation2 + $0x5c] sm:$0x1] }
 0x27b   :  { %v5069_v41 = vrot.slane %v5067_v48, 4  ;;  %v7380_v45 = vcombine.low %v10316_v55, %v10324_v1  ;;  %v7439_v35 = vcombine.low %v10334_v12, %v10341_v44  ;;  %v5072_v25 = vrot.slane %v5070_v8, 5  ;;  %8383 = vmatprep.subr.bf16.mxu0 %v8657_v32  ;;  %v8661_v21 = vld [vmem:[#allocation6 + $0x118] sm:$0xff]   ;;  %v8662_v10 = vld [vmem:[#allocation6 + $0x140] sm:$0xff]   ;;  %v5042_v30 = vld [vmem:[#allocation2 + $0x28] sm:$0xf] }
 0x27c   :  { %v5090_v14 = vshll.u32 %v10218_v23, 16  ;;  %8344 = vmatpush3.bf16.msra.mxu1 %v10269_v27  ;;  %v5083_v9 = vrot.slane %v5081_v13, 4  ;;  %v5086_v57 = vrot.slane %v5084_v56, 5  ;;  %v7427_v15 = vrot.slane %v5506_v33, 9  ;;  %v8659_v23 = vld [vmem:[#allocation2 + $0x88] ss:$8 sps:$4 sm:$0xff]  }
 0x27d   :  { %v5574_v5 = vrot.slane %v10327_v51, 5  ;;  %8345 = vmatprep.subr.bf16.mxu1 %v10310_v46  ;;  %v5073_v18 = vor.u32 %v5072_v25, %v5069_v41  ;;  %v5078_v58 = vrot.slane %v5076_v34, 5  ;;  %v7428_v42 = vrot.slane %v5507_v50, 9  ;;  %v5508_v41 = vld [vmem:[#allocation2 + $0x58] sm:$0xe] }
 0x27e   :  { %v5578_v24 = vrot.slane %v10337_v3, 5  ;;  %v5087_v39 = vor.u32 %v5086_v57, %v5083_v9  ;;  %v5095_v49 = vshrl.u32 %v5038_v11, 16  ;;  %v5098_v53 = vshll.u32 %v5038_v11, 16  ;;  %8384 = vmatpush3.bf16.msra.mxu0 %v8657_v32  ;;  %v5509_v13 = vld [vmem:[#allocation2 + $0x60] sm:$0xe] }
 0x27f   :  { %v10354_v27 = vsel %vm9041_vm5, %v7427_v15, %v5574_v5  ;;  %8298 = vmatmul.mubr.bf16.gmra.mxu1 %v7376_v29  ;;  %v5074_v48 = vrot.slane %v5073_v18, 4  ;;  %v5104_v34 = vshll.u32 %v10245_v40, 16  ;;  %v5109_v33 = vshrl.u32 %v5040_v2, 16  ;;  %8385 = vmatprep.subr.bf16.mxu0 %v8660_v47  ;;  %v10374_v11 = vld [vmem:[#allocation2 + $0x64] sm:$0x1]  ;;  %v8663_v18 = vld [vmem:[#allocation6 + $0x110] sm:$0xff]  }
 0x280   :  { %v10363_v8 = vsel %vm9041_vm5, %v7428_v42, %v5578_v24  ;;  %8301 = vmatprep.mubr.bf16.mxu1 %v7377_v38  ;;  %8346 = vmatpush3.bf16.msra.mxu1 %v10310_v46  ;;  %v5088_v4 = vrot.slane %v5087_v39, 4  ;;  %v5092_v20 = vrot.slane %v5090_v14, 5  ;;  %v5097_v29 = vrot.slane %v5095_v49, 4  ;;  %v10390_v39 = vld [vmem:[#allocation2 + $0x6c] sm:$0x1] }
 0x281   :  { %v5100_v32 = vrot.slane %v5098_v53, 5  ;;  %8347 = vmatprep.subr.bf16.mxu1 %v8658_v63  ;;  %v5079_v56 = vsel %vm8889_vm2, %v5074_v48, %v5078_v58  ;;  %v7440_v40 = vcombine.low %v10354_v27, %v10363_v8  ;;  %v5111_v50 = vrot.slane %v5109_v33, 4  ;;  %8338 = vmatmul.mubr.bf16.gmra.mxu0 %v8659_v23  ;;  %v8664_v58 = vld [vmem:[#allocation6 + $0x1f8] sm:$0xff]   ;;  %v5511_v33 = vld [vmem:[#allocation2 + $0x70] sm:$0xe] }
 0x282   :  { %v5112_v25 = vshll.u32 %v5040_v2, 16  ;;  %v5093_v17 = vsel %vm8889_vm2, %v5088_v4, %v5092_v20  ;;  %v5118_v46 = vshll.u32 %v10254_v31, 16  ;;  %v7429_v14 = vrot.slane %v5508_v41, 9  ;;  %8386 = vmatpush3.bf16.msra.mxu0 %v8660_v47  ;;  %8389 = vmatprep.mubr.bf16.mxu0 %v7437_v61  ;;  %v5044_v2 = vld [vmem:[#allocation2 + $0x30] sm:$0xf] }
 0x283   :  { %v5101_v38 = vor.u32 %v5100_v32, %v5097_v29  ;;  %v5106_v9 = vrot.slane %v5104_v34, 5  ;;  %v5582_v15 = vrot.slane %v10356_v19, 5  ;;  %v7430_v5 = vrot.slane %v5509_v13, 9  ;;  %8387 = vmatprep.subr.bf16.mxu0 %v8662_v10  ;;  %v8666_v41 = vld [vmem:[#allocation6 + $0x1f0] sm:$0xff]   ;;  %v10426_v7 = vld [vmem:[#allocation2 + $0x7c] sm:$0x1] }
 0x284   :  { %v5114_v57 = vrot.slane %v5112_v25, 5  ;;  %8348 = vmatpush3.bf16.msra.mxu1 %v8658_v63  ;;  %v10383_v42 = vcombine.low %v5079_v56, %v5093_v17  ;;  %v5586_v31 = vrot.slane %v10374_v11, 5  ;;  %v5123_v47 = vshrl.u32 %v5042_v30, 16  ;;  %v5510_v63 = vld [vmem:[#allocation2 + $0x68] sm:$0xe] }
 0x285   :  { %v5102_v24 = vrot.slane %v5101_v38, 4  ;;  %8349 = vmatprep.subr.bf16.mxu1 %v8661_v21  ;;  %v5120_v43 = vrot.slane %v5118_v46, 5  ;;  %v10388_v0 = vsel %vm9041_vm5, %v7429_v14, %v5582_v15  ;;  %v5126_v61 = vshll.u32 %v5042_v30, 16  ;;  %v10404_v13 = vld [vmem:[#allocation2 + $0x74] sm:$0x1]  ;;  %v8665_v56 = vld [vmem:[#allocation6 + $0x108] sm:$0xff]  }
 0x286   :  { %v5115_v23 = vor.u32 %v5114_v57, %v5111_v50  ;;  %v10394_v49 = vsel %vm9041_vm5, %v7430_v5, %v5586_v31  ;;  %v5125_v53 = vrot.slane %v5123_v47, 4  ;;  %v5132_v48 = vshll.u32 %v10277_v22, 16  ;;  %8388 = vmatpush3.bf16.msra.mxu0 %v8662_v10  ;;  %v5046_v10 = vld [vmem:[#allocation2 + $0x38] sm:$0xf]  ;;  %v5048_v38 = vld [vmem:[#allocation2 + $0x40] sm:$0xf] }
 0x287   :  { %v5137_v34 = vshrl.u32 %v5044_v2, 16  ;;  %8302 = vmatmul.mubr.bf16.gmra.mxu1 %v7378_v52  ;;  %v5107_v4 = vsel %vm8889_vm2, %v5102_v24, %v5106_v9  ;;  %v7441_v29 = vcombine.low %v10388_v0, %v10394_v49  ;;  %v5128_v32 = vrot.slane %v5126_v61, 5  ;;  %8437 = vmatprep.subr.bf16.mxu0 %v8664_v58  ;;  %v10432_v44 = vld [vmem:[#allocation2 + $0x84] sm:$0x1]  ;;  %v8668_v5 = vld [vmem:[#allocation6 + $0x1e8] sm:$0xff]   ;;  %v8672_v0 = vld [vmem:[#allocation6 + $0x1d8] sm:$0xff]  }
 0x288   :  { %v5116_v20 = vrot.slane %v5115_v23, 4  ;;  %8305 = vmatprep.mubr.bf16.mxu1 %v7379_v26  ;;  %8350 = vmatpush3.bf16.msra.mxu1 %v8661_v21  ;;  %v5140_v59 = vshll.u32 %v5044_v2, 16  ;;  %v5146_v62 = vshll.u32 %v10288_v60, 16  ;;  %v7431_v52 = vrot.slane %v5510_v63, 9  ;;  %v8667_v21 = vld [vmem:[#allocation6 + $0x100] sm:$0xff]  }
 0x289   :  { %v5139_v22 = vrot.slane %v5137_v34, 4  ;;  %8351 = vmatprep.subr.bf16.mxu1 %v8663_v18  ;;  %v5129_v25 = vor.u32 %v5128_v32, %v5125_v53  ;;  %v5590_v30 = vrot.slane %v10390_v39, 5  ;;  %v7432_v17 = vrot.slane %v5511_v33, 9  ;;  %8390 = vmatmul.mubr.bf16.vlgmr.msra.gmra.mxu0 %v7438_v16  ;;  %v5513_v31 = vld [vmem:[#allocation2 + $0x80] sm:$0xe] }
 0x28a   :  { %v5121_v50 = vsel %vm8889_vm2, %v5116_v20, %v5120_v43  ;;  %v5134_v60 = vrot.slane %v5132_v48, 5  ;;  %v5142_v54 = vrot.slane %v5140_v59, 5  ;;  %v5594_v26 = vrot.slane %v10404_v13, 5  ;;  %8393 = vmatprep.mubr.bf16.mxu0 %v7439_v35  ;;  %8438 = vmatpush3.bf16.msra.mxu0 %v8664_v58  ;;  %v5512_v35 = vld [vmem:[#allocation2 + $0x78] sm:$0xe] }
 0x28b   :  { %v10416_v37 = vcombine.low %v5107_v4, %v5121_v50  ;;  %v5130_v46 = vrot.slane %v5129_v25, 4  ;;  %v10424_v14 = vsel %vm9041_vm5, %v7431_v52, %v5590_v30  ;;  %v5151_v9 = vshrl.u32 %v5046_v10, 16  ;;  %8439 = vmatprep.subr.bf16.mxu0 %v8666_v41  ;;  %v5050_v33 = vld [vmem:[#allocation2 + $0x58] sm:$0xf]  ;;  %v8670_v4 = vld [vmem:[#allocation6 + $0x1e0] sm:$0xff]   ;;  %v8671_v25 = vld [vmem:[#allocation6 + $0x1b0] sm:$0xff]  }
 0x28c   :  { %v5154_v6 = vshll.u32 %v5046_v10, 16  ;;  %8352 = vmatpush3.bf16.msra.mxu1 %v8663_v18  ;;  %v5143_v16 = vor.u32 %v5142_v54, %v5139_v22  ;;  %v5148_v57 = vrot.slane %v5146_v62, 5  ;;  %v10430_v15 = vsel %vm9041_vm5, %v7432_v17, %v5594_v26  ;;  %v5052_v1 = vld [vmem:[#allocation2 + $0x60] sm:$0xf]  ;;  %v5514_v50 = vld [vmem:[#allocation2 + $0x88] sm:$0xe] }
 0x28d   :  { %v5165_v12 = vshrl.u32 %v5048_v38, 16  ;;  %8353 = vmatprep.subr.bf16.mxu1 %v8665_v56  ;;  %v5135_v2 = vsel %vm8889_vm2, %v5130_v46, %v5134_v60  ;;  %v5153_v58 = vrot.slane %v5151_v9, 4  ;;  %v5160_v18 = vshll.u32 %v10327_v51, 16  ;;  %v10465_v17 = vld [vmem:[#allocation2 + $0x94] sm:$0x1] }
 0x28e   :  { %v5156_v24 = vrot.slane %v5154_v6, 5  ;;  %v5144_v47 = vrot.slane %v5143_v16, 4  ;;  %v7442_v23 = vcombine.low %v10424_v14, %v10430_v15  ;;  %v5168_v61 = vshll.u32 %v5048_v38, 16  ;;  %8440 = vmatpush3.bf16.msra.mxu0 %v8666_v41  ;;  %v5515_v46 = vld [vmem:[#allocation2 + $0x90] sm:$0xe]  ;;  %v8675_v14 = vld [vmem:[#allocation6 + $0x1a0] sm:$0xff]  }
 0x28f   :  { %v5167_v43 = vrot.slane %v5165_v12, 4  ;;  %8306 = vmatmul.mubr.bf16.gmra.mxu1 %v7380_v45  ;;  %v5174_v53 = vshll.u32 %v10337_v3, 16  ;;  %v7433_v48 = vrot.slane %v5512_v35, 9  ;;  %v5598_v34 = vrot.slane %v10426_v7, 5  ;;  %8441 = vmatprep.subr.bf16.mxu0 %v8668_v5  ;;  %v8669_v45 = vld [vmem:[#allocation6 + $0x1b8] sm:$0xff]   ;;  %v8676_v15 = vld [vmem:[#allocation6 + $0x1c8] sm:$0xff]  }
 0x290   :  { %v5157_v63 = vor.u32 %v5156_v24, %v5153_v58  ;;  %8354 = vmatpush3.bf16.msra.mxu1 %v8665_v56  ;;  %8357 = vmatprep.mubr.bf16.mxu1 %v10383_v42  ;;  %v5149_v51 = vsel %vm8889_vm2, %v5144_v47, %v5148_v57  ;;  %v5170_v20 = vrot.slane %v5168_v61, 5  ;;  %v7434_v32 = vrot.slane %v5513_v31, 9  ;;  %v10457_v56 = vld [vmem:[#allocation2 + $0x8c] sm:$0x1]  ;;  %v5054_v16 = vld [vmem:[#allocation2 + $0x68] sm:$0xf] }
 0x291   :  { %v5602_v55 = vrot.slane %v10432_v44, 5  ;;  %8355 = vmatprep.subr.bf16.mxu1 %v8667_v21  ;;  %v7407_v3 = vcombine.low %v5135_v2, %v5149_v51  ;;  %v5162_v22 = vrot.slane %v5160_v18, 5  ;;  %v10450_v59 = vsel %vm9041_vm5, %v7433_v48, %v5598_v34  ;;  %8394 = vmatmul.mubr.bf16.gmra.mxu0 %v7440_v40  ;;  %v5056_v35 = vld [vmem:[#allocation2 + $0x70] sm:$0xf]  ;;  %v6066_v51 = vld [vmem:[#allocation2 + $0x18] sm:$0xf] }
 0x292   :  { %v5158_v41 = vrot.slane %v5157_v63, 4  ;;  %v5171_v42 = vor.u32 %v5170_v20, %v5167_v43  ;;  %v5179_v52 = vshrl.u32 %v5050_v33, 16  ;;  %v5182_v10 = vshll.u32 %v5050_v33, 16  ;;  %8397 = vmatprep.mubr.bf16.mxu0 %v7441_v29  ;;  %8442 = vmatpush3.bf16.msra.mxu0 %v8668_v5  ;;  %v8674_v58 = vld [vmem:[#allocation6 + $0x1d0] sm:$0xff]  }
 0x293   :  { %v5603_v62 = vsel %vm9041_vm5, %v7434_v32, %v5602_v55  ;;  %v5176_v27 = vrot.slane %v5174_v53, 5  ;;  %v5188_v8 = vshll.u32 %v10356_v19, 16  ;;  %v5193_v40 = vshrl.u32 %v5052_v1, 16  ;;  %8443 = vmatprep.subr.bf16.mxu0 %v8670_v4  ;;  %v6064_v61 = vld [vmem:[#allocation2 + $0x10] sm:$0xf] }
 0x294   :  { %v5163_v30 = vsel %vm8889_vm2, %v5158_v41, %v5162_v22  ;;  %8356 = vmatpush3.bf16.msra.mxu1 %v8667_v21  ;;  %v5172_v38 = vrot.slane %v5171_v42, 4  ;;  %v5181_v60 = vrot.slane %v5179_v52, 4  ;;  %v5184_v54 = vrot.slane %v5182_v10, 5  ;;  %v10481_v33 = vld [vmem:[#allocation2 + $0x14] sm:$0x1] }
 0x295   :  { %v5196_v26 = vshll.u32 %v5052_v1, 16  ;;  %8405 = vmatprep.subr.bf16.mxu1 %v8669_v45  ;;  %v7443_v49 = vcombine.low %v10450_v59, %v5603_v62  ;;  %v5195_v29 = vrot.slane %v5193_v40, 4  ;;  %v5202_v9 = vshll.u32 %v10374_v11, 16 }
 0x296   :  { %v7435_v6 = vrot.slane %v5514_v50, 9  ;;  %v5177_v19 = vsel %vm8889_vm2, %v5172_v38, %v5176_v27  ;;  %v5185_v57 = vor.u32 %v5184_v54, %v5181_v60  ;;  %v5606_v12 = vrot.slane %v10457_v56, 5  ;;  %8444 = vmatpush3.bf16.msra.mxu0 %v8670_v4  ;;  %v10492_v50 = vld [vmem:[#allocation2 + $0x1c] sm:$0x1] }
 0x297   :  { %v5198_v21 = vrot.slane %v5196_v26, 5  ;;  %8358 = vmatmul.mubr.bf16.vlgmr.msra.gmra.mxu1 %v10416_v37  ;;  %v7408_v5 = vcombine.low %v5163_v30, %v5177_v19  ;;  %v5190_v2 = vrot.slane %v5188_v8, 5  ;;  %v7436_v24 = vrot.slane %v5515_v46, 9  ;;  %8445 = vmatprep.subr.bf16.mxu0 %v8672_v0  ;;  %v8673_v37 = vld [vmem:[#allocation6 + $0x1a8] sm:$0xff]   ;;  %v5058_v30 = vld [vmem:[#allocation2 + $0x78] sm:$0xf] }
 0x298   :  { %v5610_v18 = vrot.slane %v10465_v17, 5  ;;  %8361 = vmatprep.mubr.bf16.mxu1 %v7407_v3  ;;  %8406 = vmatpush3.bf16.msra.mxu1 %v8669_v45  ;;  %v5186_v11 = vrot.slane %v5185_v57, 4  ;;  %v10476_v47 = vsel %vm9041_vm5, %v7435_v6, %v5606_v12  ;;  %v5207_v43 = vshrl.u32 %v5054_v16, 16  ;;  %v5060_v26 = vld [vmem:[#allocation2 + $0x80] sm:$0xf]  ;;  %v8677_v19 = vld [vmem:[#allocation6 + $0x198] sm:$0xff]  }
 0x299   :  { %v5199_v31 = vor.u32 %v5198_v21, %v5195_v29  ;;  %8407 = vmatprep.subr.bf16.mxu1 %v8671_v25  ;;  %v5210_v53 = vshll.u32 %v5054_v16, 16  ;;  %v5216_v48 = vshll.u32 %v10390_v39, 16  ;;  %v5221_v34 = vshrl.u32 %v5056_v35, 16  ;;  %8398 = vmatmul.mubr.bf16.gmra.mxu0 %v7442_v23 }
 0x29a   :  { %v5611_v63 = vsel %vm9041_vm5, %v7436_v24, %v5610_v18  ;;  %v5191_v4 = vsel %vm8889_vm2, %v5186_v11, %v5190_v2  ;;  %v5204_v32 = vrot.slane %v5202_v9, 5  ;;  %v5209_v55 = vrot.slane %v5207_v43, 4  ;;  %8401 = vmatprep.mubr.bf16.mxu0 %v7443_v49  ;;  %8446 = vmatpush3.bf16.msra.mxu0 %v8672_v0  ;;  %v8678_v9 = vld [vmem:[#allocation6 + $0x1c0] sm:$0xff]  }
 0x29b   :  { %v5200_v20 = vrot.slane %v5199_v31, 4  ;;  %v7444_v1 = vcombine.low %v10476_v47, %v5611_v63  ;;  %v5212_v45 = vrot.slane %v5210_v53, 5  ;;  %v5223_v39 = vrot.slane %v5221_v34, 4  ;;  %8447 = vmatprep.subr.bf16.mxu0 %v8674_v58  ;;  %v6068_v31 = vld [vmem:[#allocation2 + $0x20] sm:$0xf] }
 0x29c   :  { %v5224_v3 = vshll.u32 %v5056_v35, 16  ;;  %8408 = vmatpush3.bf16.msra.mxu1 %v8671_v25  ;;  %v5230_v23 = vshll.u32 %v10404_v13, 16  ;;  %v6097_v22 = vshrl.u32 %v6064_v61, 16  ;;  %v6100_v59 = vshll.u32 %v6064_v61, 16  ;;  %v10503_v63 = vld [vmem:[#allocation2 + $0x24] sm:$0x1] }
 0x29d   :  { %v5205_v41 = vsel %vm8889_vm2, %v5200_v20, %v5204_v32  ;;  %8409 = vmatprep.subr.bf16.mxu1 %v8673_v37  ;;  %v5213_v62 = vor.u32 %v5212_v45, %v5209_v55  ;;  %v5218_v52 = vrot.slane %v5216_v48, 5  ;;  %v6106_v8 = vshll.u32 %v10481_v33, 16  ;;  %v6070_v53 = vld [vmem:[#allocation2 + $0x28] sm:$0xf]  ;;  %v10506_v55 = vld [vmem:[#allocation2 + $0x2c] sm:$0x1] }
 0x29e   :  { %v7409_v42 = vcombine.low %v5191_v4, %v5205_v41  ;;  %v5226_v10 = vrot.slane %v5224_v3, 5  ;;  %v6099_v27 = vrot.slane %v6097_v22, 4  ;;  %v6102_v25 = vrot.slane %v6100_v59, 5  ;;  %8448 = vmatpush3.bf16.msra.mxu0 %v8674_v58  ;;  %v8679_v4 = vld [vmem:[#allocation6 + $0x190] sm:$0xff]  }
 0x29f   :  { %v6111_v40 = vshrl.u32 %v6066_v51, 16  ;;  %8362 = vmatmul.mubr.bf16.gmra.mxu1 %v7408_v5  ;;  %v5214_v38 = vrot.slane %v5213_v62, 4  ;;  %v5232_v13 = vrot.slane %v5230_v23, 5  ;;  %v6114_v54 = vshll.u32 %v6066_v51, 16  ;;  %8449 = vmatprep.subr.bf16.mxu0 %v8676_v15 }
 0x2a0   :  { %v5227_v60 = vor.u32 %v5226_v10, %v5223_v39  ;;  %8365 = vmatprep.mubr.bf16.mxu1 %v7409_v42  ;;  %8410 = vmatpush3.bf16.msra.mxu1 %v8673_v37  ;;  %v6103_v46 = vor.u32 %v6102_v25, %v6099_v27  ;;  %v6120_v49 = vshll.u32 %v10492_v50, 16  ;;  %v5235_v29 = vshrl.u32 %v5058_v30, 16  ;;  %v5064_v42 = vld [vmem:[#allocation2 + $0x90] sm:$0xf]  ;;  %v8680_v27 = vld [vmem:[#allocation6 + $0x188] sm:$0xff]  }
 0x2a1   :  { %v6113_v0 = vrot.slane %v6111_v40, 4  ;;  %8411 = vmatprep.subr.bf16.mxu1 %v8675_v14  ;;  %v5219_v6 = vsel %vm8889_vm2, %v5214_v38, %v5218_v52  ;;  %v6116_v57 = vrot.slane %v6114_v54, 5  ;;  %v5238_v21 = vshll.u32 %v5058_v30, 16  ;;  %8402 = vmatmul.mubr.bf16.gmra.mxu0 %v7444_v1 }
 0x2a2   :  { %v5228_v16 = vrot.slane %v5227_v60, 4  ;;  %v6104_v12 = vrot.slane %v6103_v46, 4  ;;  %v6108_v35 = vrot.slane %v6106_v8, 5  ;;  %v5237_v5 = vrot.slane %v5235_v29, 4  ;;  %8450 = vmatpush3.bf16.msra.mxu0 %v8676_v15  ;;  %v5062_v15 = vld [vmem:[#allocation2 + $0x88] sm:$0xf] }
 0x2a3   :  { %v5244_v2 = vshll.u32 %v10426_v7, 16  ;;  %v6117_v24 = vor.u32 %v6116_v57, %v6113_v0  ;;  %v5240_v18 = vrot.slane %v5238_v21, 5  ;;  %v5249_v11 = vshrl.u32 %v5060_v26, 16  ;;  %8451 = vmatprep.subr.bf16.mxu0 %v8678_v9 }
 0x2a4   :  { %v5233_v58 = vsel %vm8889_vm2, %v5228_v16, %v5232_v13  ;;  %8412 = vmatpush3.bf16.msra.mxu1 %v8675_v14  ;;  %v6109_v43 = vsel %vm8889_vm2, %v6104_v12, %v6108_v35  ;;  %v6122_v61 = vrot.slane %v6120_v49, 5  ;;  %v5252_v37 = vshll.u32 %v5060_v26, 16  ;;  %v10517_v12 = vld [vmem:[#allocation2 + $0x34] sm:$0x1]  ;;  %v6074_v35 = vld [vmem:[#allocation2 + $0x38] sm:$0xf] }
 0x2a5   :  { %v7410_v47 = vcombine.low %v5219_v6, %v5233_v58  ;;  %8413 = vmatprep.subr.bf16.mxu1 %v8677_v19  ;;  %v6118_v7 = vrot.slane %v6117_v24, 4  ;;  %v5241_v48 = vor.u32 %v5240_v18, %v5237_v5  ;;  %v5251_v34 = vrot.slane %v5249_v11, 4  ;;  %v8682_v6 = vld [vmem:[#allocation6 + $0x180] sm:$0xff]   ;;  %v10522_v18 = vld [vmem:[#allocation2 + $0x3c] sm:$0x1] }
 0x2a6   :  { %v5258_v51 = vshll.u32 %v10432_v44, 16  ;;  %v5246_v20 = vrot.slane %v5244_v2, 5  ;;  %v5254_v32 = vrot.slane %v5252_v37, 5  ;;  %v6125_v1 = vshrl.u32 %v6068_v31, 16  ;;  %8452 = vmatpush3.bf16.msra.mxu0 %v8678_v9  ;;  %v6072_v9 = vld [vmem:[#allocation2 + $0x30] sm:$0xf] }
 0x2a7   :  { %v6128_v45 = vshll.u32 %v6068_v31, 16  ;;  %8366 = vmatmul.mubr.bf16.gmra.mxu1 %v7410_v47  ;;  %v6123_v39 = vsel %vm8889_vm2, %v6118_v7, %v6122_v61  ;;  %v5242_v3 = vrot.slane %v5241_v48, 4  ;;  %v6134_v41 = vshll.u32 %v10503_v63, 16  ;;  %v6078_v48 = vld [vmem:[#allocation2 + $0x48] sm:$0xf] }
 0x2a8   :  { %v6139_v14 = vshrl.u32 %v6070_v53, 16  ;;  %v7469_v23 = vcombine.low %v6109_v43, %v6123_v39  ;;  %v5255_v22 = vor.u32 %v5254_v32, %v5251_v34  ;;  %8414 = vmatpush3.bf16.msra.mxu1 %v8677_v19  ;;  %v6127_v44 = vrot.slane %v6125_v1, 4  ;;  %v6076_v43 = vld [vmem:[#allocation2 + $0x40] sm:$0xf] }
 0x2a9   :  { %v6130_v59 = vrot.slane %v6128_v45, 5  ;;  %v5247_v62 = vsel %vm8889_vm2, %v5242_v3, %v5246_v20  ;;  %v5260_v52 = vrot.slane %v5258_v51, 5  ;;  %8415 = vmatprep.subr.bf16.mxu1 %v8679_v4  ;;  %v6142_v30 = vshll.u32 %v6070_v53, 16  ;;  %v10527_v20 = vld [vmem:[#allocation6 + $0x238] sm:$0xff]   ;;  %v10529_v3 = vld [vmem:[#allocation2 + $0x44] sm:$0x1] }
 0x2aa   :  { %v6141_v10 = vrot.slane %v6139_v14, 4  ;;  %8453 = vmatprep.mubr.bf16.mxu0 %v7469_v23  ;;  %v5256_v25 = vrot.slane %v5255_v22, 4  ;;  %v6148_v40 = vshll.u32 %v10506_v55, 16  ;;  %v5263_v38 = vshrl.u32 %v5062_v15, 16  ;;  %v6080_v22 = vld [vmem:[#allocation2 + $0x60] sm:$0xf] }
 0x2ab   :  { %v6131_v8 = vor.u32 %v6130_v59, %v6127_v44  ;;  %v6136_v60 = vrot.slane %v6134_v41, 5  ;;  %v6144_v13 = vrot.slane %v6142_v30, 5  ;;  %v5266_v54 = vshll.u32 %v5062_v15, 16 }
 0x2ac   :  { %v5277_v26 = vshrl.u32 %v5064_v42, 16  ;;  %v5261_v46 = vsel %vm8889_vm2, %v5256_v25, %v5260_v52  ;;  %8416 = vmatpush3.bf16.msra.mxu1 %v8679_v4  ;;  %v5265_v49 = vrot.slane %v5263_v38, 4  ;;  %v5272_v29 = vshll.u32 %v10457_v56, 16  ;;  %v10535_v25 = vld [vmem:[#allocation2 + $0x64] sm:$0x1] }
 0x2ad   :  { %v6132_v0 = vrot.slane %v6131_v8, 4  ;;  %v7411_v16 = vcombine.low %v5247_v62, %v5261_v46  ;;  %v6145_v19 = vor.u32 %v6144_v13, %v6141_v10  ;;  %v6150_v57 = vrot.slane %v6148_v40, 5  ;;  %8417 = vmatprep.subr.bf16.mxu1 %v8680_v27  ;;  %v6082_v13 = vld [vmem:[#allocation2 + $0x68] sm:$0xf] }
 0x2ae   :  { %v5268_v21 = vrot.slane %v5266_v54, 5  ;;  %v5279_v2 = vrot.slane %v5277_v26, 4  ;;  %v5280_v58 = vshll.u32 %v5064_v42, 16  ;;  %v5286_v24 = vshll.u32 %v10465_v17, 16 }
 0x2af   :  { %v6137_v5 = vsel %vm8889_vm2, %v6132_v0, %v6136_v60  ;;  %8369 = vmatprep.mubr.bf16.mxu1 %v7411_v16  ;;  %v6146_v56 = vrot.slane %v6145_v19, 4  ;;  %v6153_v31 = vshrl.u32 %v6072_v9, 16  ;;  %v6156_v47 = vshll.u32 %v6072_v9, 16  ;;  %v10542_v0 = vld [vmem:[#allocation2 + $0x4c] sm:$0x1] }
 0x2b0   :  { %v5269_v11 = vor.u32 %v5268_v21, %v5265_v49  ;;  %v5274_v61 = vrot.slane %v5272_v29, 5  ;;  %v5282_v37 = vrot.slane %v5280_v58, 5  ;;  %v6162_v53 = vshll.u32 %v10517_v12, 16  ;;  %8418 = vmatpush3.bf16.msra.mxu1 %v8680_v27  ;;  %v8681_v29 = vld [vmem:[#allocation2 + $0x10] ss:$8 sps:$4 sm:$0xff]  }
 0x2b1   :  { %v6167_v7 = vshrl.u32 %v6074_v35, 16  ;;  %v6151_v34 = vsel %vm8889_vm2, %v6146_v56, %v6150_v57  ;;  %v6155_v17 = vrot.slane %v6153_v31, 4  ;;  %v6158_v4 = vrot.slane %v6156_v47, 5  ;;  %8419 = vmatprep.subr.bf16.mxu1 %v8682_v6  ;;  %v10545_v21 = vld [vmem:[#allocation2 + $0x6c] sm:$0x1] }
 0x2b2   :  { %v5270_v51 = vrot.slane %v5269_v11, 4  ;;  %v7470_v32 = vcombine.low %v6137_v5, %v6151_v34  ;;  %v5283_v1 = vor.u32 %v5282_v37, %v5279_v2  ;;  %v5288_v45 = vrot.slane %v5286_v24, 5  ;;  %v6084_v31 = vld [vmem:[#allocation2 + $0x70] sm:$0xf] }
 0x2b3   :  { %v6164_v39 = vrot.slane %v6162_v53, 5  ;;  %v6159_v41 = vor.u32 %v6158_v4, %v6155_v17  ;;  %v6169_v14 = vrot.slane %v6167_v7, 4  ;;  %v6170_v15 = vshll.u32 %v6074_v35, 16  ;;  %v6086_v53 = vld [vmem:[#allocation2 + $0x78] sm:$0xf] }
 0x2b4   :  { %v6176_v23 = vshll.u32 %v10522_v18, 16  ;;  %8454 = vmatmul.mubr.bf16.vlgmr.msra.gmra.mxu0 %v7470_v32  ;;  %v5275_v44 = vsel %vm8889_vm2, %v5270_v51, %v5274_v61  ;;  %v5284_v59 = vrot.slane %v5283_v1, 4  ;;  %8420 = vmatpush3.bf16.msra.mxu1 %v8682_v6  ;;  %v6181_v42 = vshrl.u32 %v6076_v43, 16  ;;  %v10550_v17 = vld [vmem:[#allocation2 + $0x74] sm:$0x1] }
 0x2b5   :  { %v6184_v62 = vshll.u32 %v6076_v43, 16  ;;  %v6160_v52 = vrot.slane %v6159_v41, 4  ;;  %v6172_v10 = vrot.slane %v6170_v15, 5  ;;  %v6190_v30 = vshll.u32 %v10529_v3, 16  ;;  %8469 = vmatprep.subr.bf16.mxu1 %v10527_v20  ;;  %v8683_v4 = vld [vmem:[#allocation2 + $0x20] ss:$8 sps:$4 sm:$0xff]  }
 0x2b6   :  { %v6195_v27 = vshrl.u32 %v6078_v48, 16  ;;  %v5289_v8 = vsel %vm8889_vm2, %v5284_v59, %v5288_v45  ;;  %v6178_v40 = vrot.slane %v6176_v23, 5  ;;  %v6183_v38 = vrot.slane %v6181_v42, 4  ;;  %v8686_v23 = vld [vmem:[#allocation6 + $0x230] sm:$0xff]  }
 0x2b7   :  { %v6186_v60 = vrot.slane %v6184_v62, 5  ;;  %v7412_v54 = vcombine.low %v5275_v44, %v5289_v8  ;;  %v6165_v26 = vsel %vm8889_vm2, %v6160_v52, %v6164_v39  ;;  %v6173_v46 = vor.u32 %v6172_v10, %v6169_v14  ;;  %v6088_v10 = vld [vmem:[#allocation2 + $0x80] sm:$0xf] }
 0x2b8   :  { %v6197_v49 = vrot.slane %v6195_v27, 4  ;;  %v6198_v6 = vshll.u32 %v6078_v48, 16  ;;  %v6204_v16 = vshll.u32 %v10542_v0, 16  ;;  %v6209_v19 = vshrl.u32 %v6080_v22, 16 }
 0x2b9   :  { %v6187_v9 = vor.u32 %v6186_v60, %v6183_v38  ;;  %8370 = vmatmul.mubr.bf16.gmra.mxu1 %v7412_v54  ;;  %v6174_v57 = vrot.slane %v6173_v46, 4  ;;  %v6212_v35 = vshll.u32 %v6080_v22, 16  ;;  %v6218_v5 = vshll.u32 %v10535_v25, 16  ;;  %v10555_v22 = vld [vmem:[#allocation2 + $0x7c] sm:$0x1] }
 0x2ba   :  { %v6223_v2 = vshrl.u32 %v6082_v13, 16  ;;  %8421 = vmatprep.mubr.bf16.mxu1 %v8681_v29  ;;  %v6192_v24 = vrot.slane %v6190_v30, 5  ;;  %v6200_v56 = vrot.slane %v6198_v6, 5  ;;  %v6211_v11 = vrot.slane %v6209_v19, 4  ;;  %v6090_v60 = vld [vmem:[#allocation2 + $0x88] sm:$0xf] }
 0x2bb   :  { %v6188_v58 = vrot.slane %v6187_v9, 4  ;;  %v6179_v47 = vsel %vm8889_vm2, %v6174_v57, %v6178_v40  ;;  %v6206_v43 = vrot.slane %v6204_v16, 5  ;;  %v6214_v61 = vrot.slane %v6212_v35, 5  ;;  %v8685_v40 = vld [vmem:[#allocation2 + $0x30] ss:$8 sps:$4 sm:$0xff]  }
 0x2bc   :  { %v6220_v37 = vrot.slane %v6218_v5, 5  ;;  %v7471_v7 = vcombine.low %v6165_v26, %v6179_v47  ;;  %v6201_v48 = vor.u32 %v6200_v56, %v6197_v49  ;;  %v6225_v34 = vrot.slane %v6223_v2, 4  ;;  %v10564_v9 = vld [vmem:[#allocation2 + $0x84] sm:$0x1]  ;;  %v8688_v5 = vld [vmem:[#allocation6 + $0x228] sm:$0xff]  }
 0x2bd   :  { %v6226_v51 = vshll.u32 %v6082_v13, 16  ;;  %v6215_v32 = vor.u32 %v6214_v61, %v6211_v11  ;;  %v6232_v1 = vshll.u32 %v10545_v21, 16  ;;  %v6237_v45 = vshrl.u32 %v6084_v31, 16  ;;  %v6092_v56 = vld [vmem:[#allocation2 + $0x90] sm:$0xf] }
 0x2be   :  { %v6240_v39 = vshll.u32 %v6084_v31, 16  ;;  %8457 = vmatprep.mubr.bf16.mxu0 %v7471_v7  ;;  %v6193_v41 = vsel %vm8889_vm2, %v6188_v58, %v6192_v24  ;;  %v6202_v14 = vrot.slane %v6201_v48, 4  ;;  %v6251_v44 = vshrl.u32 %v6086_v53, 16  ;;  %v10568_v47 = vld [vmem:[#allocation2 + $0x8c] sm:$0x1] }
 0x2bf   :  { %v6228_v15 = vrot.slane %v6226_v51, 5  ;;  %v6216_v59 = vrot.slane %v6215_v32, 4  ;;  %v6239_v42 = vrot.slane %v6237_v45, 4  ;;  %v6246_v52 = vshll.u32 %v10550_v17, 16  ;;  %v6094_v61 = vld [vmem:[#allocation2 + $0x98] sm:$0xf] }
 0x2c0   :  { %v6242_v62 = vrot.slane %v6240_v39, 5  ;;  %v6207_v30 = vsel %vm8889_vm2, %v6202_v14, %v6206_v43  ;;  %v6234_v8 = vrot.slane %v6232_v1, 5  ;;  %v6253_v38 = vrot.slane %v6251_v44, 4  ;;  %v8690_v32 = vld [vmem:[#allocation6 + $0x220] sm:$0xff]   ;;  %v10573_v1 = vld [vmem:[#allocation2 + $0x94] sm:$0x1] }
 0x2c1   :  { %v6229_v27 = vor.u32 %v6228_v15, %v6225_v34  ;;  %v7472_v13 = vcombine.low %v6193_v41, %v6207_v30  ;;  %8422 = vmatmul.mubr.bf16.vlgmr.msra.gmra.mxu1 %v8683_v4  ;;  %v6221_v54 = vsel %vm8889_vm2, %v6216_v59, %v6220_v37  ;;  %v6254_v46 = vshll.u32 %v6086_v53, 16  ;;  %v8687_v53 = vld [vmem:[#allocation2 + $0x40] ss:$8 sps:$4 sm:$0xff]  }
 0x2c2   :  { %v6243_v26 = vor.u32 %v6242_v62, %v6239_v42  ;;  %8425 = vmatprep.mubr.bf16.mxu1 %v8685_v40  ;;  %8470 = vmatpush3.bf16.msra.mxu1 %v10527_v20  ;;  %v6260_v29 = vshll.u32 %v10555_v22, 16  ;;  %v6265_v6 = vshrl.u32 %v6088_v10, 16  ;;  %v6268_v16 = vshll.u32 %v6088_v10, 16 }
 0x2c3   :  { %v6230_v49 = vrot.slane %v6229_v27, 4  ;;  %8458 = vmatmul.mubr.bf16.gmra.mxu0 %v7472_v13  ;;  %8471 = vmatprep.subr.bf16.mxu1 %v8686_v23  ;;  %v6256_v57 = vrot.slane %v6254_v46, 5  ;;  %v6279_v35 = vshrl.u32 %v6090_v60, 16  ;;  %v6248_v20 = vrot.slane %v6246_v52, 5  ;;  %v10578_v27 = vld [vmem:[#allocation2 + $0x9c] sm:$0x1] }
 0x2c4   :  { %v6244_v19 = vrot.slane %v6243_v26, 4  ;;  %v6267_v58 = vrot.slane %v6265_v6, 4  ;;  %v6270_v24 = vrot.slane %v6268_v16, 5  ;;  %v6274_v43 = vshll.u32 %v10564_v9, 16  ;;  %v6530_v16 = vld [vmem:[#allocation2 + $0x10] sm:$0xe] }
 0x2c5   :  { %v6235_v2 = vsel %vm8889_vm2, %v6230_v49, %v6234_v8  ;;  %v6257_v31 = vor.u32 %v6256_v57, %v6253_v38  ;;  %v6262_v37 = vrot.slane %v6260_v29, 5  ;;  %v6281_v48 = vrot.slane %v6279_v35, 4  ;;  %v6531_v57 = vld [vmem:[#allocation2 + $0x18] sm:$0xe] }
 0x2c6   :  { %v7473_v11 = vcombine.low %v6221_v54, %v6235_v2  ;;  %8472 = vmatpush3.bf16.msra.mxu1 %v8686_v23  ;;  %v6271_v7 = vor.u32 %v6270_v24, %v6267_v58  ;;  %v6282_v34 = vshll.u32 %v6090_v60, 16  ;;  %v6249_v51 = vsel %vm8889_vm2, %v6244_v19, %v6248_v20  ;;  %v8689_v23 = vld [vmem:[#allocation2 + $0x60] ss:$8 sps:$4 sm:$0xff]   ;;  %v8692_v54 = vld [vmem:[#allocation6 + $0x218] sm:$0xff]  }
 0x2c7   :  { %v6258_v4 = vrot.slane %v6257_v31, 4  ;;  %8473 = vmatprep.subr.bf16.mxu1 %v8688_v5  ;;  %v6293_v45 = vshrl.u32 %v6092_v56, 16  ;;  %v6296_v39 = vshll.u32 %v6092_v56, 16  ;;  %v6288_v15 = vshll.u32 %v10568_v47, 16  ;;  %v8691_v24 = vld [vmem:[#allocation2 + $0x70] ss:$8 sps:$4 sm:$0xff]  }
 0x2c8   :  { %8461 = vmatprep.mubr.bf16.mxu0 %v7473_v11  ;;  %v6272_v41 = vrot.slane %v6271_v7, 4  ;;  %v6284_v14 = vrot.slane %v6282_v34, 5  ;;  %v6307_v44 = vshrl.u32 %v6094_v61, 16  ;;  %v6276_v10 = vrot.slane %v6274_v43, 5  ;;  %v8694_v56 = vld [vmem:[#allocation6 + $0x210] sm:$0xff]  }
 0x2c9   :  { %v6263_v59 = vsel %vm8889_vm2, %v6258_v4, %v6262_v37  ;;  %8426 = vmatmul.mubr.bf16.gmra.mxu1 %v8687_v53  ;;  %v6295_v42 = vrot.slane %v6293_v45, 4  ;;  %v6298_v62 = vrot.slane %v6296_v39, 5  ;;  %v6302_v8 = vshll.u32 %v10573_v1, 16  ;;  %v8693_v11 = vld [vmem:[#allocation2 + $0x80] ss:$8 sps:$4 sm:$0xff]  }
 0x2ca   :  { %v7474_v52 = vcombine.low %v6249_v51, %v6263_v59  ;;  %v6285_v30 = vor.u32 %v6284_v14, %v6281_v48  ;;  %8429 = vmatprep.mubr.bf16.mxu1 %v8689_v23  ;;  %8474 = vmatpush3.bf16.msra.mxu1 %v8688_v5  ;;  %v6309_v38 = vrot.slane %v6307_v44, 4  ;;  %v6310_v60 = vshll.u32 %v6094_v61, 16  ;;  %v8696_v48 = vld [vmem:[#allocation6 + $0x208] sm:$0xff]   ;;  %v6532_v51 = vld [vmem:[#allocation2 + $0x20] sm:$0xe] }
 0x2cb   :  { %8475 = vmatprep.subr.bf16.mxu1 %v8690_v32  ;;  %v6299_v40 = vor.u32 %v6298_v62, %v6295_v42  ;;  %v6316_v13 = vshll.u32 %v10578_v27, 16  ;;  %v6277_v26 = vsel %vm8889_vm2, %v6272_v41, %v6276_v10  ;;  %v6290_v49 = vrot.slane %v6288_v15, 5  ;;  %v6534_v45 = vld [vmem:[#allocation2 + $0x30] sm:$0xe]  ;;  %v8697_v41 = vld [vmem:[#allocation6 + $0x200] sm:$0xff]  }
 0x2cc   :  { %8462 = vmatmul.mubr.bf16.gmra.mxu0 %v7474_v52  ;;  %v6286_v46 = vrot.slane %v6285_v30, 4  ;;  %v6312_v6 = vrot.slane %v6310_v60, 5  ;;  %v6304_v5 = vrot.slane %v6302_v8, 5  ;;  %v7485_v20 = vrot.slane %v6530_v16, 9  ;;  %v8695_v39 = vld [vmem:[#allocation2 + $0x90] ss:$8 sps:$4 sm:$0xff]  }
 0x2cd   :  { %v6300_v29 = vrot.slane %v6299_v40, 4  ;;  %v6318_v58 = vrot.slane %v6316_v13, 5  ;;  %v6580_v31 = vrot.slane %v10481_v33, 5  ;;  %v7486_v37 = vrot.slane %v6531_v57, 9  ;;  %v6538_v40 = vld [vmem:[#allocation2 + $0x60] sm:$0xe] }
 0x2ce   :  { %v6291_v19 = vsel %vm8889_vm2, %v6286_v46, %v6290_v49  ;;  %8476 = vmatpush3.bf16.msra.mxu1 %v8690_v32  ;;  %v6313_v2 = vor.u32 %v6312_v6, %v6309_v38  ;;  %v6584_v53 = vrot.slane %v10492_v50, 5  ;;  %v6533_v32 = vld [vmem:[#allocation2 + $0x28] sm:$0xe]  ;;  %v6535_v50 = vld [vmem:[#allocation2 + $0x38] sm:$0xe]  ;;  %v7487_v28 = vrot.slane %v6532_v51, 9 }
 0x2cf   :  { %v7475_v35 = vcombine.low %v6277_v26, %v6291_v19  ;;  %8477 = vmatprep.subr.bf16.mxu1 %v8692_v54  ;;  %v6305_v43 = vsel %vm8889_vm2, %v6300_v29, %v6304_v5  ;;  %v6581_v33 = vsel %vm9041_vm5, %v7485_v20, %v6580_v31  ;;  %v6588_v15 = vrot.slane %v10503_v63, 5  ;;  %v6536_v63 = vld [vmem:[#allocation2 + $0x40] sm:$0xe]  ;;  %v6541_v5 = vld [vmem:[#allocation2 + $0x78] sm:$0xe] }
 0x2d0   :  { %v6314_v61 = vrot.slane %v6313_v2, 4  ;;  %v6585_v4 = vsel %vm9041_vm5, %v7486_v37, %v6584_v53  ;;  %v7488_v23 = vrot.slane %v6533_v32, 9  ;;  %v6592_v44 = vrot.slane %v10506_v55, 5  ;;  %v6542_v2 = vld [vmem:[#allocation2 + $0x80] sm:$0xe] }
 0x2d1   :  { %8465 = vmatprep.mubr.bf16.mxu0 %v7475_v35  ;;  %8430 = vmatmul.mubr.bf16.gmra.mxu1 %v8691_v24  ;;  %v7501_v14 = vcombine.low %v6581_v33, %v6585_v4  ;;  %v7489_v59 = vrot.slane %v6534_v45, 9  ;;  %v6596_v42 = vrot.slane %v10517_v12, 5  ;;  %v7490_v62 = vrot.slane %v6535_v50, 9  ;;  %v6537_v12 = vld [vmem:[#allocation2 + $0x48] sm:$0xe] }
 0x2d2   :  { %8433 = vmatprep.mubr.bf16.mxu1 %v8693_v11  ;;  %8478 = vmatpush3.bf16.msra.mxu1 %v8692_v54  ;;  %v6319_v7 = vsel %vm8889_vm2, %v6314_v61, %v6318_v58  ;;  %v6600_v52 = vrot.slane %v10522_v18, 5  ;;  %v6589_v10 = vsel %vm9041_vm5, %v7487_v28, %v6588_v15  ;;  %v6593_v30 = vsel %vm9041_vm5, %v7488_v23, %v6592_v44  ;;  %v6539_v18 = vld [vmem:[#allocation2 + $0x68] sm:$0xe]  ;;  %v6540_v35 = vld [vmem:[#allocation2 + $0x70] sm:$0xe] }
 0x2d3   :  { %8479 = vmatprep.subr.bf16.mxu1 %v8694_v56  ;;  %v7476_v34 = vcombine.low %v6305_v43, %v6319_v7  ;;  %v6597_v55 = vsel %vm9041_vm5, %v7489_v59, %v6596_v42  ;;  %v7502_v38 = vcombine.low %v6589_v10, %v6593_v30  ;;  %v7491_v60 = vrot.slane %v6536_v63, 9 }
 0x2d4   :  { %v6601_v8 = vsel %vm9041_vm5, %v7490_v62, %v6600_v52  ;;  %v6604_v54 = vrot.slane %v10529_v3, 5  ;;  %v7492_v26 = vrot.slane %v6537_v12, 9  ;;  %v6608_v46 = vrot.slane %v10542_v0, 5 }
 0x2d5   :  { %8466 = vmatmul.mubr.bf16.gmra.mxu0 %v7476_v34  ;;  %v7503_v13 = vcombine.low %v6597_v55, %v6601_v8  ;;  %v7493_v49 = vrot.slane %v6538_v40, 9  ;;  %v6612_v29 = vrot.slane %v10535_v25, 5  ;;  %v7494_v6 = vrot.slane %v6539_v18, 9  ;;  %v6543_v25 = vld [vmem:[#allocation2 + $0x88] sm:$0xe] }
 0x2d6   :  { %8480 = vmatpush3.bf16.msra.mxu1 %v8694_v56  ;;  %v6616_v16 = vrot.slane %v10545_v21, 5  ;;  %v6605_v19 = vsel %vm9041_vm5, %v7491_v60, %v6604_v54  ;;  %v6609_v57 = vsel %vm9041_vm5, %v7492_v26, %v6608_v46  ;;  %v7495_v24 = vrot.slane %v6540_v35, 9  ;;  %v6545_v34 = vld [vmem:[#allocation2 + $0x98] sm:$0xe] }
 0x2d7   :  { %8481 = vmatprep.subr.bf16.mxu1 %v8696_v48  ;;  %v6613_v3 = vsel %vm9041_vm5, %v7493_v49, %v6612_v29  ;;  %v7504_v58 = vcombine.low %v6605_v19, %v6609_v57  ;;  %v6620_v56 = vrot.slane %v10550_v17, 5  ;;  %v7496_v11 = vrot.slane %v6541_v5, 9 }
 0x2d8   :  { %v6617_v0 = vsel %vm9041_vm5, %v7494_v6, %v6616_v16  ;;  %v6624_v20 = vrot.slane %v10555_v22, 5  ;;  %v7497_v31 = vrot.slane %v6542_v2, 9  ;;  %v6628_v43 = vrot.slane %v10564_v9, 5 }
 0x2d9   :  { %8434 = vmatmul.mubr.bf16.gmra.mxu1 %v8695_v39  ;;  %v7505_v21 = vcombine.low %v6613_v3, %v6617_v0  ;;  %v7498_v61 = vrot.slane %v6543_v25, 9  ;;  %v6632_v37 = vrot.slane %v10568_v47, 5  ;;  %v6621_v53 = vsel %vm9041_vm5, %v7495_v24, %v6620_v56 }
 0x2da   :  { %8482 = vmatpush3.bf16.msra.mxu1 %v8696_v48  ;;  %8485 = vmatprep.mubr.bf16.mxu1 %v7501_v14  ;;  %v6625_v7 = vsel %vm9041_vm5, %v7496_v11, %v6624_v20  ;;  %v6544_v48 = vld [vmem:[#allocation2 + $0x90] sm:$0xe]  ;;  %v6629_v17 = vsel %vm9041_vm5, %v7497_v31, %v6628_v43  ;;  %v6636_v47 = vrot.slane %v10573_v1, 5  ;;  %v7500_v4 = vrot.slane %v6545_v34, 9 }
 0x2db   :  { %8483 = vmatprep.subr.bf16.mxu1 %v8697_v41  ;;  %v6633_v22 = vsel %vm9041_vm5, %v7498_v61, %v6632_v37  ;;  %v7506_v51 = vcombine.low %v6621_v53, %v6625_v7  ;;  %v7499_v9 = vrot.slane %v6544_v48, 9  ;;  %v6640_v32 = vrot.slane %v10578_v27, 5 }
 0x2dc   :  { %v7507_v33 = vcombine.low %v6629_v17, %v6633_v22 }
 0x2dd   :  { %v6637_v45 = vsel %vm9041_vm5, %v7499_v9, %v6636_v47  ;;  %v6641_v50 = vsel %vm9041_vm5, %v7500_v4, %v6640_v32 }
 0x2de   :  { %8484 = vmatpush3.bf16.msra.mxu1 %v8697_v41  ;;  %v7508_v39 = vcombine.low %v6637_v45, %v6641_v50 }
 0x2e1   :  { %8486 = vmatmul.mubr.bf16.vlgmr.msra.gmra.mxu1 %v7502_v38 }
 0x2e2   :  { %8489 = vmatprep.mubr.bf16.mxu1 %v7503_v13 }
 0x2e9   :  { %8490 = vmatmul.mubr.bf16.gmra.mxu1 %v7504_v58 }
 0x2ea   :  { %8493 = vmatprep.mubr.bf16.mxu1 %v7505_v21 }
 0x2f1   :  { %8494 = vmatmul.mubr.bf16.gmra.mxu1 %v7506_v51 }
 0x2f2   :  { %8497 = vmatprep.mubr.bf16.mxu1 %v7507_v33 }
 0x2f9   :  { %8498 = vmatmul.mubr.bf16.gmra.mxu1 %v7508_v39 }
 0x306   :  { %v8263_v41 = vpop.f32.mrf.mxu0 }
 0x308   :  { %v4407_v28 = vpop.f32.mrf.mxu0 }
 0x30a   :  { %v8264_v14 = vpop.f32.mrf.mxu0 }
 0x30c   :  { %v4410_v15 = vpop.f32.mrf.mxu0 }
 0x30e   :  { %v8267_v23 = vpop.f32.mrf.mxu0 }
 0x310   :  { %v4423_v44 = vpop.f32.mrf.mxu0 }
 0x312   :  { %v8268_v1 = vpop.f32.mrf.mxu0 }
 0x314   :  { %v4426_v27 = vpop.f32.mrf.mxu0 }
 0x316   :  { %v8231_v59 = vpop.f32.mrf.mxu1 }
 0x317   :  { %v4416_v42 = vadd.f32 %v8263_v41, %v8231_v59  ;;  %v8271_v10 = vpop.f32.mrf.mxu0 }
 0x318   :  { %v4214_v62 = vpop.f32.mrf.mxu1 }
 0x319   :  { %v4408_v52 = vadd.f32 %v4407_v28, %v4214_v62  ;;  %v4439_v55 = vpop.f32.mrf.mxu0 }
 0x31a   :  { %v8232_v30 = vpop.f32.mrf.mxu1 }
 0x31b   :  { %v4419_v63 = vadd.f32 %v8264_v14, %v8232_v30  ;;  %v8272_v12 = vpop.f32.mrf.mxu0 }
 0x31c   :  { %v4217_v36 = vpop.f32.mrf.mxu1 }
 0x31d   :  { %v4411_v8 = vadd.f32 %v4410_v15, %v4217_v36  ;;  %v4442_v38 = vpop.f32.mrf.mxu0 }
 0x31e   :  { %v8235_v40 = vpop.f32.mrf.mxu1 }
 0x31f   :  { %v4432_v18 = vadd.f32 %v8267_v23, %v8235_v40  ;;  %v8275_v54 = vpop.f32.mrf.mxu0 }
 0x320   :  { %v4230_v60 = vpop.f32.mrf.mxu1 }
 0x321   :  { %v4424_v13 = vadd.f32 %v4423_v44, %v4230_v60  ;;  %v4455_v49 = vpop.f32.mrf.mxu0 }
 0x322   :  { %v8236_v26 = vpop.f32.mrf.mxu1 }
 0x323   :  { %v4435_v46 = vadd.f32 %v8268_v1, %v8236_v26  ;;  %v8276_v16 = vpop.f32.mrf.mxu0 }
 0x324   :  { %v4233_v29 = vpop.f32.mrf.mxu1 }
 0x325   :  { %v4427_v6 = vadd.f32 %v4426_v27, %v4233_v29  ;;  %v4458_v57 = vpop.f32.mrf.mxu0 }
 0x327   :  { %v8239_v19 = vpop.f32.mrf.mxu1 }
 0x328   :  { %v4448_v35 = vadd.f32 %v8271_v10, %v8239_v19  ;;  %v8327_v5 = vpop.f32.mrf.mxu0 }
 0x329   :  { %v4246_v3 = vpop.f32.mrf.mxu1 }
 0x32a   :  { %v4440_v0 = vadd.f32 %v4439_v55, %v4246_v3  ;;  %v10638_v58 = vpop.f32.mrf.mxu0 }
 0x32b   :  { %v8240_v2 = vpop.f32.mrf.mxu1 }
 0x32c   :  { %v4451_v25 = vadd.f32 %v8272_v12, %v8240_v2  ;;  %v10640_v56 = vpop.f32.mrf.mxu0 }
 0x32d   :  { %v4249_v24 = vpop.f32.mrf.mxu1 }
 0x32e   :  { %v4443_v21 = vadd.f32 %v4442_v38, %v4249_v24  ;;  %v10642_v31 = vpop.f32.mrf.mxu0 }
 0x32f   :  { %v8243_v11 = vpop.f32.mrf.mxu1 }
 0x330   :  { %v4464_v20 = vadd.f32 %v8275_v54, %v8243_v11 }
 0x331   :  { %v4262_v43 = vpop.f32.mrf.mxu1  ;;  %v8331_v37 = vpop.f32.mrf.mxu0 }
 0x332   :  { %v4456_v61 = vadd.f32 %v4455_v49, %v4262_v43 }
 0x333   :  { %v8244_v53 = vpop.f32.mrf.mxu1  ;;  %v10644_v48 = vpop.f32.mrf.mxu0 }
 0x334   :  { %v4467_v7 = vadd.f32 %v8276_v16, %v8244_v53 }
 0x335   :  { %v4265_v17 = vpop.f32.mrf.mxu1  ;;  %v10646_v34 = vpop.f32.mrf.mxu0 }
 0x336   :  { %v4459_v22 = vadd.f32 %v4458_v57, %v4265_v17 }
 0x337   :  { %v8295_v51 = vpop.f32.mrf.mxu1  ;;  %v10648_v33 = vpop.f32.mrf.mxu0 }
 0x338   :  { %v4778_v9 = vadd.f32 %v8295_v51, %v4416_v42 }
 0x339   :  { %v4713_v47 = vpop.f32.mrf.mxu1  ;;  %v8335_v32 = vpop.f32.mrf.mxu0 }
 0x33a   :  { %v10650_v4 = vadd.f32 %v4713_v47, %v4408_v52  ;;  %v5020_v45 = vadd.f32 %v8327_v5, %v4778_v9 }
 0x33b   :  { %v8296_v50 = vpop.f32.mrf.mxu1  ;;  %v10654_v41 = vpop.f32.mrf.mxu0 }
 0x33c   :  { %v10652_v39 = vadd.f32 %v8296_v50, %v4419_v63 }
 0x33d   :  { %v4716_v28 = vpop.f32.mrf.mxu1  ;;  %v10658_v15 = vpop.f32.mrf.mxu0 }
 0x33e   :  { %v10656_v14 = vadd.f32 %v4716_v28, %v4411_v8 }
 0x33f   :  { %v8299_v23 = vpop.f32.mrf.mxu1  ;;  %v10660_v1 = vpop.f32.mrf.mxu0 }
 0x340   :  { %v4782_v44 = vadd.f32 %v8299_v23, %v4432_v18 }
 0x341   :  { %v4729_v59 = vpop.f32.mrf.mxu1  ;;  %v8339_v27 = vpop.f32.mrf.mxu0 }
 0x342   :  { %v10662_v42 = vadd.f32 %v4729_v59, %v4424_v13  ;;  %v5024_v62 = vadd.f32 %v8331_v37, %v4782_v44 }
 0x343   :  { %v8300_v52 = vpop.f32.mrf.mxu1  ;;  %v10666_v30 = vpop.f32.mrf.mxu0 }
 0x344   :  { %v10664_v10 = vadd.f32 %v8300_v52, %v4435_v46 }
 0x345   :  { %v4732_v63 = vpop.f32.mrf.mxu1  ;;  %v10670_v36 = vpop.f32.mrf.mxu0 }
 0x346   :  { %v10668_v55 = vadd.f32 %v4732_v63, %v4427_v6  ;;  %11080 = vst [vmem:[#allocation15_spill] sm:$0xff] %v10670_v36 }
 0x347   :  { %v8303_v8 = vpop.f32.mrf.mxu1  ;;  %v10672_v40 = vpop.f32.mrf.mxu0 }
 0x348   :  { %v4786_v12 = vadd.f32 %v8303_v8, %v4448_v35  ;;  %11081 = vst [vmem:[#allocation26_spill] sm:$0xff] %v10672_v40  ;;  %v5018_v40 = vadd.f32 %v10638_v58, %v10650_v4  ;;  %v5023_v4 = vadd.f32 %v10648_v33, %v10668_v55 }
 0x349   :  { %v4745_v18 = vpop.f32.mrf.mxu1  ;;  %v10676_v60 = vpop.f32.mrf.mxu0 }
 0x34a   :  { %v10674_v38 = vadd.f32 %v4745_v18, %v4440_v0  ;;  %v5028_v13 = vadd.f32 %v8335_v32, %v4786_v12 }
 0x34b   :  { %v8304_v54 = vpop.f32.mrf.mxu1  ;;  %v10680_v46 = vpop.f32.mrf.mxu0 }
 0x34c   :  { %v10678_v26 = vadd.f32 %v8304_v54, %v4451_v25 }
 0x34d   :  { %v4748_v49 = vpop.f32.mrf.mxu1  ;;  %v10684_v6 = vpop.f32.mrf.mxu0 }
 0x34e   :  { %v10682_v29 = vadd.f32 %v4748_v49, %v4443_v21 }
 0x34f   :  { %v8307_v16 = vpop.f32.mrf.mxu1  ;;  %v10686_v57 = vpop.f32.mrf.mxu0 }
 0x350   :  { %v4790_v19 = vadd.f32 %v8307_v16, %v4464_v20 }
 0x351   :  { %v4761_v35 = vpop.f32.mrf.mxu1  ;;  %v10690_v0 = vpop.f32.mrf.mxu0 }
 0x352   :  { %v10688_v3 = vadd.f32 %v4761_v35, %v4456_v61  ;;  %v5032_v5 = vadd.f32 %v8339_v27, %v4790_v19 }
 0x353   :  { %v8308_v2 = vpop.f32.mrf.mxu1  ;;  %v10694_v11 = vpop.f32.mrf.mxu0 }
 0x354   :  { %v10692_v25 = vadd.f32 %v8308_v2, %v4467_v7 }
 0x355   :  { %v4764_v24 = vpop.f32.mrf.mxu1  ;;  %v10700_v53 = vpop.f32.mrf.mxu0 }
 0x356   :  { %11082 = vst [vmem:[#allocation27_spill] sm:$0xff] %v10692_v25  ;;  %v10696_v21 = vadd.f32 %v4764_v24, %v4459_v22 }
 0x357   :  { %v8359_v43 = vpop.f32.mrf.mxu1  ;;  %v10702_v61 = vpop.f32.mrf.mxu0 }
 0x358   :  { %11083 = vst [vmem:[#allocation42_spill] sm:$0xff] %v10696_v21  ;;  %v10698_v37 = vadd.f32 %v8359_v43, %v5020_v45  ;;  %v5019_v21 = vadd.f32 %v10642_v31, %v10656_v14 }
 0x359   :  { %v5421_v20 = vpop.f32.mrf.mxu1  ;;  %v10706_v7 = vpop.f32.mrf.mxu0 }
 0x35a   :  { %11084 = vst [vmem:[#allocation39_spill] sm:$0xff] %v10706_v7 }
 0x35b   :  { %v8360_v17 = vpop.f32.mrf.mxu1  ;;  %v10710_v22 = vpop.f32.mrf.mxu0 }
 0x35d   :  { %v5424_v51 = vpop.f32.mrf.mxu1  ;;  %v10714_v44 = vpop.f32.mrf.mxu0 }
 0x35e   :  { %11086 = vst [vmem:[#allocation22_spill] sm:$0xff] %v10714_v44 }
 0x35f   :  { %v8363_v9 = vpop.f32.mrf.mxu1  ;;  %v10716_v59 = vpop.f32.mrf.mxu0 }
 0x360   :  { %v10704_v47 = vadd.f32 %v8363_v9, %v5024_v62  ;;  %11087 = vst [vmem:[#allocation23_spill] sm:$0xff] %v10716_v59 }
 0x361   :  { %v5437_v32 = vpop.f32.mrf.mxu1  ;;  %v10720_v52 = vpop.f32.mrf.mxu0 }
 0x362   :  { %11088 = vst [vmem:[#allocation30_spill] sm:$0xff] %v10720_v52 }
 0x363   :  { %v10708_v50 = vpop.f32.mrf.mxu1  ;;  %v10724_v63 = vpop.f32.mrf.mxu0 }
 0x364   :  { %11089 = vst [vmem:[#allocation41_spill] sm:$0xff] %v10724_v63 }
 0x365   :  { %v5440_v28 = vpop.f32.mrf.mxu1  ;;  %v10728_v12 = vpop.f32.mrf.mxu0 }
 0x366   :  { %11090 = vst [vmem:[#allocation25_spill] sm:$0xff] %v10728_v12 }
 0x367   :  { %v8367_v45 = vpop.f32.mrf.mxu1  ;;  %v10734_v49 = vpop.f32.mrf.mxu0 }
 0x368   :  { %v10712_v23 = vadd.f32 %v8367_v45, %v5028_v13  ;;  %11093 = vst [vmem:[#allocation20_spill] sm:$0xff] %v10734_v49 }
 0x369   :  { %v10718_v27 = vpop.f32.mrf.mxu1 }
 0x36a   :  { %11085 = vst [vmem:[#allocation18_spill] sm:$0xff] %v10712_v23 }
 0x36b   :  { %v10722_v62 = vpop.f32.mrf.mxu1 }
 0x36d   :  { %v10726_v8 = vpop.f32.mrf.mxu1 }
 0x374   :  { %v8455_v35 = vpop.f32.mrf.mxu0 }
 0x376   :  { %v6451_v43 = vpop.f32.mrf.mxu0 }
 0x378   :  { %v8456_v52 = vpop.f32.mrf.mxu0 }
 0x379   :  { %v8371_v18 = vpop.f32.mrf.mxu1 }
 0x37a   :  { %v10730_v54 = vadd.f32 %v8371_v18, %v5032_v5  ;;  %v6454_v5 = vpop.f32.mrf.mxu0 }
 0x37b   :  { %v10732_v13 = vpop.f32.mrf.mxu1 }
 0x37c   :  { %11091 = vst [vmem:[#allocation33_spill] sm:$0xff] %v10730_v54  ;;  %11092 = vst [vmem:[#allocation38_spill] sm:$0xff] %v10732_v13 }
 0x37d   :  { %v10736_v16 = vpop.f32.mrf.mxu1 }
 0x37e   :  { %11094 = vst [vmem:[#allocation17_spill] sm:$0xff] %v10736_v16 }
 0x37f   :  { %v10738_v19 = vpop.f32.mrf.mxu1 }
 0x380   :  { %11095 = vst [vmem:[#allocation31_spill] sm:$0xff] %v10738_v19 }
 0x381   :  { %v8423_v2 = vpop.f32.mrf.mxu1 }
 0x383   :  { %v5985_v24 = vpop.f32.mrf.mxu1  ;;  %v10744_v36 = vpop.f32.mrf.mxu0 }
 0x384   :  { %11096 = vst [vmem:[#allocation40_spill] sm:$0xff] %v10744_v36  ;;  %v5485_v36 = vadd.f32 %v5424_v51, %v5019_v21 }
 0x385   :  { %v8424_v9 = vpop.f32.mrf.mxu1  ;;  %v6467_v25 = vpop.f32.mrf.mxu0 }
 0x386   :  { %v5807_v31 = vadd.f32 %v10686_v57, %v5485_v36 }
 0x387   :  { %v5988_v45 = vpop.f32.mrf.mxu1  ;;  %v10754_v7 = vpop.f32.mrf.mxu0 }
 0x388   :  { %11101 = vst [vmem:[#allocation34_spill] sm:$0xff] %v10754_v7 }
 0x389   :  { %v10740_v63 = vpop.f32.mrf.mxu1 }
 0x38b   :  { %v6001_v12 = vpop.f32.mrf.mxu1 }
 0x38d   :  { %v10742_v18 = vpop.f32.mrf.mxu1 }
 0x38f   :  { %v6004_v54 = vpop.f32.mrf.mxu1 }
 0x391   :  { %v10746_v49 = vpop.f32.mrf.mxu1 }
 0x392   :  { %11097 = vst [vmem:[#allocation32_spill] sm:$0xff] %v10746_v49  ;;  %v5484_v49 = vadd.f32 %v5421_v20, %v5018_v40  ;;  %v6049_v20 = vadd.f32 %v5988_v45, %v5807_v31  ;;  %v5030_v31 = vadd.f32 %v10666_v30, %v10688_v3 }
 0x393   :  { %v10748_v16 = vpop.f32.mrf.mxu1 }
 0x394   :  { %11098 = vst [vmem:[#allocation35_spill] sm:$0xff] %v10748_v16  ;;  %v6470_v16 = vpop.f32.mrf.mxu0  ;;  %v5806_v58 = vadd.f32 %v10680_v46, %v5484_v49 }
 0x395   :  { %v10750_v44 = vpop.f32.mrf.mxu1 }
 0x396   :  { %11099 = vst [vmem:[#allocation29_spill] sm:$0xff] %v10750_v44  ;;  %v5021_v44 = vadd.f32 %v10640_v56, %v10652_v39  ;;  %v10776_v14 = vpop.f32.mrf.mxu0  ;;  %v5808_v56 = vadd.f32 %v10676_v60, %v10698_v37  ;;  %v6048_v39 = vadd.f32 %v5985_v24, %v5806_v58  ;;  %v5026_v60 = vadd.f32 %v10654_v41, %v10674_v38 }
 0x397   :  { %v10752_v19 = vpop.f32.mrf.mxu1 }
 0x398   :  { %11100 = vst [vmem:[#allocation28_spill] sm:$0xff] %v10752_v19  ;;  %v5487_v7 = vadd.f32 %v8360_v17, %v5021_v44  ;;  %v5489_v17 = vadd.f32 %v5440_v28, %v5023_v4  ;;  %v6050_v44 = vadd.f32 %v8423_v2, %v5808_v56  ;;  %v6483_v36 = vpop.f32.mrf.mxu0  ;;  %v6514_v57 = vadd.f32 %v6451_v43, %v6048_v39  ;;  %v11106_v39 = vld [vmem:[#allocation38_spill] sm:$0xff] }
 0x399   :  { %v10756_v23 = vpop.f32.mrf.mxu1 }
 0x39a   :  { %11102 = vst [vmem:[#allocation43_spill] sm:$0xff] %v10756_v23  ;;  %v5022_v23 = vadd.f32 %v10644_v48, %v10662_v42  ;;  %v5809_v48 = vadd.f32 %v10684_v6, %v5487_v7  ;;  %v5025_v42 = vadd.f32 %v10646_v34, %v10664_v10  ;;  %v5811_v37 = vadd.f32 %v10702_v61, %v5489_v17  ;;  %v10797_v2 = vpop.f32.mrf.mxu0  ;;  %v11107_v17 = vld [vmem:[#allocation42_spill] sm:$0xff] }
 0x39b   :  { %v10762_v13 = vpop.f32.mrf.mxu1  ;;  %v6516_v6 = vadd.f32 %v8455_v35, %v6050_v44  ;;  %v5492_v10 = vadd.f32 %v10718_v27, %v5026_v60  ;;  %v11109_v44 = vld [vmem:[#allocation18_spill] sm:$0xff] }
 0x39c   :  { %v5488_v21 = vadd.f32 %v5437_v32, %v5022_v23  ;;  %v6051_v33 = vadd.f32 %v8424_v9, %v5809_v48  ;;  %v6515_v32 = vadd.f32 %v6454_v5, %v6049_v20  ;;  %v5491_v23 = vadd.f32 %v10708_v50, %v5025_v42  ;;  %v6486_v9 = vpop.f32.mrf.mxu0  ;;  %v11110_v48 = vld [vmem:[#allocation39_spill] sm:$0xff] }
 0x39d   :  { %v10764_v59 = vpop.f32.mrf.mxu1  ;;  %v5812_v50 = vadd.f32 %v10690_v0, %v10704_v47  ;;  %v6053_v38 = vadd.f32 %v6004_v54, %v5811_v37  ;;  %v5029_v54 = vadd.f32 %v10658_v15, %v10678_v26  ;;  %v11104_v15 = vld [vmem:[#allocation35_spill] sm:$0xff]  ;;  %v5496_v20 = vadd.f32 %v11106_v39, %v5030_v31  ;;  %v11114_v37 = vld [vmem:[#allocation22_spill] sm:$0xff] }
 0x39e   :  { %v5810_v55 = vadd.f32 %v10694_v11, %v5488_v21  ;;  %v5027_v11 = vadd.f32 %v10660_v1, %v10682_v29  ;;  %v5813_v27 = vadd.f32 %v10700_v53, %v5491_v23  ;;  %v11105_v21 = vld [vmem:[#allocation40_spill] sm:$0xff]  ;;  %v5816_v30 = vadd.f32 %v11110_v48, %v11109_v44  ;;  %v11113_v23 = vld [vmem:[#allocation31_spill] sm:$0xff] }
 0x39f   :  { %v10768_v19 = vpop.f32.mrf.mxu1  ;;  %v6054_v1 = vadd.f32 %v10740_v63, %v5812_v50  ;;  %v6519_v58 = vadd.f32 %v6470_v16, %v6053_v38  ;;  %v5495_v63 = vadd.f32 %v10722_v62, %v5029_v54  ;;  %v11108_v16 = vld [vmem:[#allocation26_spill] sm:$0xff]  ;;  %v8467_v62 = vpop.f32.mrf.mxu0  ;;  %v11111_v42 = vld [vmem:[#allocation28_spill] sm:$0xff] }
 0x3a0   :  { %v6052_v49 = vadd.f32 %v6001_v12, %v5810_v55  ;;  %v6517_v12 = vadd.f32 %v8456_v52, %v6051_v33  ;;  %v5493_v24 = vadd.f32 %v10726_v8, %v5027_v11  ;;  %v5814_v52 = vadd.f32 %v10710_v22, %v5492_v10  ;;  %v11112_v55 = vld [vmem:[#allocation34_spill] sm:$0xff] }
 0x3a1   :  { %v8487_v40 = vpop.f32.mrf.mxu1  ;;  %v6055_v5 = vadd.f32 %v10742_v18, %v5813_v27  ;;  %v6520_v22 = vadd.f32 %v11105_v21, %v6054_v1  ;;  %v11118_v27 = vld [vmem:[#allocation41_spill] sm:$0xff]  ;;  %v11123_v21 = vld [vmem:[#allocation30_spill] sm:$0xff]  ;;  %v11125_v48 = vld [vmem:[#allocation43_spill] sm:$0xff] }
 0x3a2   :  { %v10799_v61 = vadd.f32 %v8487_v40, %v6516_v6  ;;  %v6518_v47 = vadd.f32 %v6467_v25, %v6052_v49  ;;  %v11103_v25 = vld [vmem:[#allocation23_spill] sm:$0xff]  ;;  %v6056_v26 = vadd.f32 %v11104_v15, %v5814_v52  ;;  %v11115_v6 = vld [vmem:[#allocation32_spill] sm:$0xff] }
 0x3a3   :  { %v6773_v51 = vpop.f32.mrf.mxu1  ;;  %v5815_v4 = vadd.f32 %v11103_v25, %v5493_v24  ;;  %v6058_v10 = vadd.f32 %v11115_v6, %v5816_v30 }
 0x3a4   :  { %v10788_v7 = vadd.f32 %v6773_v51, %v6514_v57  ;;  %v5031_v51 = vadd.f32 %v11108_v16, %v11107_v17  ;;  %v6521_v57 = vadd.f32 %v11112_v55, %v6055_v5  ;;  %v6522_v38 = vadd.f32 %v6483_v36, %v6056_v26  ;;  %v11122_v26 = vld [vmem:[#allocation33_spill] sm:$0xff] }
 0x3a5   :  { %v8488_v46 = vpop.f32.mrf.mxu1  ;;  %v6524_v36 = vadd.f32 %v10776_v14, %v6058_v10  ;;  %v11124_v16 = vld [vmem:[#allocation25_spill] sm:$0xff] }
 0x3a6   :  { %v10806_v29 = vadd.f32 %v8488_v46, %v6517_v12  ;;  %v6057_v46 = vadd.f32 %v11111_v42, %v5815_v4  ;;  %v5497_v60 = vadd.f32 %v11113_v23, %v5031_v51  ;;  %v11116_v12 = vld [vmem:[#allocation27_spill] sm:$0xff] }
 0x3a7   :  { %v6776_v28 = vpop.f32.mrf.mxu1 }
 0x3a8   :  { %v10790_v34 = vadd.f32 %v6776_v28, %v6515_v32  ;;  %v5817_v28 = vadd.f32 %v11114_v37, %v5495_v63  ;;  %v6523_v5 = vadd.f32 %v6486_v9, %v6057_v46  ;;  %v11121_v63 = vld [vmem:[#allocation20_spill] sm:$0xff] }
 0x3a9   :  { %v8491_v41 = vpop.f32.mrf.mxu1  ;;  %v5819_v31 = vadd.f32 %v11121_v63, %v5497_v60 }
 0x3aa   :  { %v6852_v35 = vadd.f32 %v10790_v34, %v10788_v7  ;;  %v10831_v33 = vadd.f32 %v8491_v41, %v6520_v22  ;;  %v6499_v41 = vpop.f32.mrf.mxu0  ;;  %v5820_v22 = vadd.f32 %v11123_v21, %v11122_v26 }
 0x3ab   :  { %v6789_v43 = vpop.f32.mrf.mxu1  ;;  %v6061_v39 = vadd.f32 %v10768_v19, %v5819_v31 }
 0x3ac   :  { %v6853_v0 = vadd.f32 %v6852_v35, %v10799_v61  ;;  %v10813_v8 = vadd.f32 %v6789_v43, %v6518_v47  ;;  %v11117_v35 = vld [vmem:[#allocation15_spill] sm:$0xff]  ;;  %v5818_v43 = vadd.f32 %v11118_v27, %v5496_v20  ;;  %v8468_v15 = vpop.f32.mrf.mxu0 }
 0x3ad   :  { %v8492_v45 = vpop.f32.mrf.mxu1  ;;  %v5033_v24 = vadd.f32 %v11117_v35, %v11116_v12 }
 0x3ae   :  { %v6854_v53 = vadd.f32 %v6853_v0, %v10806_v29  ;;  %v6843_v11 = vadd.f32 %v8492_v45, %v6521_v57  ;;  %v11119_v0 = vld [vmem:[#allocation29_spill] sm:$0xff]  ;;  %v6060_v25 = vadd.f32 %v10762_v13, %v5818_v43  ;;  %v6062_v13 = vadd.f32 %v11125_v48, %v5820_v22  ;;  %v6502_v46 = vpop.f32.mrf.mxu0 }
 0x3af   :  { %v6792_v40 = vpop.f32.mrf.mxu1  ;;  %v6059_v47 = vadd.f32 %v11119_v0, %v5817_v28  ;;  %v6527_v60 = vadd.f32 %v6502_v46, %v6061_v39 }
 0x3b0   :  { %v6855_v56 = vadd.f32 %v6854_v53, %v10813_v8  ;;  %v10823_v18 = vadd.f32 %v6792_v40, %v6519_v58  ;;  %v11120_v53 = vld [vmem:[#allocation17_spill] sm:$0xff]  ;;  %v6526_v42 = vadd.f32 %v6499_v41, %v6060_v25 }
 0x3b1   :  { %v8495_v3 = vpop.f32.mrf.mxu1  ;;  %v5499_v58 = vadd.f32 %v11120_v53, %v5033_v24  ;;  %v6525_v9 = vadd.f32 %v10797_v2, %v6059_v47 }
 0x3b2   :  { %v6856_v32 = vadd.f32 %v6855_v56, %v10823_v18  ;;  %v6846_v20 = vadd.f32 %v8495_v3, %v6524_v36  ;;  %v6528_v3 = vadd.f32 %v8467_v62, %v6062_v13 }
 0x3b3   :  { %v6805_v49 = vpop.f32.mrf.mxu1  ;;  %v5821_v51 = vadd.f32 %v11124_v16, %v5499_v58 }
 0x3b4   :  { %v6857_v50 = vadd.f32 %v6856_v32, %v10831_v33  ;;  %v6844_v54 = vadd.f32 %v6805_v49, %v6522_v38 }
 0x3b5   :  { %v8496_v1 = vpop.f32.mrf.mxu1  ;;  %v6063_v57 = vadd.f32 %v10764_v59, %v5821_v51 }
 0x3b6   :  { %v6858_v52 = vadd.f32 %v6857_v50, %v6843_v11  ;;  %v6847_v30 = vadd.f32 %v8496_v1, %v6525_v9 }
 0x3b7   :  { %v6808_v45 = vpop.f32.mrf.mxu1  ;;  %v6529_v49 = vadd.f32 %v8468_v15, %v6063_v57 }
 0x3b8   :  { %v6859_v4 = vadd.f32 %v6858_v52, %v6844_v54  ;;  %v6845_v40 = vadd.f32 %v6808_v45, %v6523_v5 }
 0x3b9   :  { %v8499_v56 = vpop.f32.mrf.mxu1 }
 0x3ba   :  { %v6860_v17 = vadd.f32 %v6859_v4, %v6845_v40  ;;  %v6850_v28 = vadd.f32 %v8499_v56, %v6528_v3 }
 0x3bb   :  { %v6821_v44 = vpop.f32.mrf.mxu1 }
 0x3bc   :  { %v6861_v14 = vadd.f32 %v6860_v17, %v6846_v20  ;;  %v6848_v32 = vadd.f32 %v6821_v44, %v6526_v42 }
 0x3bd   :  { %v8500_v55 = vpop.f32.mrf.mxu1 }
 0x3be   :  { %v6862_v23 = vadd.f32 %v6861_v14, %v6847_v30  ;;  %v6851_v10 = vadd.f32 %v8500_v55, %v6529_v49 }
 0x3bf   :  { %v6824_v19 = vpop.f32.mrf.mxu1 }
 0x3c0   :  { %v6863_v37 = vadd.f32 %v6862_v23, %v6848_v32  ;;  %v6849_v2 = vadd.f32 %v6824_v19, %v6527_v60 }
 0x3c2   :  { %v6864_v6 = vadd.f32 %v6863_v37, %v6849_v2 }
 0x3c4   :  { %v6865_v50 = vadd.f32 %v6864_v6, %v6850_v28 }
 0x3c6   :  { %v6866_v38 = vadd.f32 %v6865_v50, %v6851_v10  ;;  %v6928_v50 = vld [vmem:[%s10961_s5] sm:$0x1] }
 0x3c8   :  { %v6867_v12 = vrot.slane %v6866_v38, 4 }
 0x3ca   :  { %v6868_v35 = vadd.f32 %v6867_v12, %v6866_v38 }
 0x3cc   :  { %v6869_v24 = vrot.slane %v6868_v35, 2 }
 0x3ce   :  { %v6870_v41 = vadd.f32 %v6869_v24, %v6868_v35  ;;  %v11126_v35 = vld [vmem:[#allocation14_spill] sm:$0xff] }
 0x3cf   :  { %v11127_v24 = vsub.s32 0, %v11126_v35 }
 0x3d0   :  { %v6871_v27 = vrot.slane %v6870_v41, 1 }
 0x3d2   :  { %v6872_v43 = vadd.f32 %v6871_v27, %v6870_v41 }
 0x3d4   :  { %v6873_v59 = vmul.f32 0.0078125, %v6872_v43 }
 0x3d6   :  { %v10855_v1 = vsub.f32 %v10788_v7, %v6873_v59  ;;  %v10858_v62 = vsub.f32 %v10790_v34, %v6873_v59  ;;  %v10861_v0 = vsub.f32 %v10799_v61, %v6873_v59  ;;  %v6877_v47 = vsub.f32 %v10806_v29, %v6873_v59 }
 0x3d7   :  { %v6878_v52 = vsub.f32 %v10813_v8, %v6873_v59  ;;  %v6879_v5 = vsub.f32 %v10823_v18, %v6873_v59  ;;  %v6880_v53 = vsub.f32 %v10831_v33, %v6873_v59  ;;  %v6881_v58 = vsub.f32 %v6843_v11, %v6873_v59 }
 0x3d8   :  { %v6882_v63 = vsub.f32 %v6844_v54, %v6873_v59  ;;  %v6883_v31 = vsub.f32 %v6845_v40, %v6873_v59  ;;  %v6884_v45 = vsub.f32 %v6846_v20, %v6873_v59  ;;  %v6885_v7 = vsub.f32 %v6847_v30, %v6873_v59 }
 0x3d9   :  { %v6886_v25 = vsub.f32 %v6848_v32, %v6873_v59  ;;  %v6887_v36 = vsub.f32 %v6849_v2, %v6873_v59  ;;  %v6888_v34 = vsub.f32 %v6850_v28, %v6873_v59  ;;  %v6889_v4 = vsub.f32 %v6851_v10, %v6873_v59 }
 0x3da   :  { %v6890_v61 = vmul.f32 %v10855_v1, %v10855_v1  ;;  %v6891_v29 = vmul.f32 %v10858_v62, %v10858_v62  ;;  %v6892_v8 = vmul.f32 %v10861_v0, %v10861_v0  ;;  %v6893_v33 = vmul.f32 %v6877_v47, %v6877_v47 }
 0x3db   :  { %v6894_v54 = vmul.f32 %v6878_v52, %v6878_v52  ;;  %v6895_v15 = vmul.f32 %v6879_v5, %v6879_v5  ;;  %v6896_v21 = vmul.f32 %v6880_v53, %v6880_v53  ;;  %v6897_v56 = vmul.f32 %v6881_v58, %v6881_v58 }
 0x3dc   :  { %v6906_v18 = vadd.f32 %v6891_v29, %v6890_v61  ;;  %v6898_v20 = vmul.f32 %v6882_v63, %v6882_v63  ;;  %v6899_v17 = vmul.f32 %v6883_v31, %v6883_v31  ;;  %v6900_v51 = vmul.f32 %v6884_v45, %v6884_v45  ;;  %v10881_v29 = vld [vmem:[%s10962_s6] ss:$0 sm:$0xff] }
 0x3dd   :  { %v6901_v48 = vmul.f32 %v6885_v7, %v6885_v7  ;;  %v6902_v30 = vmul.f32 %v6886_v25, %v6886_v25  ;;  %v6903_v42 = vmul.f32 %v6887_v36, %v6887_v36  ;;  %v6904_v55 = vmul.f32 %v6888_v34, %v6888_v34 }
 0x3de   :  { %v6907_v11 = vadd.f32 %v6906_v18, %v6892_v8  ;;  %v6905_v32 = vmul.f32 %v6889_v4, %v6889_v4 }
 0x3e0   :  { %v6908_v40 = vadd.f32 %v6907_v11, %v6893_v33 }
 0x3e2   :  { %v6909_v26 = vadd.f32 %v6908_v40, %v6894_v54 }
 0x3e4   :  { %v6910_v22 = vadd.f32 %v6909_v26, %v6895_v15 }
 0x3e6   :  { %v6911_v39 = vadd.f32 %v6910_v22, %v6896_v21  ;;  %v7530_v21 = vld [vmem:[%s10956_s0 + $0xf1] sm:$0xff]  ;;  %v7531_v22 = vld [vmem:[%s10956_s0 + $0x101] sm:$0xff] }
 0x3e8   :  { %v6912_v9 = vadd.f32 %v6911_v39, %v6897_v56  ;;  %v7532_v56 = vld [vmem:[%s10956_s0 + $0x111] sm:$0xff] }
 0x3ea   :  { %v6913_v16 = vadd.f32 %v6912_v9, %v6898_v20 }
 0x3ec   :  { %v6914_v44 = vadd.f32 %v6913_v16, %v6899_v17  ;;  %v7533_v16 = vld [vmem:[%s10956_s0 + $0x121] sm:$0xff] }
 0x3ee   :  { %v6915_v13 = vadd.f32 %v6914_v44, %v6900_v51 }
 0x3f0   :  { %v6916_v14 = vadd.f32 %v6915_v13, %v6901_v48 }
 0x3f2   :  { %v6917_v46 = vadd.f32 %v6916_v14, %v6902_v30 }
 0x3f4   :  { %v6918_v57 = vadd.f32 %v6917_v46, %v6903_v42 }
 0x3f6   :  { %v6919_v23 = vadd.f32 %v6918_v57, %v6904_v55 }
 0x3f8   :  { %v6920_v60 = vadd.f32 %v6919_v23, %v6905_v32 }
 0x3fa   :  { %v6921_v19 = vrot.slane %v6920_v60, 4 }
 0x3fc   :  { %v6922_v3 = vadd.f32 %v6921_v19, %v6920_v60 }
 0x3fe   :  { %v6923_v37 = vrot.slane %v6922_v3, 2 }
 0x400   :  { %v6924_v2 = vadd.f32 %v6923_v37, %v6922_v3 }
 0x402   :  { %v6925_v28 = vrot.slane %v6924_v2, 1 }
 0x404   :  { %v6926_v49 = vadd.f32 %v6925_v28, %v6924_v2  ;;  %v7521_v2 = vld [vmem:[%s10956_s0 + $0x41] sm:$0xff] }
 0x406   :  { %v6927_v6 = vmul.f32 0.0078125, %v6926_v49 }
 0x408   :  { %v6929_v10 = vadd.f32 1e-05, %v6927_v6 }
 0x40a   :  { %8700 = vrsqrt.f32 %v6929_v10 }
 0x417   :  { %v8701_v38 = vpop.eup %8700 }
 0x418   :  { %v6931_v12 = vmul.f32 %v8701_v38, %v6928_v50  ;;  %v7522_v50 = vld [vmem:[%s10956_s0 + $0x51] sm:$0xff]  ;;  %v7523_v38 = vld [vmem:[%s10956_s0 + $0x61] sm:$0xff] }
 0x41a   :  { %v6936_v41 = vrot.slane %v6931_v12, %v11127_v24  ;;  %v7524_v12 = vld [vmem:[%s10956_s0 + $0x71] sm:$0xff] }
 0x41c   :  { %v6941_v27 = vmul.f32 %v6936_v41, %v6877_v47  ;;  %v6942_v43 = vmul.f32 %v6936_v41, %v6878_v52  ;;  %v6943_v59 = vmul.f32 %v6936_v41, %v6879_v5  ;;  %v6944_v61 = vmul.f32 %v6936_v41, %v6880_v53  ;;  %v7525_v47 = vld [vmem:[%s10956_s0 + $0x81] sm:$0xff]  ;;  %v7526_v52 = vld [vmem:[%s10956_s0 + $0xb1] sm:$0xff] }
 0x41d   :  { %v6945_v8 = vmul.f32 %v6936_v41, %v6881_v58  ;;  %v6946_v18 = vmul.f32 %v6936_v41, %v6882_v63  ;;  %v6947_v33 = vmul.f32 %v6936_v41, %v6883_v31  ;;  %v6948_v11 = vmul.f32 %v6936_v41, %v6884_v45  ;;  %v7527_v31 = vld [vmem:[%s10956_s0 + $0xc1] sm:$0xff]  ;;  %v7528_v45 = vld [vmem:[%s10956_s0 + $0xd1] sm:$0xff] }
 0x41e   :  { %v6949_v54 = vmul.f32 %v6936_v41, %v6885_v7  ;;  %v6950_v40 = vmul.f32 %v6936_v41, %v6886_v25  ;;  %v6951_v15 = vmul.f32 %v6936_v41, %v6887_v36  ;;  %v6952_v26 = vmul.f32 %v6936_v41, %v6888_v34  ;;  %v7529_v7 = vld [vmem:[%s10956_s0 + $0xe1] sm:$0xff] }
 0x41f   :  { %v6953_v5 = vmul.f32 %v6936_v41, %v6889_v4  ;;  %v6966_v53 = vadd.f32 %v10881_v29, %v6943_v59  ;;  %v6967_v58 = vadd.f32 %v10881_v29, %v6944_v61  ;;  %v6968_v63 = vadd.f32 %v10881_v29, %v6945_v8  ;;  %v7520_v59 = vld [vmem:[%s10956_s0 + $0x31] sm:$0xff] }
 0x420   :  { %v6969_v25 = vadd.f32 %v10881_v29, %v6946_v18  ;;  %v6970_v36 = vadd.f32 %v10881_v29, %v6947_v33  ;;  %v6971_v34 = vadd.f32 %v10881_v29, %v6948_v11  ;;  %v6972_v4 = vadd.f32 %v10881_v29, %v6949_v54 }
 0x421   :  { %v6973_v39 = vadd.f32 %v10881_v29, %v6950_v40  ;;  %v6974_v20 = vadd.f32 %v10881_v29, %v6951_v15  ;;  %v6975_v9 = vadd.f32 %v10881_v29, %v6952_v26  ;;  %v6976_v17 = vadd.f32 %v10881_v29, %v6953_v5 }
 0x422   :  { %v7001_v51 = vadd.f32 %v7525_v47, %v6968_v63  ;;  %v7002_v44 = vadd.f32 %v7526_v52, %v6969_v25  ;;  %v7003_v48 = vadd.f32 %v7527_v31, %v6970_v36  ;;  %v7004_v13 = vadd.f32 %v7528_v45, %v6971_v34 }
 0x423   :  { %v7005_v30 = vadd.f32 %v7529_v7, %v6972_v4  ;;  %v7006_v14 = vadd.f32 %v7530_v21, %v6973_v39  ;;  %v7007_v42 = vadd.f32 %v7531_v22, %v6974_v20  ;;  %v7008_v46 = vadd.f32 %v7532_v56, %v6975_v9 }
 0x424   :  { %v7009_v55 = vadd.f32 %v7533_v16, %v6976_v17  ;;  %v7018_v57 = vmax.f32 %v7002_v44, 0.0  ;;  %v7019_v32 = vmax.f32 %v7003_v48, 0.0  ;;  %v7020_v23 = vmax.f32 %v7004_v13, 0.0 }
 0x425   :  { %v7021_v60 = vmax.f32 %v7005_v30, 0.0  ;;  %v7022_v19 = vmax.f32 %v7006_v14, 0.0  ;;  %v7023_v3 = vmax.f32 %v7007_v42, 0.0  ;;  %v7024_v37 = vmax.f32 %v7008_v46, 0.0 }
 0x426   :  { %v7025_v28 = vmax.f32 %v7009_v55, 0.0  ;;  %v6938_v49 = vmul.f32 %v6936_v41, %v10855_v1  ;;  %v6939_v6 = vmul.f32 %v6936_v41, %v10858_v62  ;;  %v6940_v10 = vmul.f32 %v6936_v41, %v10861_v0  ;;  %v7518_v0 = vld [vmem:[%s10956_s0 + $0x11] sm:$0xff]  ;;  %v7519_v41 = vld [vmem:[%s10956_s0 + $0x21] sm:$0xff]  ;;  %s8773_s0 = smov [#allocation8]  }
 0x427   :  { %v7618_v35 = vpack.c.bf16 %v7021_v60, %v7020_v23  ;;  %v7623_v24 = vpack.c.bf16 %v7023_v3, %v7022_v19  ;;  %v6964_v1 = vadd.f32 %v10881_v29, %v6941_v27  ;;  %v6965_v62 = vadd.f32 %v10881_v29, %v6942_v43  ;;  %s7063_s10 = sshll.u32 %s8773_s0, 4  ;;  %s7064_s10 = int_to_ptr.vmem [resolvable:$true] %s7063_s10 }
 0x428   :  { %v7628_v61 = vpack.c.bf16 %v7025_v28, %v7024_v37  ;;  %v6961_v8 = vadd.f32 %v10881_v29, %v6938_v49  ;;  %v6962_v18 = vadd.f32 %v10881_v29, %v6939_v6  ;;  %v6963_v27 = vadd.f32 %v10881_v29, %v6940_v10  ;;  %s8743_s11 = scalar_lea.vmem %s7064_s10, 1024  ;;  %p8748_p11 = scmp.lt.s32.totalorder %s7064_s10, %s7064_s10 }
 0x429   :  { %7635 = vst [vmem:[#allocation8 + $0x30] sm:$0xff] %v7623_v24   ;;  %7634 = vst [vmem:[#allocation8 + $0x28] sm:$0xff] %v7618_v35   ;;  %v6997_v43 = vadd.f32 %v7521_v2, %v6964_v1  ;;  %v6998_v33 = vadd.f32 %v7522_v50, %v6965_v62  ;;  %v6999_v11 = vadd.f32 %v7523_v38, %v6966_v53  ;;  %v7017_v47 = vmax.f32 %v7001_v51, 0.0  ;;  %p8744_p10 = scmp.ne.s32.totalorder %s7064_s10, %s8743_s11  ;;  %p8749_p12 = scmp.lt.s32.totalorder %s8743_s11, %s8743_s11 }
 0x42a   :  { %v7000_v54 = vadd.f32 %v7524_v12, %v6967_v58  ;;  %7636 = vst [vmem:[#allocation8 + $0x38] sm:$0xff] %v7628_v61   ;;  %v6994_v40 = vadd.f32 %v7518_v0, %v6961_v8  ;;  %v6995_v15 = vadd.f32 %v7519_v41, %v6962_v18  ;;  %v6996_v26 = vadd.f32 %v7520_v59, %v6963_v27 }
 0x42b   :  { %v7013_v52 = vmax.f32 %v6997_v43, 0.0  ;;  %v7014_v5 = vmax.f32 %v6998_v33, 0.0  ;;  %v7015_v63 = vmax.f32 %v6999_v11, 0.0  ;;  %v7613_v25 = vpack.c.bf16 %v7019_v32, %v7018_v57  ;;  %p8750_p13 = por %p8749_p12, %p8748_p11 }
 0x42c   :  { %v7016_v31 = vmax.f32 %v7000_v54, 0.0  ;;  %v7010_v45 = vmax.f32 %v6994_v40, 0.0  ;;  %v7011_v7 = vmax.f32 %v6995_v15, 0.0  ;;  %v7012_v29 = vmax.f32 %v6996_v26, 0.0 }
 0x42d   :  { %v7603_v36 = vpack.c.bf16 %v7015_v63, %v7014_v5  ;;  %7633 = vst [vmem:[#allocation8 + $0x20] sm:$0xff] %v7613_v25   ;;  %p8751_p0 = pnand %p8750_p13, %p8744_p10 }
 0x42e   :  { %v7608_v34 = vpack.c.bf16 %v7017_v47, %v7016_v31  ;;  %v7593_v4 = vpack.c.bf16 %v7011_v7, %v7010_v45  ;;  %v7598_v53 = vpack.c.bf16 %v7013_v52, %v7012_v29 }
 0x42f   :  { %7631 = vst [vmem:[#allocation8 + $0x10] sm:$0xff] %v7603_v36  }
 0x430   :  { %7632 = vst [vmem:[#allocation8 + $0x18] sm:$0xff] %v7608_v34   ;;  %7594 = vst [vmem:[#allocation8] sm:$0xff] %v7593_v4  }
 0x431   :  { %7630 = vst [vmem:[#allocation8 + $0x8] sm:$0xff] %v7598_v53  }
 0x432   :  { %8754 = shalt.err (!%p8751_p0)
}
 0x433   :  { %7069 = dma.vmem_to_hbm [thread:$0]  %s7064_s10, 1024, %s10963_s7, [#allocation5], %s8770_s27, %s8770_s27, %s8771_s28  }
 0x434   :  { %8767 = dma.done.wait [#allocation5], 1024  }
 0x435   :  { %8768 = vsyncadd [#allocation5], 4294966272 }
 0x436   :  { %7073 = vsyncpa [#allocation4], 1 }
 0x437   :  { %7074 = vsyncpa [#allocation7], 1 }
 0x438   :  { %7075 = vsyncpa [#allocation5], 1 }

</bundles_post_ra>
